<compile_context>
chip_gen: v5e
topology: v5e:2x2
jax: 0.10.0
libtpu: 0.0.40
codegen_flags: <defaults>
</compile_context>

<pallas_src>
import functools

import jax
import jax.numpy as jnp
from jax.experimental import pallas as pl
from jax.experimental.pallas import tpu as pltpu

EPS = 1e-5
LANE = 128
VMEM_LIMIT = 48 * 1024 * 1024   # sized for v7x (64 MiB physical) with headroom


# ------------------------------ helpers -------------------------------------

def _ceil_mult(x, m):
    return ((x + m - 1) // m) * m


def _pad_axis(a, axis, target):
    pad = target - a.shape[axis]
    if pad == 0:
        return a
    widths = [(0, 0)] * a.ndim
    widths[axis] = (0, pad)
    return jnp.pad(a, widths)


def _choose_tile_m(M, target=512):
    """Largest multiple-of-8 divisor of M that is <= target (or M itself)."""
    if M <= target:
        return M
    t = target - (target % 8)
    while t >= 8:
        if M % t == 0:
            return t
        t -= 8
    return M


def _fold_bn(s_sum, s_sq, gamma, beta, count):
    """Fold batch statistics into y = x*scale + shift (tiny (1, C) vectors)."""
    mean = s_sum * (1.0 / count)
    var = jnp.maximum(s_sq * (1.0 / count) - mean * mean, 0.0)
    scale = gamma * jax.lax.rsqrt(var + EPS)
    shift = beta - mean * scale
    return scale, shift


# ------------------------------ kernels -------------------------------------

def stage1_kernel(x_ref, w1_ref, y1_ref, sum_ref, sq_ref):
    """conv1 (1x1) on an M-tile + accumulate per-channel bn1 sum/sumsq."""
    @pl.when(pl.program_id(0) == 0)
    def _():
        sum_ref[...] = jnp.zeros_like(sum_ref)
        sq_ref[...] = jnp.zeros_like(sq_ref)

    y = jnp.dot(x_ref[...].astype(jnp.bfloat16), w1_ref[...],
                preferred_element_type=jnp.float32)
    y1_ref[...] = y.astype(y1_ref.dtype)
    sum_ref[...] += jnp.sum(y, axis=0, keepdims=True)
    sq_ref[...] += jnp.sum(y * y, axis=0, keepdims=True)


def stage2_kernel(y1_ref, sc1_ref, sh1_ref, w2_ref,
                  y2_ref, sum_ref, sq_ref, xp_ref, *, H, W):
    """bn1 normalize + relu -> 3x3 conv (stride 1, pad 1) on one image,
    plus accumulate bn2 sum/sumsq.  Halo handled in the VMEM scratch."""
    n = pl.program_id(0)

    @pl.when(n == 0)
    def _():
        sum_ref[...] = jnp.zeros_like(sum_ref)
        sq_ref[...] = jnp.zeros_like(sq_ref)
        xp_ref[...] = jnp.zeros_like(xp_ref)   # zero halo once; interior rewritten

    x = y1_ref[0].astype(jnp.float32)                        # (H, W, Cmid)
    xn = jnp.maximum(x * sc1_ref[...] + sh1_ref[...], 0.0)
    xp_ref[1:H + 1, 1:W + 1, :] = xn.astype(xp_ref.dtype)    # interior of halo buf

    cin = w2_ref.shape[2]
    cout = w2_ref.shape[3]
    acc = jnp.zeros((H * W, cout), jnp.float32)
    for kh in range(3):
        for kw in range(3):
            patch = xp_ref[kh:kh + H, kw:kw + W, :].reshape(H * W, cin)
            acc = acc + jnp.dot(patch, w2_ref[kh, kw],
                                preferred_element_type=jnp.float32)

    y2_ref[...] = acc.reshape(1, H, W, cout).astype(y2_ref.dtype)
    sum_ref[...] += jnp.sum(acc, axis=0, keepdims=True)
    sq_ref[...] += jnp.sum(acc * acc, axis=0, keepdims=True)


def stage3_kernel(y2_ref, sc2_ref, sh2_ref, w3_ref, y3_ref, sum_ref, sq_ref):
    """bn2 normalize + relu -> conv3 (1x1) on an M-tile + bn3 sum/sumsq."""
    @pl.when(pl.program_id(0) == 0)
    def _():
        sum_ref[...] = jnp.zeros_like(sum_ref)
        sq_ref[...] = jnp.zeros_like(sq_ref)

    x = y2_ref[...].astype(jnp.float32)
    xn = jnp.maximum(x * sc2_ref[...] + sh2_ref[...], 0.0)
    y = jnp.dot(xn.astype(jnp.bfloat16), w3_ref[...],
                preferred_element_type=jnp.float32)
    y3_ref[...] = y.astype(y3_ref.dtype)
    sum_ref[...] += jnp.sum(y, axis=0, keepdims=True)
    sq_ref[...] += jnp.sum(y * y, axis=0, keepdims=True)


def stage4_kernel(y3_ref, sc3_ref, sh3_ref, res_ref, o_ref):
    """bn3 normalize -> add identity residual -> relu on an M-tile."""
    y = y3_ref[...].astype(jnp.float32) * sc3_ref[...] + sh3_ref[...] + res_ref[...]
    o_ref[...] = jnp.maximum(y, 0.0)


# ------------------------------ module glue ---------------------------------

def init_params(key, inplanes, planes):
    """Deterministic synthetic parameters matching Bottleneck.__init__ shapes."""
    expansion = 4
    ks = jax.random.split(key, 16)
    p = {}
    # Conv weights stored directly in matmul-friendly layouts:
    #   conv1: torch (planes, inplanes, 1, 1)   -> (inplanes, planes)
    #   conv2: torch (planes, planes, 3, 3)     -> (3, 3, planes, planes)
    #   conv3: torch (4*planes, planes, 1, 1)   -> (planes, 4*planes)
    p["w1"] = 0.1 * jax.random.normal(ks[0], (inplanes, planes), jnp.float32)
    p["w2"] = 0.1 * jax.random.normal(ks[1], (3, 3, planes, planes), jnp.float32)
    p["w3"] = 0.1 * jax.random.normal(ks[2], (planes, planes * expansion), jnp.float32)
    i = 3
    for name, c in (("bn1", planes), ("bn2", planes), ("bn3", planes * expansion)):
        for sel in ("S", "T"):   # bnX ('S' branch) and bnX_temp ('T' branch)
            p[f"{name}_{sel}_g"] = 1.0 + 0.1 * jax.random.normal(ks[i], (1, c), jnp.float32); i += 1
            p[f"{name}_{sel}_b"] = 0.1 * jax.random.normal(ks[i], (1, c), jnp.float32); i += 1
    return p


@functools.partial(jax.jit, static_argnames=("sel", "stride"))
def _bottleneck_impl(x_nchw, params, *, sel, stride):
    N, Cin, H, W = x_nchw.shape
    planes = params["w1"].shape[1]
    cout = params["w3"].shape[1]
    # TODO(synk): the optional `downsample` submodule is None in this config;
    # identity residual is used (requires stride == 1 and inplanes == 4*planes).
    assert stride == 1 and Cin == cout, "identity residual path only"

    Cin_p = _ceil_mult(Cin, LANE)
    Cmid_p = _ceil_mult(planes, LANE)
    Cout_p = _ceil_mult(cout, LANE)
    M = N * H * W
    TILE_M = _choose_tile_m(M)
    nM = M // TILE_M
    count = float(M)

    # channels-last, channel axis zero-padded to a lane multiple.
    # TODO(synk): stacked blocks should stay NHWC end-to-end to drop these transposes.
    x_nhwc = jnp.transpose(x_nchw, (0, 2, 3, 1)).astype(jnp.float32)
    x2d = _pad_axis(x_nhwc.reshape(M, Cin), 1, Cin_p)        # f32 (M, Cin_p)

    w1 = _pad_axis(_pad_axis(params["w1"], 0, Cin_p), 1, Cmid_p).astype(jnp.bfloat16)
    w2 = _pad_axis(_pad_axis(params["w2"], 2, Cmid_p), 3, Cmid_p).astype(jnp.bfloat16)
    w3 = _pad_axis(_pad_axis(params["w3"], 0, Cmid_p), 1, Cout_p).astype(jnp.bfloat16)
    g1 = _pad_axis(params[f"bn1_{sel}_g"], 1, Cmid_p)
    b1 = _pad_axis(params[f"bn1_{sel}_b"], 1, Cmid_p)
    g2 = _pad_axis(params[f"bn2_{sel}_g"], 1, Cmid_p)
    b2 = _pad_axis(params[f"bn2_{sel}_b"], 1, Cmid_p)
    g3 = _pad_axis(params[f"bn3_{sel}_g"], 1, Cout_p)
    b3 = _pad_axis(params[f"bn3_{sel}_b"], 1, Cout_p)

    def vec(c):
        return pl.BlockSpec((1, c), lambda i: (0, 0))

    # --- stage 1: conv1 (1x1) + bn1 statistics, tiled over M -----------------
    y1, s1, q1 = pl.pallas_call(
        stage1_kernel,
        out_shape=(jax.ShapeDtypeStruct((M, Cmid_p), jnp.bfloat16),
                   jax.ShapeDtypeStruct((1, Cmid_p), jnp.float32),
                   jax.ShapeDtypeStruct((1, Cmid_p), jnp.float32)),
        grid=(nM,),
        in_specs=[pl.BlockSpec((TILE_M, Cin_p), lambda i: (i, 0)),
                  pl.BlockSpec((Cin_p, Cmid_p), lambda i: (0, 0))],
        out_specs=(pl.BlockSpec((TILE_M, Cmid_p), lambda i: (i, 0)),
                   vec(Cmid_p), vec(Cmid_p)),
        compiler_params=pltpu.CompilerParams(
            dimension_semantics=("arbitrary",), vmem_limit_bytes=VMEM_LIMIT),
    )(x2d, w1)
    sc1, sh1 = _fold_bn(s1, q1, g1, b1, count)

    # --- stage 2: bn1+relu -> 3x3 conv (halo in VMEM scratch) + bn2 stats ----
    y1_nhwc = y1.reshape(N, H, W, Cmid_p)
    y2, s2, q2 = pl.pallas_call(
        functools.partial(stage2_kernel, H=H, W=W),
        out_shape=(jax.ShapeDtypeStruct((N, H, W, Cmid_p), jnp.bfloat16),
                   jax.ShapeDtypeStruct((1, Cmid_p), jnp.float32),
                   jax.ShapeDtypeStruct((1, Cmid_p), jnp.float32)),
        grid=(N,),
        in_specs=[pl.BlockSpec((1, H, W, Cmid_p), lambda n: (n, 0, 0, 0)),
                  vec(Cmid_p), vec(Cmid_p),
                  pl.BlockSpec((3, 3, Cmid_p, Cmid_p), lambda n: (0, 0, 0, 0))],
        out_specs=(pl.BlockSpec((1, H, W, Cmid_p), lambda n: (n, 0, 0, 0)),
                   vec(Cmid_p), vec(Cmid_p)),
        scratch_shapes=[pltpu.VMEM((H + 2, W + 2, Cmid_p), jnp.bfloat16)],
        compiler_params=pltpu.CompilerParams(
            dimension_semantics=("arbitrary",), vmem_limit_bytes=VMEM_LIMIT),
    )(y1_nhwc, sc1, sh1, w2)
    sc2, sh2 = _fold_bn(s2, q2, g2, b2, count)

    # --- stage 3: bn2+relu -> conv3 (1x1) + bn3 statistics, tiled over M -----
    y2_2d = y2.reshape(M, Cmid_p)
    y3, s3, q3 = pl.pallas_call(
        stage3_kernel,
        out_shape=(jax.ShapeDtypeStruct((M, Cout_p), jnp.bfloat16),
                   jax.ShapeDtypeStruct((1, Cout_p), jnp.float32),
                   jax.ShapeDtypeStruct((1, Cout_p), jnp.float32)),
        grid=(nM,),
        in_specs=[pl.BlockSpec((TILE_M, Cmid_p), lambda i: (i, 0)),
                  vec(Cmid_p), vec(Cmid_p),
                  pl.BlockSpec((Cmid_p, Cout_p), lambda i: (0, 0))],
        out_specs=(pl.BlockSpec((TILE_M, Cout_p), lambda i: (i, 0)),
                   vec(Cout_p), vec(Cout_p)),
        compiler_params=pltpu.CompilerParams(
            dimension_semantics=("arbitrary",), vmem_limit_bytes=VMEM_LIMIT),
    )(y2_2d, sc2, sh2, w3)
    sc3, sh3 = _fold_bn(s3, q3, g3, b3, count)

    # --- stage 4: bn3 -> + residual -> relu, tiled over M (parallel) ---------
    out2d = pl.pallas_call(
        stage4_kernel,
        out_shape=jax.ShapeDtypeStruct((M, Cout_p), jnp.float32),
        grid=(nM,),
        in_specs=[pl.BlockSpec((TILE_M, Cout_p), lambda i: (i, 0)),
                  vec(Cout_p), vec(Cout_p),
                  pl.BlockSpec((TILE_M, Cout_p), lambda i: (i, 0))],
        out_specs=pl.BlockSpec((TILE_M, Cout_p), lambda i: (i, 0)),
        compiler_params=pltpu.CompilerParams(
            dimension_semantics=("parallel",), vmem_limit_bytes=VMEM_LIMIT),
    )(y3, sc3, sh3, x2d)

    out = out2d[:, :cout].reshape(N, H, W, cout)
    return jnp.transpose(out, (0, 3, 1, 2))


def bottleneck_forward(x_nchw, ST, params, stride=1):
    """Mirrors Bottleneck.forward({0: x, 1: ST}) with downsample=None."""
    sel = "S" if ST == "S" else "T"
    out_nchw = _bottleneck_impl(x_nchw, params, sel=sel, stride=stride)
    return {0: out_nchw, 1: ST}


# ------------------------------ pure-JAX reference --------------------------

def _reference_forward(x_nchw, ST, params):
    """Pure-JAX reference with matching bf16 matmul inputs / f32 BN math."""
    sel = "S" if ST == "S" else "T"
    N, Cin, H, W = x_nchw.shape
    planes = params["w1"].shape[1]
    M = N * H * W
    x = jnp.transpose(x_nchw, (0, 2, 3, 1)).astype(jnp.float32)
    x2d = x.reshape(M, Cin)

    def bn(y_stats, y_used, g, b):
        mean = jnp.mean(y_stats, axis=0, keepdims=True)
        var = jnp.maximum(jnp.mean(y_stats * y_stats, axis=0, keepdims=True)
                          - mean * mean, 0.0)
        scale = g * jax.lax.rsqrt(var + EPS)
        return y_used * scale + (b - mean * scale)

    y1f = jnp.dot(x2d.astype(jnp.bfloat16), params["w1"].astype(jnp.bfloat16),
                  preferred_element_type=jnp.float32)
    y1 = y1f.astype(jnp.bfloat16).astype(jnp.float32)
    h1 = jnp.maximum(bn(y1f, y1, params[f"bn1_{sel}_g"], params[f"bn1_{sel}_b"]), 0.0)
    h1 = h1.astype(jnp.bfloat16).astype(jnp.float32)

    xp = jnp.pad(h1.reshape(N, H, W, planes), ((0, 0), (1, 1), (1, 1), (0, 0)))
    w2 = params["w2"].astype(jnp.bfloat16)
    y2f = jnp.zeros((N, H, W, planes), jnp.float32)
    for kh in range(3):
        for kw in range(3):
            patch = xp[:, kh:kh + H, kw:kw + W, :].astype(jnp.bfloat16)
            y2f = y2f + jnp.einsum("nhwc,cd->nhwd", patch, w2[kh, kw],
                                   preferred_element_type=jnp.float32)
    y2f = y2f.reshape(M, planes)
    y2 = y2f.astype(jnp.bfloat16).astype(jnp.float32)
    h2 = jnp.maximum(bn(y2f, y2, params[f"bn2_{sel}_g"], params[f"bn2_{sel}_b"]), 0.0)

    y3f = jnp.dot(h2.astype(jnp.bfloat16), params["w3"].astype(jnp.bfloat16),
                  preferred_element_type=jnp.float32)
    y3 = y3f.astype(jnp.bfloat16).astype(jnp.float32)
    out = bn(y3f, y3, params[f"bn3_{sel}_g"], params[f"bn3_{sel}_b"]) + x2d
    out = jnp.maximum(out, 0.0)
    return jnp.transpose(out.reshape(N, H, W, -1), (0, 3, 1, 2))


if __name__ == "__main__":
    key = jax.random.PRNGKey(0)
    N, inplanes, H, W = 2, 16, 8, 8
    planes = 4  # expansion 4 -> output channels = 16 = inplanes (identity residual)

    params = init_params(key, inplanes, planes)
    x = jax.random.normal(jax.random.fold_in(key, 99), (N, inplanes, H, W), jnp.float32)

    out_s = bottleneck_forward(x, "S", params)   # source-domain BN branch
    jax.block_until_ready(out_s[0])
    out_t = bottleneck_forward(x, "T", params)   # target-domain (bn*_temp) branch
    jax.block_until_ready(out_t[0])

    assert out_s[0].shape == (N, planes * 4, H, W)
    assert out_s[1] == "S" and out_t[1] == "T"
    assert bool(jnp.all(jnp.isfinite(out_s[0])))
    assert bool(jnp.all(jnp.isfinite(out_t[0])))

    ref_s = _reference_forward(x, "S", params)
    ref_t = _reference_forward(x, "T", params)
    assert bool(jnp.allclose(out_s[0], ref_s, atol=2e-2, rtol=2e-2))
    assert bool(jnp.allclose(out_t[0], ref_t, atol=2e-2, rtol=2e-2))

    print("KERNEL_OK")
</pallas_src>

<mosaic_0001>
module attributes {stable_mosaic.version = 11 : i64} {
  func.func @stage1_kernel(%arg0: i32, %arg1: memref<128x128xf32, #tpu.memory_space<vmem>>, %arg2: memref<128x128xbf16, #tpu.memory_space<vmem>>, %arg3: memref<128x128xbf16, #tpu.memory_space<vmem>>, %arg4: memref<1x128xf32, #tpu.memory_space<vmem>>, %arg5: memref<1x128xf32, #tpu.memory_space<vmem>>) attributes {dimension_semantics = [#tpu.dimension_semantics<arbitrary>], iteration_bounds = array<i64: 1>, scalar_prefetch = 0 : i64, scratch_operands = 0 : i64, tpu.core_type = #tpu.core_type<tc>, window_params = [{transform_indices = @transform_0, window_bounds = array<i64: 128, 128>}, {pipeline_mode = #tpu.pipeline_mode<synchronous>, transform_indices = @transform_1, window_bounds = array<i64: 128, 128>}, {transform_indices = @transform_2, window_bounds = array<i64: 128, 128>}, {pipeline_mode = #tpu.pipeline_mode<synchronous>, transform_indices = @transform_3, window_bounds = array<i64: 1, 128>}, {pipeline_mode = #tpu.pipeline_mode<synchronous>, transform_indices = @transform_4, window_bounds = array<i64: 1, 128>}]} {
    %c0_i32 = arith.constant 0 : i32
    %0 = arith.cmpi eq, %arg0, %c0_i32 : i32
    %1 = arith.extui %0 : i1 to i32
    %c0_i32_0 = arith.constant 0 : i32
    %2 = arith.cmpi ne, %1, %c0_i32_0 : i32
    scf.if %2 {
      %cst_16 = arith.constant 0.000000e+00 : f32
      %20 = vector.broadcast %cst_16 : f32 to vector<1x128xf32>
      %c0_17 = arith.constant 0 : index
      %c0_18 = arith.constant 0 : index
      %21 = vector.load %arg4[%c0_17, %c0_18] : memref<1x128xf32, #tpu.memory_space<vmem>>, vector<1x128xf32>
      tpu.vector_store %arg4[%c0_17, %c0_18], %20 {strides = array<i32>} : memref<1x128xf32, #tpu.memory_space<vmem>>, vector<1x128xf32>,
      %cst_19 = arith.constant 0.000000e+00 : f32
      %22 = vector.broadcast %cst_19 : f32 to vector<1x128xf32>
      %c0_20 = arith.constant 0 : index
      %c0_21 = arith.constant 0 : index
      %23 = vector.load %arg5[%c0_20, %c0_21] : memref<1x128xf32, #tpu.memory_space<vmem>>, vector<1x128xf32>
      tpu.vector_store %arg5[%c0_20, %c0_21], %22 {strides = array<i32>} : memref<1x128xf32, #tpu.memory_space<vmem>>, vector<1x128xf32>,
    } else {
    }
    %c0 = arith.constant 0 : index
    %c0_1 = arith.constant 0 : index
    %3 = vector.load %arg1[%c0, %c0_1] : memref<128x128xf32, #tpu.memory_space<vmem>>, vector<128x128xf32>
    %4 = arith.truncf %3 : vector<128x128xf32> to vector<128x128xbf16>
    %c0_2 = arith.constant 0 : index
    %c0_3 = arith.constant 0 : index
    %5 = vector.load %arg2[%c0_2, %c0_3] : memref<128x128xbf16, #tpu.memory_space<vmem>>, vector<128x128xbf16>
    %cst = arith.constant dense<0.000000e+00> : vector<128x128xf32>
    %6 = tpu.matmul %4, %5, %cst {dimension_numbers = #tpu.dot_dimension_numbers<[1], [0], [0], [1], [0, 0, 1, 1], [], []>} : vector<128x128xbf16>, vector<128x128xbf16>, vector<128x128xf32> -> vector<128x128xf32>
    %7 = arith.truncf %6 : vector<128x128xf32> to vector<128x128xbf16>
    %c0_4 = arith.constant 0 : index
    %c0_5 = arith.constant 0 : index
    %8 = vector.load %arg3[%c0_4, %c0_5] : memref<128x128xbf16, #tpu.memory_space<vmem>>, vector<128x128xbf16>
    tpu.vector_store %arg3[%c0_4, %c0_5], %7 {strides = array<i32>} : memref<128x128xbf16, #tpu.memory_space<vmem>>, vector<128x128xbf16>,
    %c0_6 = arith.constant 0 : index
    %c0_7 = arith.constant 0 : index
    %9 = vector.load %arg4[%c0_6, %c0_7] : memref<1x128xf32, #tpu.memory_space<vmem>>, vector<1x128xf32>
    %cst_8 = arith.constant dense<0.000000e+00> : vector<128xf32>
    %10 = vector.multi_reduction <add>, %6, %cst_8 [0] : vector<128x128xf32> to vector<128xf32>
    %11 = vector.shape_cast %10 : vector<128xf32> to vector<1x128xf32>
    %12 = arith.addf %9, %11 : vector<1x128xf32>
    %c0_9 = arith.constant 0 : index
    %c0_10 = arith.constant 0 : index
    %13 = vector.load %arg4[%c0_9, %c0_10] : memref<1x128xf32, #tpu.memory_space<vmem>>, vector<1x128xf32>
    tpu.vector_store %arg4[%c0_9, %c0_10], %12 {strides = array<i32>} : memref<1x128xf32, #tpu.memory_space<vmem>>, vector<1x128xf32>,
    %c0_11 = arith.constant 0 : index
    %c0_12 = arith.constant 0 : index
    %14 = vector.load %arg5[%c0_11, %c0_12] : memref<1x128xf32, #tpu.memory_space<vmem>>, vector<1x128xf32>
    %15 = arith.mulf %6, %6 : vector<128x128xf32>
    %cst_13 = arith.constant dense<0.000000e+00> : vector<128xf32>
    %16 = vector.multi_reduction <add>, %15, %cst_13 [0] : vector<128x128xf32> to vector<128xf32>
    %17 = vector.shape_cast %16 : vector<128xf32> to vector<1x128xf32>
    %18 = arith.addf %14, %17 : vector<1x128xf32>
    %c0_14 = arith.constant 0 : index
    %c0_15 = arith.constant 0 : index
    %19 = vector.load %arg5[%c0_14, %c0_15] : memref<1x128xf32, #tpu.memory_space<vmem>>, vector<1x128xf32>
    tpu.vector_store %arg5[%c0_14, %c0_15], %18 {strides = array<i32>} : memref<1x128xf32, #tpu.memory_space<vmem>>, vector<1x128xf32>,
    return
  }
  func.func @transform_0(%arg0: i32) -> (i32, i32) {
    %c0_i32 = arith.constant 0 : i32
    %c0_i32_0 = arith.constant 0 : i32
    return %arg0, %c0_i32 : i32, i32
  }
  func.func @transform_1(%arg0: i32) -> (i32, i32) {
    %c0_i32 = arith.constant 0 : i32
    %c0_i32_0 = arith.constant 0 : i32
    %c0_i32_1 = arith.constant 0 : i32
    return %c0_i32, %c0_i32_0 : i32, i32
  }
  func.func @transform_2(%arg0: i32) -> (i32, i32) {
    %c0_i32 = arith.constant 0 : i32
    %c0_i32_0 = arith.constant 0 : i32
    return %arg0, %c0_i32 : i32, i32
  }
  func.func @transform_3(%arg0: i32) -> (i32, i32) {
    %c0_i32 = arith.constant 0 : i32
    %c0_i32_0 = arith.constant 0 : i32
    %c0_i32_1 = arith.constant 0 : i32
    return %c0_i32, %c0_i32_0 : i32, i32
  }
  func.func @transform_4(%arg0: i32) -> (i32, i32) {
    %c0_i32 = arith.constant 0 : i32
    %c0_i32_0 = arith.constant 0 : i32
    %c0_i32_1 = arith.constant 0 : i32
    return %c0_i32, %c0_i32_0 : i32, i32
  }
}

module attributes {stable_mosaic.version = 11 : i64} {
  func.func @stage2_kernel(%arg0: i32, %arg1: memref<1x8x8x128xbf16, #tpu.memory_space<vmem>>, %arg2: memref<1x128xf32, #tpu.memory_space<vmem>>, %arg3: memref<1x128xf32, #tpu.memory_space<vmem>>, %arg4: memref<3x3x128x128xbf16, #tpu.memory_space<vmem>>, %arg5: memref<1x8x8x128xbf16, #tpu.memory_space<vmem>>, %arg6: memref<1x128xf32, #tpu.memory_space<vmem>>, %arg7: memref<1x128xf32, #tpu.memory_space<vmem>>, %arg8: memref<10x10x128xbf16, #tpu.memory_space<vmem>>) attributes {dimension_semantics = [#tpu.dimension_semantics<arbitrary>], iteration_bounds = array<i64: 2>, scalar_prefetch = 0 : i64, scratch_operands = 1 : i64, tpu.core_type = #tpu.core_type<tc>, window_params = [{transform_indices = @transform_0, window_bounds = array<i64: 1, 8, 8, 128>}, {pipeline_mode = #tpu.pipeline_mode<synchronous>, transform_indices = @transform_1, window_bounds = array<i64: 1, 128>}, {pipeline_mode = #tpu.pipeline_mode<synchronous>, transform_indices = @transform_2, window_bounds = array<i64: 1, 128>}, {pipeline_mode = #tpu.pipeline_mode<synchronous>, transform_indices = @transform_3, window_bounds = array<i64: 3, 3, 128, 128>}, {transform_indices = @transform_4, window_bounds = array<i64: 1, 8, 8, 128>}, {pipeline_mode = #tpu.pipeline_mode<synchronous>, transform_indices = @transform_5, window_bounds = array<i64: 1, 128>}, {pipeline_mode = #tpu.pipeline_mode<synchronous>, transform_indices = @transform_6, window_bounds = array<i64: 1, 128>}]} {
    %c0_i32 = arith.constant 0 : i32
    %0 = arith.cmpi eq, %arg0, %c0_i32 : i32
    %1 = arith.extui %0 : i1 to i32
    %c0_i32_0 = arith.constant 0 : i32
    %2 = arith.cmpi ne, %1, %c0_i32_0 : i32
    scf.if %2 {
      %cst_96 = arith.constant 0.000000e+00 : f32
      %87 = vector.broadcast %cst_96 : f32 to vector<1x128xf32>
      %c0_97 = arith.constant 0 : index
      %c0_98 = arith.constant 0 : index
      %88 = vector.load %arg6[%c0_97, %c0_98] : memref<1x128xf32, #tpu.memory_space<vmem>>, vector<1x128xf32>
      tpu.vector_store %arg6[%c0_97, %c0_98], %87 {strides = array<i32>} : memref<1x128xf32, #tpu.memory_space<vmem>>, vector<1x128xf32>,
      %cst_99 = arith.constant 0.000000e+00 : f32
      %89 = vector.broadcast %cst_99 : f32 to vector<1x128xf32>
      %c0_100 = arith.constant 0 : index
      %c0_101 = arith.constant 0 : index
      %90 = vector.load %arg7[%c0_100, %c0_101] : memref<1x128xf32, #tpu.memory_space<vmem>>, vector<1x128xf32>
      tpu.vector_store %arg7[%c0_100, %c0_101], %89 {strides = array<i32>} : memref<1x128xf32, #tpu.memory_space<vmem>>, vector<1x128xf32>,
      %cst_102 = arith.constant 0.000000e+00 : bf16
      %91 = vector.broadcast %cst_102 : bf16 to vector<10x10x128xbf16>
      %c0_103 = arith.constant 0 : index
      %c0_104 = arith.constant 0 : index
      %c0_105 = arith.constant 0 : index
      %92 = vector.load %arg8[%c0_103, %c0_104, %c0_105] : memref<10x10x128xbf16, #tpu.memory_space<vmem>>, vector<10x10x128xbf16>
      tpu.vector_store %arg8[%c0_103, %c0_104, %c0_105], %91 {strides = array<i32>} : memref<10x10x128xbf16, #tpu.memory_space<vmem>>, vector<10x10x128xbf16>,
    } else {
    }
    %c0 = arith.constant 0 : index
    %c0_1 = arith.constant 0 : index
    %c0_2 = arith.constant 0 : index
    %c0_3 = arith.constant 0 : index
    %3 = vector.load %arg1[%c0, %c0_1, %c0_2, %c0_3] : memref<1x8x8x128xbf16, #tpu.memory_space<vmem>>, vector<1x8x8x128xbf16>
    %4 = vector.shape_cast %3 : vector<1x8x8x128xbf16> to vector<8x8x128xbf16>
    %5 = arith.extf %4 : vector<8x8x128xbf16> to vector<8x8x128xf32>
    %c0_4 = arith.constant 0 : index
    %c0_5 = arith.constant 0 : index
    %6 = vector.load %arg2[%c0_4, %c0_5] : memref<1x128xf32, #tpu.memory_space<vmem>>, vector<1x128xf32>
    %7 = vector.shape_cast %6 : vector<1x128xf32> to vector<1x1x128xf32>
    %8 = vector.broadcast %7 : vector<1x1x128xf32> to vector<8x8x128xf32>
    %9 = arith.mulf %5, %8 : vector<8x8x128xf32>
    %c0_6 = arith.constant 0 : index
    %c0_7 = arith.constant 0 : index
    %10 = vector.load %arg3[%c0_6, %c0_7] : memref<1x128xf32, #tpu.memory_space<vmem>>, vector<1x128xf32>
    %11 = vector.shape_cast %10 : vector<1x128xf32> to vector<1x1x128xf32>
    %12 = vector.broadcast %11 : vector<1x1x128xf32> to vector<8x8x128xf32>
    %13 = arith.addf %9, %12 : vector<8x8x128xf32>
    %cst = arith.constant 0.000000e+00 : f32
    %14 = vector.broadcast %cst : f32 to vector<8x8x128xf32>
    %15 = arith.maximumf %13, %14 : vector<8x8x128xf32>
    %16 = arith.truncf %15 : vector<8x8x128xf32> to vector<8x8x128xbf16>
    %c1 = arith.constant 1 : index
    %c1_8 = arith.constant 1 : index
    %c0_9 = arith.constant 0 : index
    %17 = vector.load %arg8[%c1, %c1_8, %c0_9] : memref<10x10x128xbf16, #tpu.memory_space<vmem>>, vector<8x8x128xbf16>
    tpu.vector_store %arg8[%c1, %c1_8, %c0_9], %16 {strides = array<i32>} : memref<10x10x128xbf16, #tpu.memory_space<vmem>>, vector<8x8x128xbf16>,
    %cst_10 = arith.constant 0.000000e+00 : f32
    %18 = vector.broadcast %cst_10 : f32 to vector<64x128xf32>
    %c0_11 = arith.constant 0 : index
    %c0_12 = arith.constant 0 : index
    %c0_13 = arith.constant 0 : index
    %19 = vector.load %arg8[%c0_11, %c0_12, %c0_13] : memref<10x10x128xbf16, #tpu.memory_space<vmem>>, vector<8x8x128xbf16>
    %20 = vector.shape_cast %19 : vector<8x8x128xbf16> to vector<64x128xbf16>
    %c0_14 = arith.constant 0 : index
    %c0_15 = arith.constant 0 : index
    %c0_16 = arith.constant 0 : index
    %c0_17 = arith.constant 0 : index
    %21 = vector.load %arg4[%c0_14, %c0_15, %c0_16, %c0_17] : memref<3x3x128x128xbf16, #tpu.memory_space<vmem>>, vector<1x1x128x128xbf16>
    %22 = vector.shape_cast %21 : vector<1x1x128x128xbf16> to vector<128x128xbf16>
    %cst_18 = arith.constant dense<0.000000e+00> : vector<64x128xf32>
    %23 = tpu.matmul %20, %22, %cst_18 {dimension_numbers = #tpu.dot_dimension_numbers<[1], [0], [0], [1], [0, 0, 1, 1], [], []>} : vector<64x128xbf16>, vector<128x128xbf16>, vector<64x128xf32> -> vector<64x128xf32>
    %24 = arith.addf %18, %23 : vector<64x128xf32>
    %c0_19 = arith.constant 0 : index
    %c1_20 = arith.constant 1 : index
    %c0_21 = arith.constant 0 : index
    %25 = vector.load %arg8[%c0_19, %c1_20, %c0_21] : memref<10x10x128xbf16, #tpu.memory_space<vmem>>, vector<8x8x128xbf16>
    %26 = vector.shape_cast %25 : vector<8x8x128xbf16> to vector<64x128xbf16>
    %c0_22 = arith.constant 0 : index
    %c1_23 = arith.constant 1 : index
    %c0_24 = arith.constant 0 : index
    %c0_25 = arith.constant 0 : index
    %27 = vector.load %arg4[%c0_22, %c1_23, %c0_24, %c0_25] : memref<3x3x128x128xbf16, #tpu.memory_space<vmem>>, vector<1x1x128x128xbf16>
    %28 = vector.shape_cast %27 : vector<1x1x128x128xbf16> to vector<128x128xbf16>
    %cst_26 = arith.constant dense<0.000000e+00> : vector<64x128xf32>
    %29 = tpu.matmul %26, %28, %cst_26 {dimension_numbers = #tpu.dot_dimension_numbers<[1], [0], [0], [1], [0, 0, 1, 1], [], []>} : vector<64x128xbf16>, vector<128x128xbf16>, vector<64x128xf32> -> vector<64x128xf32>
    %30 = arith.addf %24, %29 : vector<64x128xf32>
    %c0_27 = arith.constant 0 : index
    %c2 = arith.constant 2 : index
    %c0_28 = arith.constant 0 : index
    %31 = vector.load %arg8[%c0_27, %c2, %c0_28] : memref<10x10x128xbf16, #tpu.memory_space<vmem>>, vector<8x8x128xbf16>
    %32 = vector.shape_cast %31 : vector<8x8x128xbf16> to vector<64x128xbf16>
    %c0_29 = arith.constant 0 : index
    %c2_30 = arith.constant 2 : index
    %c0_31 = arith.constant 0 : index
    %c0_32 = arith.constant 0 : index
    %33 = vector.load %arg4[%c0_29, %c2_30, %c0_31, %c0_32] : memref<3x3x128x128xbf16, #tpu.memory_space<vmem>>, vector<1x1x128x128xbf16>
    %34 = vector.shape_cast %33 : vector<1x1x128x128xbf16> to vector<128x128xbf16>
    %cst_33 = arith.constant dense<0.000000e+00> : vector<64x128xf32>
    %35 = tpu.matmul %32, %34, %cst_33 {dimension_numbers = #tpu.dot_dimension_numbers<[1], [0], [0], [1], [0, 0, 1, 1], [], []>} : vector<64x128xbf16>, vector<128x128xbf16>, vector<64x128xf32> -> vector<64x128xf32>
    %36 = arith.addf %30, %35 : vector<64x128xf32>
    %c1_34 = arith.constant 1 : index
    %c0_35 = arith.constant 0 : index
    %c0_36 = arith.constant 0 : index
    %37 = vector.load %arg8[%c1_34, %c0_35, %c0_36] : memref<10x10x128xbf16, #tpu.memory_space<vmem>>, vector<8x8x128xbf16>
    %38 = vector.shape_cast %37 : vector<8x8x128xbf16> to vector<64x128xbf16>
    %c1_37 = arith.constant 1 : index
    %c0_38 = arith.constant 0 : index
    %c0_39 = arith.constant 0 : index
    %c0_40 = arith.constant 0 : index
    %39 = vector.load %arg4[%c1_37, %c0_38, %c0_39, %c0_40] : memref<3x3x128x128xbf16, #tpu.memory_space<vmem>>, vector<1x1x128x128xbf16>
    %40 = vector.shape_cast %39 : vector<1x1x128x128xbf16> to vector<128x128xbf16>
    %cst_41 = arith.constant dense<0.000000e+00> : vector<64x128xf32>
    %41 = tpu.matmul %38, %40, %cst_41 {dimension_numbers = #tpu.dot_dimension_numbers<[1], [0], [0], [1], [0, 0, 1, 1], [], []>} : vector<64x128xbf16>, vector<128x128xbf16>, vector<64x128xf32> -> vector<64x128xf32>
    %42 = arith.addf %36, %41 : vector<64x128xf32>
    %c1_42 = arith.constant 1 : index
    %c1_43 = arith.constant 1 : index
    %c0_44 = arith.constant 0 : index
    %43 = vector.load %arg8[%c1_42, %c1_43, %c0_44] : memref<10x10x128xbf16, #tpu.memory_space<vmem>>, vector<8x8x128xbf16>
    %44 = vector.shape_cast %43 : vector<8x8x128xbf16> to vector<64x128xbf16>
    %c1_45 = arith.constant 1 : index
    %c1_46 = arith.constant 1 : index
    %c0_47 = arith.constant 0 : index
    %c0_48 = arith.constant 0 : index
    %45 = vector.load %arg4[%c1_45, %c1_46, %c0_47, %c0_48] : memref<3x3x128x128xbf16, #tpu.memory_space<vmem>>, vector<1x1x128x128xbf16>
    %46 = vector.shape_cast %45 : vector<1x1x128x128xbf16> to vector<128x128xbf16>
    %cst_49 = arith.constant dense<0.000000e+00> : vector<64x128xf32>
    %47 = tpu.matmul %44, %46, %cst_49 {dimension_numbers = #tpu.dot_dimension_numbers<[1], [0], [0], [1], [0, 0, 1, 1], [], []>} : vector<64x128xbf16>, vector<128x128xbf16>, vector<64x128xf32> -> vector<64x128xf32>
    %48 = arith.addf %42, %47 : vector<64x128xf32>
    %c1_50 = arith.constant 1 : index
    %c2_51 = arith.constant 2 : index
    %c0_52 = arith.constant 0 : index
    %49 = vector.load %arg8[%c1_50, %c2_51, %c0_52] : memref<10x10x128xbf16, #tpu.memory_space<vmem>>, vector<8x8x128xbf16>
    %50 = vector.shape_cast %49 : vector<8x8x128xbf16> to vector<64x128xbf16>
    %c1_53 = arith.constant 1 : index
    %c2_54 = arith.constant 2 : index
    %c0_55 = arith.constant 0 : index
    %c0_56 = arith.constant 0 : index
    %51 = vector.load %arg4[%c1_53, %c2_54, %c0_55, %c0_56] : memref<3x3x128x128xbf16, #tpu.memory_space<vmem>>, vector<1x1x128x128xbf16>
    %52 = vector.shape_cast %51 : vector<1x1x128x128xbf16> to vector<128x128xbf16>
    %cst_57 = arith.constant dense<0.000000e+00> : vector<64x128xf32>
    %53 = tpu.matmul %50, %52, %cst_57 {dimension_numbers = #tpu.dot_dimension_numbers<[1], [0], [0], [1], [0, 0, 1, 1], [], []>} : vector<64x128xbf16>, vector<128x128xbf16>, vector<64x128xf32> -> vector<64x128xf32>
    %54 = arith.addf %48, %53 : vector<64x128xf32>
    %c2_58 = arith.constant 2 : index
    %c0_59 = arith.constant 0 : index
    %c0_60 = arith.constant 0 : index
    %55 = vector.load %arg8[%c2_58, %c0_59, %c0_60] : memref<10x10x128xbf16, #tpu.memory_space<vmem>>, vector<8x8x128xbf16>
    %56 = vector.shape_cast %55 : vector<8x8x128xbf16> to vector<64x128xbf16>
    %c2_61 = arith.constant 2 : index
    %c0_62 = arith.constant 0 : index
    %c0_63 = arith.constant 0 : index
    %c0_64 = arith.constant 0 : index
    %57 = vector.load %arg4[%c2_61, %c0_62, %c0_63, %c0_64] : memref<3x3x128x128xbf16, #tpu.memory_space<vmem>>, vector<1x1x128x128xbf16>
    %58 = vector.shape_cast %57 : vector<1x1x128x128xbf16> to vector<128x128xbf16>
    %cst_65 = arith.constant dense<0.000000e+00> : vector<64x128xf32>
    %59 = tpu.matmul %56, %58, %cst_65 {dimension_numbers = #tpu.dot_dimension_numbers<[1], [0], [0], [1], [0, 0, 1, 1], [], []>} : vector<64x128xbf16>, vector<128x128xbf16>, vector<64x128xf32> -> vector<64x128xf32>
    %60 = arith.addf %54, %59 : vector<64x128xf32>
    %c2_66 = arith.constant 2 : index
    %c1_67 = arith.constant 1 : index
    %c0_68 = arith.constant 0 : index
    %61 = vector.load %arg8[%c2_66, %c1_67, %c0_68] : memref<10x10x128xbf16, #tpu.memory_space<vmem>>, vector<8x8x128xbf16>
    %62 = vector.shape_cast %61 : vector<8x8x128xbf16> to vector<64x128xbf16>
    %c2_69 = arith.constant 2 : index
    %c1_70 = arith.constant 1 : index
    %c0_71 = arith.constant 0 : index
    %c0_72 = arith.constant 0 : index
    %63 = vector.load %arg4[%c2_69, %c1_70, %c0_71, %c0_72] : memref<3x3x128x128xbf16, #tpu.memory_space<vmem>>, vector<1x1x128x128xbf16>
    %64 = vector.shape_cast %63 : vector<1x1x128x128xbf16> to vector<128x128xbf16>
    %cst_73 = arith.constant dense<0.000000e+00> : vector<64x128xf32>
    %65 = tpu.matmul %62, %64, %cst_73 {dimension_numbers = #tpu.dot_dimension_numbers<[1], [0], [0], [1], [0, 0, 1, 1], [], []>} : vector<64x128xbf16>, vector<128x128xbf16>, vector<64x128xf32> -> vector<64x128xf32>
    %66 = arith.addf %60, %65 : vector<64x128xf32>
    %c2_74 = arith.constant 2 : index
    %c2_75 = arith.constant 2 : index
    %c0_76 = arith.constant 0 : index
    %67 = vector.load %arg8[%c2_74, %c2_75, %c0_76] : memref<10x10x128xbf16, #tpu.memory_space<vmem>>, vector<8x8x128xbf16>
    %68 = vector.shape_cast %67 : vector<8x8x128xbf16> to vector<64x128xbf16>
    %c2_77 = arith.constant 2 : index
    %c2_78 = arith.constant 2 : index
    %c0_79 = arith.constant 0 : index
    %c0_80 = arith.constant 0 : index
    %69 = vector.load %arg4[%c2_77, %c2_78, %c0_79, %c0_80] : memref<3x3x128x128xbf16, #tpu.memory_space<vmem>>, vector<1x1x128x128xbf16>
    %70 = vector.shape_cast %69 : vector<1x1x128x128xbf16> to vector<128x128xbf16>
    %cst_81 = arith.constant dense<0.000000e+00> : vector<64x128xf32>
    %71 = tpu.matmul %68, %70, %cst_81 {dimension_numbers = #tpu.dot_dimension_numbers<[1], [0], [0], [1], [0, 0, 1, 1], [], []>} : vector<64x128xbf16>, vector<128x128xbf16>, vector<64x128xf32> -> vector<64x128xf32>
    %72 = arith.addf %66, %71 : vector<64x128xf32>
    %73 = vector.shape_cast %72 : vector<64x128xf32> to vector<1x8x8x128xf32>
    %74 = arith.truncf %73 : vector<1x8x8x128xf32> to vector<1x8x8x128xbf16>
    %c0_82 = arith.constant 0 : index
    %c0_83 = arith.constant 0 : index
    %c0_84 = arith.constant 0 : index
    %c0_85 = arith.constant 0 : index
    %75 = vector.load %arg5[%c0_82, %c0_83, %c0_84, %c0_85] : memref<1x8x8x128xbf16, #tpu.memory_space<vmem>>, vector<1x8x8x128xbf16>
    tpu.vector_store %arg5[%c0_82, %c0_83, %c0_84, %c0_85], %74 {strides = array<i32>} : memref<1x8x8x128xbf16, #tpu.memory_space<vmem>>, vector<1x8x8x128xbf16>,
    %c0_86 = arith.constant 0 : index
    %c0_87 = arith.constant 0 : index
    %76 = vector.load %arg6[%c0_86, %c0_87] : memref<1x128xf32, #tpu.memory_space<vmem>>, vector<1x128xf32>
    %cst_88 = arith.constant dense<0.000000e+00> : vector<128xf32>
    %77 = vector.multi_reduction <add>, %72, %cst_88 [0] : vector<64x128xf32> to vector<128xf32>
    %78 = vector.shape_cast %77 : vector<128xf32> to vector<1x128xf32>
    %79 = arith.addf %76, %78 : vector<1x128xf32>
    %c0_89 = arith.constant 0 : index
    %c0_90 = arith.constant 0 : index
    %80 = vector.load %arg6[%c0_89, %c0_90] : memref<1x128xf32, #tpu.memory_space<vmem>>, vector<1x128xf32>
    tpu.vector_store %arg6[%c0_89, %c0_90], %79 {strides = array<i32>} : memref<1x128xf32, #tpu.memory_space<vmem>>, vector<1x128xf32>,
    %c0_91 = arith.constant 0 : index
    %c0_92 = arith.constant 0 : index
    %81 = vector.load %arg7[%c0_91, %c0_92] : memref<1x128xf32, #tpu.memory_space<vmem>>, vector<1x128xf32>
    %82 = arith.mulf %72, %72 : vector<64x128xf32>
    %cst_93 = arith.constant dense<0.000000e+00> : vector<128xf32>
    %83 = vector.multi_reduction <add>, %82, %cst_93 [0] : vector<64x128xf32> to vector<128xf32>
    %84 = vector.shape_cast %83 : vector<128xf32> to vector<1x128xf32>
    %85 = arith.addf %81, %84 : vector<1x128xf32>
    %c0_94 = arith.constant 0 : index
    %c0_95 = arith.constant 0 : index
    %86 = vector.load %arg7[%c0_94, %c0_95] : memref<1x128xf32, #tpu.memory_space<vmem>>, vector<1x128xf32>
    tpu.vector_store %arg7[%c0_94, %c0_95], %85 {strides = array<i32>} : memref<1x128xf32, #tpu.memory_space<vmem>>, vector<1x128xf32>,
    return
  }
  func.func @transform_0(%arg0: i32) -> (i32, i32, i32, i32) {
    %c0_i32 = arith.constant 0 : i32
    %c0_i32_0 = arith.constant 0 : i32
    %c0_i32_1 = arith.constant 0 : i32
    %c0_i32_2 = arith.constant 0 : i32
    return %arg0, %c0_i32, %c0_i32_0, %c0_i32_1 : i32, i32, i32, i32
  }
  func.func @transform_1(%arg0: i32) -> (i32, i32) {
    %c0_i32 = arith.constant 0 : i32
    %c0_i32_0 = arith.constant 0 : i32
    %c0_i32_1 = arith.constant 0 : i32
    return %c0_i32, %c0_i32_0 : i32, i32
  }
  func.func @transform_2(%arg0: i32) -> (i32, i32) {
    %c0_i32 = arith.constant 0 : i32
    %c0_i32_0 = arith.constant 0 : i32
    %c0_i32_1 = arith.constant 0 : i32
    return %c0_i32, %c0_i32_0 : i32, i32
  }
  func.func @transform_3(%arg0: i32) -> (i32, i32, i32, i32) {
    %c0_i32 = arith.constant 0 : i32
    %c0_i32_0 = arith.constant 0 : i32
    %c0_i32_1 = arith.constant 0 : i32
    %c0_i32_2 = arith.constant 0 : i32
    %c0_i32_3 = arith.constant 0 : i32
    return %c0_i32, %c0_i32_0, %c0_i32_1, %c0_i32_2 : i32, i32, i32, i32
  }
  func.func @transform_4(%arg0: i32) -> (i32, i32, i32, i32) {
    %c0_i32 = arith.constant 0 : i32
    %c0_i32_0 = arith.constant 0 : i32
    %c0_i32_1 = arith.constant 0 : i32
    %c0_i32_2 = arith.constant 0 : i32
    return %arg0, %c0_i32, %c0_i32_0, %c0_i32_1 : i32, i32, i32, i32
  }
  func.func @transform_5(%arg0: i32) -> (i32, i32) {
    %c0_i32 = arith.constant 0 : i32
    %c0_i32_0 = arith.constant 0 : i32
    %c0_i32_1 = arith.constant 0 : i32
    return %c0_i32, %c0_i32_0 : i32, i32
  }
  func.func @transform_6(%arg0: i32) -> (i32, i32) {
    %c0_i32 = arith.constant 0 : i32
    %c0_i32_0 = arith.constant 0 : i32
    %c0_i32_1 = arith.constant 0 : i32
    return %c0_i32, %c0_i32_0 : i32, i32
  }
}

module attributes {stable_mosaic.version = 11 : i64} {
  func.func @stage3_kernel(%arg0: i32, %arg1: memref<128x128xbf16, #tpu.memory_space<vmem>>, %arg2: memref<1x128xf32, #tpu.memory_space<vmem>>, %arg3: memref<1x128xf32, #tpu.memory_space<vmem>>, %arg4: memref<128x128xbf16, #tpu.memory_space<vmem>>, %arg5: memref<128x128xbf16, #tpu.memory_space<vmem>>, %arg6: memref<1x128xf32, #tpu.memory_space<vmem>>, %arg7: memref<1x128xf32, #tpu.memory_space<vmem>>) attributes {dimension_semantics = [#tpu.dimension_semantics<arbitrary>], iteration_bounds = array<i64: 1>, scalar_prefetch = 0 : i64, scratch_operands = 0 : i64, tpu.core_type = #tpu.core_type<tc>, window_params = [{transform_indices = @transform_0, window_bounds = array<i64: 128, 128>}, {pipeline_mode = #tpu.pipeline_mode<synchronous>, transform_indices = @transform_1, window_bounds = array<i64: 1, 128>}, {pipeline_mode = #tpu.pipeline_mode<synchronous>, transform_indices = @transform_2, window_bounds = array<i64: 1, 128>}, {pipeline_mode = #tpu.pipeline_mode<synchronous>, transform_indices = @transform_3, window_bounds = array<i64: 128, 128>}, {transform_indices = @transform_4, window_bounds = array<i64: 128, 128>}, {pipeline_mode = #tpu.pipeline_mode<synchronous>, transform_indices = @transform_5, window_bounds = array<i64: 1, 128>}, {pipeline_mode = #tpu.pipeline_mode<synchronous>, transform_indices = @transform_6, window_bounds = array<i64: 1, 128>}]} {
    %c0_i32 = arith.constant 0 : i32
    %0 = arith.cmpi eq, %arg0, %c0_i32 : i32
    %1 = arith.extui %0 : i1 to i32
    %c0_i32_0 = arith.constant 0 : i32
    %2 = arith.cmpi ne, %1, %c0_i32_0 : i32
    scf.if %2 {
      %cst_21 = arith.constant 0.000000e+00 : f32
      %29 = vector.broadcast %cst_21 : f32 to vector<1x128xf32>
      %c0_22 = arith.constant 0 : index
      %c0_23 = arith.constant 0 : index
      %30 = vector.load %arg6[%c0_22, %c0_23] : memref<1x128xf32, #tpu.memory_space<vmem>>, vector<1x128xf32>
      tpu.vector_store %arg6[%c0_22, %c0_23], %29 {strides = array<i32>} : memref<1x128xf32, #tpu.memory_space<vmem>>, vector<1x128xf32>,
      %cst_24 = arith.constant 0.000000e+00 : f32
      %31 = vector.broadcast %cst_24 : f32 to vector<1x128xf32>
      %c0_25 = arith.constant 0 : index
      %c0_26 = arith.constant 0 : index
      %32 = vector.load %arg7[%c0_25, %c0_26] : memref<1x128xf32, #tpu.memory_space<vmem>>, vector<1x128xf32>
      tpu.vector_store %arg7[%c0_25, %c0_26], %31 {strides = array<i32>} : memref<1x128xf32, #tpu.memory_space<vmem>>, vector<1x128xf32>,
    } else {
    }
    %c0 = arith.constant 0 : index
    %c0_1 = arith.constant 0 : index
    %3 = vector.load %arg1[%c0, %c0_1] : memref<128x128xbf16, #tpu.memory_space<vmem>>, vector<128x128xbf16>
    %4 = arith.extf %3 : vector<128x128xbf16> to vector<128x128xf32>
    %c0_2 = arith.constant 0 : index
    %c0_3 = arith.constant 0 : index
    %5 = vector.load %arg2[%c0_2, %c0_3] : memref<1x128xf32, #tpu.memory_space<vmem>>, vector<1x128xf32>
    %6 = vector.broadcast %5 : vector<1x128xf32> to vector<128x128xf32>
    %7 = arith.mulf %4, %6 : vector<128x128xf32>
    %c0_4 = arith.constant 0 : index
    %c0_5 = arith.constant 0 : index
    %8 = vector.load %arg3[%c0_4, %c0_5] : memref<1x128xf32, #tpu.memory_space<vmem>>, vector<1x128xf32>
    %9 = vector.broadcast %8 : vector<1x128xf32> to vector<128x128xf32>
    %10 = arith.addf %7, %9 : vector<128x128xf32>
    %cst = arith.constant 0.000000e+00 : f32
    %11 = vector.broadcast %cst : f32 to vector<128x128xf32>
    %12 = arith.maximumf %10, %11 : vector<128x128xf32>
    %13 = arith.truncf %12 : vector<128x128xf32> to vector<128x128xbf16>
    %c0_6 = arith.constant 0 : index
    %c0_7 = arith.constant 0 : index
    %14 = vector.load %arg4[%c0_6, %c0_7] : memref<128x128xbf16, #tpu.memory_space<vmem>>, vector<128x128xbf16>
    %cst_8 = arith.constant dense<0.000000e+00> : vector<128x128xf32>
    %15 = tpu.matmul %13, %14, %cst_8 {dimension_numbers = #tpu.dot_dimension_numbers<[1], [0], [0], [1], [0, 0, 1, 1], [], []>} : vector<128x128xbf16>, vector<128x128xbf16>, vector<128x128xf32> -> vector<128x128xf32>
    %16 = arith.truncf %15 : vector<128x128xf32> to vector<128x128xbf16>
    %c0_9 = arith.constant 0 : index
    %c0_10 = arith.constant 0 : index
    %17 = vector.load %arg5[%c0_9, %c0_10] : memref<128x128xbf16, #tpu.memory_space<vmem>>, vector<128x128xbf16>
    tpu.vector_store %arg5[%c0_9, %c0_10], %16 {strides = array<i32>} : memref<128x128xbf16, #tpu.memory_space<vmem>>, vector<128x128xbf16>,
    %c0_11 = arith.constant 0 : index
    %c0_12 = arith.constant 0 : index
    %18 = vector.load %arg6[%c0_11, %c0_12] : memref<1x128xf32, #tpu.memory_space<vmem>>, vector<1x128xf32>
    %cst_13 = arith.constant dense<0.000000e+00> : vector<128xf32>
    %19 = vector.multi_reduction <add>, %15, %cst_13 [0] : vector<128x128xf32> to vector<128xf32>
    %20 = vector.shape_cast %19 : vector<128xf32> to vector<1x128xf32>
    %21 = arith.addf %18, %20 : vector<1x128xf32>
    %c0_14 = arith.constant 0 : index
    %c0_15 = arith.constant 0 : index
    %22 = vector.load %arg6[%c0_14, %c0_15] : memref<1x128xf32, #tpu.memory_space<vmem>>, vector<1x128xf32>
    tpu.vector_store %arg6[%c0_14, %c0_15], %21 {strides = array<i32>} : memref<1x128xf32, #tpu.memory_space<vmem>>, vector<1x128xf32>,
    %c0_16 = arith.constant 0 : index
    %c0_17 = arith.constant 0 : index
    %23 = vector.load %arg7[%c0_16, %c0_17] : memref<1x128xf32, #tpu.memory_space<vmem>>, vector<1x128xf32>
    %24 = arith.mulf %15, %15 : vector<128x128xf32>
    %cst_18 = arith.constant dense<0.000000e+00> : vector<128xf32>
    %25 = vector.multi_reduction <add>, %24, %cst_18 [0] : vector<128x128xf32> to vector<128xf32>
    %26 = vector.shape_cast %25 : vector<128xf32> to vector<1x128xf32>
    %27 = arith.addf %23, %26 : vector<1x128xf32>
    %c0_19 = arith.constant 0 : index
    %c0_20 = arith.constant 0 : index
    %28 = vector.load %arg7[%c0_19, %c0_20] : memref<1x128xf32, #tpu.memory_space<vmem>>, vector<1x128xf32>
    tpu.vector_store %arg7[%c0_19, %c0_20], %27 {strides = array<i32>} : memref<1x128xf32, #tpu.memory_space<vmem>>, vector<1x128xf32>,
    return
  }
  func.func @transform_0(%arg0: i32) -> (i32, i32) {
    %c0_i32 = arith.constant 0 : i32
    %c0_i32_0 = arith.constant 0 : i32
    return %arg0, %c0_i32 : i32, i32
  }
  func.func @transform_1(%arg0: i32) -> (i32, i32) {
    %c0_i32 = arith.constant 0 : i32
    %c0_i32_0 = arith.constant 0 : i32
    %c0_i32_1 = arith.constant 0 : i32
    return %c0_i32, %c0_i32_0 : i32, i32
  }
  func.func @transform_2(%arg0: i32) -> (i32, i32) {
    %c0_i32 = arith.constant 0 : i32
    %c0_i32_0 = arith.constant 0 : i32
    %c0_i32_1 = arith.constant 0 : i32
    return %c0_i32, %c0_i32_0 : i32, i32
  }
  func.func @transform_3(%arg0: i32) -> (i32, i32) {
    %c0_i32 = arith.constant 0 : i32
    %c0_i32_0 = arith.constant 0 : i32
    %c0_i32_1 = arith.constant 0 : i32
    return %c0_i32, %c0_i32_0 : i32, i32
  }
  func.func @transform_4(%arg0: i32) -> (i32, i32) {
    %c0_i32 = arith.constant 0 : i32
    %c0_i32_0 = arith.constant 0 : i32
    return %arg0, %c0_i32 : i32, i32
  }
  func.func @transform_5(%arg0: i32) -> (i32, i32) {
    %c0_i32 = arith.constant 0 : i32
    %c0_i32_0 = arith.constant 0 : i32
    %c0_i32_1 = arith.constant 0 : i32
    return %c0_i32, %c0_i32_0 : i32, i32
  }
  func.func @transform_6(%arg0: i32) -> (i32, i32) {
    %c0_i32 = arith.constant 0 : i32
    %c0_i32_0 = arith.constant 0 : i32
    %c0_i32_1 = arith.constant 0 : i32
    return %c0_i32, %c0_i32_0 : i32, i32
  }
}

module attributes {stable_mosaic.version = 11 : i64} {
  func.func @stage4_kernel(%arg0: i32, %arg1: memref<128x128xbf16, #tpu.memory_space<vmem>>, %arg2: memref<1x128xf32, #tpu.memory_space<vmem>>, %arg3: memref<1x128xf32, #tpu.memory_space<vmem>>, %arg4: memref<128x128xf32, #tpu.memory_space<vmem>>, %arg5: memref<128x128xf32, #tpu.memory_space<vmem>>) attributes {dimension_semantics = [#tpu.dimension_semantics<parallel>], iteration_bounds = array<i64: 1>, scalar_prefetch = 0 : i64, scratch_operands = 0 : i64, tpu.core_type = #tpu.core_type<tc>, window_params = [{transform_indices = @transform_0, window_bounds = array<i64: 128, 128>}, {pipeline_mode = #tpu.pipeline_mode<synchronous>, transform_indices = @transform_1, window_bounds = array<i64: 1, 128>}, {pipeline_mode = #tpu.pipeline_mode<synchronous>, transform_indices = @transform_2, window_bounds = array<i64: 1, 128>}, {transform_indices = @transform_3, window_bounds = array<i64: 128, 128>}, {transform_indices = @transform_4, window_bounds = array<i64: 128, 128>}]} {
    %c0 = arith.constant 0 : index
    %c0_0 = arith.constant 0 : index
    %0 = vector.load %arg1[%c0, %c0_0] : memref<128x128xbf16, #tpu.memory_space<vmem>>, vector<128x128xbf16>
    %1 = arith.extf %0 : vector<128x128xbf16> to vector<128x128xf32>
    %c0_1 = arith.constant 0 : index
    %c0_2 = arith.constant 0 : index
    %2 = vector.load %arg2[%c0_1, %c0_2] : memref<1x128xf32, #tpu.memory_space<vmem>>, vector<1x128xf32>
    %3 = vector.broadcast %2 : vector<1x128xf32> to vector<128x128xf32>
    %4 = arith.mulf %1, %3 : vector<128x128xf32>
    %c0_3 = arith.constant 0 : index
    %c0_4 = arith.constant 0 : index
    %5 = vector.load %arg3[%c0_3, %c0_4] : memref<1x128xf32, #tpu.memory_space<vmem>>, vector<1x128xf32>
    %6 = vector.broadcast %5 : vector<1x128xf32> to vector<128x128xf32>
    %7 = arith.addf %4, %6 : vector<128x128xf32>
    %c0_5 = arith.constant 0 : index
    %c0_6 = arith.constant 0 : index
    %8 = vector.load %arg4[%c0_5, %c0_6] : memref<128x128xf32, #tpu.memory_space<vmem>>, vector<128x128xf32>
    %9 = arith.addf %7, %8 : vector<128x128xf32>
    %cst = arith.constant 0.000000e+00 : f32
    %10 = vector.broadcast %cst : f32 to vector<128x128xf32>
    %11 = arith.maximumf %9, %10 : vector<128x128xf32>
    %c0_7 = arith.constant 0 : index
    %c0_8 = arith.constant 0 : index
    %12 = vector.load %arg5[%c0_7, %c0_8] : memref<128x128xf32, #tpu.memory_space<vmem>>, vector<128x128xf32>
    tpu.vector_store %arg5[%c0_7, %c0_8], %11 {strides = array<i32>} : memref<128x128xf32, #tpu.memory_space<vmem>>, vector<128x128xf32>,
    return
  }
  func.func @transform_0(%arg0: i32) -> (i32, i32) {
    %c0_i32 = arith.constant 0 : i32
    %c0_i32_0 = arith.constant 0 : i32
    return %arg0, %c0_i32 : i32, i32
  }
  func.func @transform_1(%arg0: i32) -> (i32, i32) {
    %c0_i32 = arith.constant 0 : i32
    %c0_i32_0 = arith.constant 0 : i32
    %c0_i32_1 = arith.constant 0 : i32
    return %c0_i32, %c0_i32_0 : i32, i32
  }
  func.func @transform_2(%arg0: i32) -> (i32, i32) {
    %c0_i32 = arith.constant 0 : i32
    %c0_i32_0 = arith.constant 0 : i32
    %c0_i32_1 = arith.constant 0 : i32
    return %c0_i32, %c0_i32_0 : i32, i32
  }
  func.func @transform_3(%arg0: i32) -> (i32, i32) {
    %c0_i32 = arith.constant 0 : i32
    %c0_i32_0 = arith.constant 0 : i32
    return %arg0, %c0_i32 : i32, i32
  }
  func.func @transform_4(%arg0: i32) -> (i32, i32) {
    %c0_i32 = arith.constant 0 : i32
    %c0_i32_0 = arith.constant 0 : i32
    return %arg0, %c0_i32 : i32, i32
  }
}

</mosaic_0001>

<bundles_post_ra>
// kernel: _bottleneck_impl.7
= control target key start
LH: loop header
LB: loop body
LE: loop exit
PB: predicated region body
PF: predicated region fallthrough
CT: control target
= control target key end

     0   :  { %s387_s0 = inlined_call_operand.vmem [shape: bf16[128,128], index: 0, kind: input, shape index: {}]   ;;  %s388_s1 = inlined_call_operand.vmem [shape: f32[1,128], index: 1, kind: input, shape index: {}]   ;;  %s389_s2 = inlined_call_operand.vmem [shape: f32[1,128], index: 2, kind: input, shape index: {}]   ;;  %s390_s3 = inlined_call_operand.vmem [shape: f32[128,128], index: 3, kind: input, shape index: {}]   ;;  %s391_s4 = inlined_call_operand.hbm [shape: f32[128,128], index: 4, kind: output, shape index: {}]  }
   0x1   :  { %v173_v0 = vld [vmem:[%s387_s0] sm:$0xff]   ;;  %v204_v5 = vld [vmem:[%s387_s0 + $0x8] sm:$0xff]   ;;  %v205_v10 = vld [vmem:[%s387_s0 + $0x10] sm:$0xff]  }
   0x2   :  { %v276_v1 = vld [vmem:[%s388_s1] ss:$0 sm:$0xff]  ;;  %v174_v2 = vunpack.c.l.bf16 %v173_v0  ;;  %v175_v4 = vunpack.c.h.bf16 %v173_v0  ;;  %v178_v8 = vunpack.c.l.bf16 %v204_v5  ;;  %v179_v9 = vunpack.c.h.bf16 %v204_v5  ;;  %v91_v12 = vld [vmem:[%s390_s3 + $0x8] sm:$0xff]  ;;  %v206_v15 = vld [vmem:[%s387_s0 + $0x18] sm:$0xff]  }
   0x3   :  { %v281_v3 = vld [vmem:[%s389_s2] ss:$0 sm:$0xff]  ;;  %v182_v13 = vunpack.c.l.bf16 %v205_v10  ;;  %v183_v14 = vunpack.c.h.bf16 %v205_v10  ;;  %v92_v20 = vld [vmem:[%s390_s3 + $0x10] sm:$0xff]  ;;  %v93_v21 = vld [vmem:[%s390_s3 + $0x18] sm:$0xff]  ;;  %v186_v24 = vunpack.c.l.bf16 %v206_v15  ;;  %v187_v25 = vunpack.c.h.bf16 %v206_v15 }
   0x4   :  { %v54_v6 = vmul.f32 %v276_v1, %v174_v2  ;;  %v55_v7 = vmul.f32 %v276_v1, %v175_v4  ;;  %v90_v11 = vld [vmem:[%s390_s3] sm:$0xff]  ;;  %v56_v18 = vmul.f32 %v276_v1, %v178_v8  ;;  %v57_v19 = vmul.f32 %v276_v1, %v179_v9  ;;  %v95_v31 = vld [vmem:[%s390_s3 + $0x28] sm:$0xff]  ;;  %v96_v41 = vld [vmem:[%s390_s3 + $0x30] sm:$0xff] }
   0x5   :  { %v58_v22 = vmul.f32 %v276_v1, %v182_v13  ;;  %v59_v23 = vmul.f32 %v276_v1, %v183_v14  ;;  %v94_v30 = vld [vmem:[%s390_s3 + $0x20] sm:$0xff]  ;;  %v60_v34 = vmul.f32 %v276_v1, %v186_v24  ;;  %v61_v35 = vmul.f32 %v276_v1, %v187_v25  ;;  %v97_v42 = vld [vmem:[%s390_s3 + $0x38] sm:$0xff] }
   0x6   :  { %v74_v16 = vadd.f32 %v281_v3, %v54_v6  ;;  %v75_v17 = vadd.f32 %v281_v3, %v55_v7  ;;  %v76_v28 = vadd.f32 %v281_v3, %v56_v18  ;;  %v77_v29 = vadd.f32 %v281_v3, %v57_v19  ;;  %v207_v36 = vld [vmem:[%s387_s0 + $0x20] sm:$0xff]  }
   0x7   :  { %v78_v32 = vadd.f32 %v281_v3, %v58_v22  ;;  %v79_v33 = vadd.f32 %v281_v3, %v59_v23 }
   0x8   :  { %v106_v26 = vadd.f32 %v90_v11, %v74_v16  ;;  %v107_v27 = vadd.f32 %v91_v12, %v75_v17  ;;  %v108_v39 = vadd.f32 %v92_v20, %v76_v28  ;;  %v109_v40 = vadd.f32 %v93_v21, %v77_v29 }
   0xa   :  { %v122_v37 = vmax.f32 %v106_v26, 0.0  ;;  %v123_v38 = vmax.f32 %v107_v27, 0.0 }
   0xb   :  { %9 = vsyncpa [#allocation3], 0  ;;  %v110_v43 = vadd.f32 %v94_v30, %v78_v32  ;;  %v111_v44 = vadd.f32 %v95_v31, %v79_v33  ;;  %v80_v45 = vadd.f32 %v281_v3, %v60_v34  ;;  %v81_v46 = vadd.f32 %v281_v3, %v61_v35  ;;  %v208_v47 = vld [vmem:[%s387_s0 + $0x28] sm:$0xff]   ;;  %v209_v52 = vld [vmem:[%s387_s0 + $0x30] sm:$0xff]   ;;  %s242_s10 = smov [#allocation2]   ;;  %s243_s14 = smov 128  }
   0xc   :  { %138 = vst [vmem:[#allocation2] sm:$0xff] %v122_v37  ;;  %v124_v48 = vmax.f32 %v108_v39, 0.0  ;;  %v125_v49 = vmax.f32 %v109_v40, 0.0  ;;  %v190_v50 = vunpack.c.l.bf16 %v207_v36  ;;  %v191_v51 = vunpack.c.h.bf16 %v207_v36  ;;  %v210_v61 = vld [vmem:[%s387_s0 + $0x38] sm:$0xff]   ;;  %v98_v0 = vld [vmem:[%s390_s3 + $0x40] sm:$0xff]  ;;  %v99_v2 = vld [vmem:[%s390_s3 + $0x48] sm:$0xff] }
   0xd   :  { %139 = vst [vmem:[#allocation2 + $0x8] sm:$0xff] %v123_v38  ;;  %v126_v53 = vmax.f32 %v110_v43, 0.0  ;;  %v127_v54 = vmax.f32 %v111_v44, 0.0  ;;  %v112_v55 = vadd.f32 %v96_v41, %v80_v45  ;;  %v113_v56 = vadd.f32 %v97_v42, %v81_v46  ;;  %v100_v10 = vld [vmem:[%s390_s3 + $0x50] sm:$0xff]  ;;  %v101_v11 = vld [vmem:[%s390_s3 + $0x58] sm:$0xff]  ;;  %v102_v20 = vld [vmem:[%s390_s3 + $0x60] sm:$0xff] }
   0xe   :  { %140 = vst [vmem:[#allocation2 + $0x10] sm:$0xff] %v124_v48  ;;  %v62_v57 = vmul.f32 %v276_v1, %v190_v50  ;;  %v63_v58 = vmul.f32 %v276_v1, %v191_v51  ;;  %v194_v59 = vunpack.c.l.bf16 %v208_v47  ;;  %v195_v60 = vunpack.c.h.bf16 %v208_v47  ;;  %v103_v21 = vld [vmem:[%s390_s3 + $0x68] sm:$0xff]  ;;  %v104_v30 = vld [vmem:[%s390_s3 + $0x70] sm:$0xff]  ;;  %v105_v31 = vld [vmem:[%s390_s3 + $0x78] sm:$0xff]  ;;  %s158_s11 = sshll.u32 %s242_s10, 4  ;;  %s160_s3 = sshll.u32 %s391_s4, 4  ;;  %s159_s11 = int_to_ptr.vmem [resolvable:$true] %s158_s11  ;;  %s161_s3 = int_to_ptr.hbm [resolvable:$true] %s160_s3 }
   0xf   :  { %141 = vst [vmem:[#allocation2 + $0x18] sm:$0xff] %v125_v49  ;;  %v128_v62 = vmax.f32 %v112_v55, 0.0  ;;  %v129_v63 = vmax.f32 %v113_v56, 0.0  ;;  %v198_v4 = vunpack.c.l.bf16 %v209_v52  ;;  %v199_v5 = vunpack.c.h.bf16 %v209_v52  ;;  %s244_s15 = smov 8  }
  0x10   :  { %142 = vst [vmem:[#allocation2 + $0x20] sm:$0xff] %v126_v53  ;;  %v82_v6 = vadd.f32 %v281_v3, %v62_v57  ;;  %v83_v7 = vadd.f32 %v281_v3, %v63_v58  ;;  %v64_v8 = vmul.f32 %v276_v1, %v194_v59  ;;  %v65_v9 = vmul.f32 %v276_v1, %v195_v60 }
  0x11   :  { %143 = vst [vmem:[#allocation2 + $0x28] sm:$0xff] %v127_v54  ;;  %v66_v12 = vmul.f32 %v276_v1, %v198_v4  ;;  %v67_v13 = vmul.f32 %v276_v1, %v199_v5  ;;  %v202_v14 = vunpack.c.l.bf16 %v210_v61  ;;  %v203_v15 = vunpack.c.h.bf16 %v210_v61 }
  0x12   :  { %144 = vst [vmem:[#allocation2 + $0x30] sm:$0xff] %v128_v62  ;;  %v114_v16 = vadd.f32 %v98_v0, %v82_v6  ;;  %v115_v17 = vadd.f32 %v99_v2, %v83_v7  ;;  %v84_v18 = vadd.f32 %v281_v3, %v64_v8  ;;  %v85_v19 = vadd.f32 %v281_v3, %v65_v9 }
  0x13   :  { %145 = vst [vmem:[#allocation2 + $0x38] sm:$0xff] %v129_v63  ;;  %v86_v22 = vadd.f32 %v281_v3, %v66_v12  ;;  %v87_v23 = vadd.f32 %v281_v3, %v67_v13  ;;  %v68_v24 = vmul.f32 %v276_v1, %v202_v14  ;;  %v69_v25 = vmul.f32 %v276_v1, %v203_v15 }
  0x14   :  { %v130_v26 = vmax.f32 %v114_v16, 0.0  ;;  %v131_v27 = vmax.f32 %v115_v17, 0.0  ;;  %v116_v28 = vadd.f32 %v100_v10, %v84_v18  ;;  %v117_v29 = vadd.f32 %v101_v11, %v85_v19 }
  0x15   :  { %v118_v32 = vadd.f32 %v102_v20, %v86_v22  ;;  %v119_v33 = vadd.f32 %v103_v21, %v87_v23  ;;  %v88_v34 = vadd.f32 %v281_v3, %v68_v24  ;;  %v89_v35 = vadd.f32 %v281_v3, %v69_v25 }
  0x16   :  { %146 = vst [vmem:[#allocation2 + $0x40] sm:$0xff] %v130_v26  ;;  %v132_v1 = vmax.f32 %v116_v28, 0.0  ;;  %v133_v36 = vmax.f32 %v117_v29, 0.0 }
  0x17   :  { %147 = vst [vmem:[#allocation2 + $0x48] sm:$0xff] %v131_v27  ;;  %v134_v37 = vmax.f32 %v118_v32, 0.0  ;;  %v135_v38 = vmax.f32 %v119_v33, 0.0  ;;  %v120_v39 = vadd.f32 %v104_v30, %v88_v34  ;;  %v121_v40 = vadd.f32 %v105_v31, %v89_v35 }
  0x18   :  { %148 = vst [vmem:[#allocation2 + $0x50] sm:$0xff] %v132_v1 }
  0x19   :  { %149 = vst [vmem:[#allocation2 + $0x58] sm:$0xff] %v133_v36  ;;  %v136_v41 = vmax.f32 %v120_v39, 0.0  ;;  %v137_v42 = vmax.f32 %v121_v40, 0.0 }
  0x1a   :  { %150 = vst [vmem:[#allocation2 + $0x60] sm:$0xff] %v134_v37 }
  0x1b   :  { %151 = vst [vmem:[#allocation2 + $0x68] sm:$0xff] %v135_v38 }
  0x1c   :  { %152 = vst [vmem:[#allocation2 + $0x70] sm:$0xff] %v136_v41 }
  0x1d   :  { %153 = vst [vmem:[#allocation2 + $0x78] sm:$0xff] %v137_v42 }
  0x1e   :  { %166 = dma.vmem_to_hbm [thread:$0]  %s159_s11, 2048, %s161_s3, [#allocation3], %s243_s14, %s243_s14, %s244_s15  }
  0x1f   :  { %240 = dma.done.wait [#allocation3], 2048  }
  0x20   :  { %241 = vsyncadd [#allocation3], 4294965248 }
  0x21   :  { %171 = vsyncpa [#allocation3], 1 }

// kernel: _bottleneck_impl.4
= control target key start
LH: loop header
LB: loop body
LE: loop exit
PB: predicated region body
PF: predicated region fallthrough
CT: control target
= control target key end

     0   :  { %v377_v49 = vmov 0.0   ;;  %s529_s1 = inlined_call_operand.vmem [shape: bf16[128,128], index: 1, kind: input, shape index: {}]   ;;  %s530_s0 = inlined_call_operand.vmem [shape: f32[128,128], index: 0, kind: input, shape index: {}]   ;;  %s531_s2 = inlined_call_operand.vmem [shape: bf16[128,128], index: 2, kind: output, shape index: {0}]   ;;  %s532_s3 = inlined_call_operand.vmem [shape: f32[1,128], index: 3, kind: output, shape index: {1}]   ;;  %s533_s4 = inlined_call_operand.vmem [shape: f32[1,128], index: 4, kind: output, shape index: {2}]  }
   0x1   :  { %v304_v0 = vld [vmem:[%s529_s1 + $0x38] sm:$0xff]  ;;  %v303_v1 = vld [vmem:[%s529_s1 + $0x30] sm:$0xff]  ;;  %v302_v2 = vld [vmem:[%s529_s1 + $0x28] sm:$0xff]  ;;  %18 = vst [vmem:[%s532_s3] sm:$0x1] %v377_v49 }
   0x2   :  { %108 = vmatpush.bf16.msra.mxu0 %v304_v0  ;;  %352 = vmatpush.bf16.msra.mxu1 %v304_v0  ;;  %v301_v3 = vld [vmem:[%s529_s1 + $0x20] sm:$0xff]  ;;  %v300_v4 = vld [vmem:[%s529_s1 + $0x18] sm:$0xff]  ;;  %v299_v5 = vld [vmem:[%s529_s1 + $0x10] sm:$0xff]  ;;  %19 = vst [vmem:[%s533_s4] sm:$0x1] %v377_v49 }
   0x3   :  { %353 = vmatpush.bf16.msra.mxu2 %v304_v0  ;;  %354 = vmatpush.bf16.msra.mxu3 %v304_v0  ;;  %v298_v6 = vld [vmem:[%s529_s1 + $0x8] sm:$0xff]  ;;  %v297_v7 = vld [vmem:[%s529_s1] sm:$0xff]  ;;  %v22_v20 = vld [vmem:[%s530_s0 + $0x10] sm:$0xff] }
   0x4   :  { %v20_v8 = vld [vmem:[%s530_s0] sm:$0xff]  ;;  %v21_v9 = vld [vmem:[%s530_s0 + $0x8] sm:$0xff]  ;;  %v23_v21 = vld [vmem:[%s530_s0 + $0x18] sm:$0xff] }
   0x5   :  { %v24_v10 = vld [vmem:[%s530_s0 + $0x20] sm:$0xff]  ;;  %v25_v11 = vld [vmem:[%s530_s0 + $0x28] sm:$0xff]  ;;  %v36_v16 = vpack.c.bf16 %v21_v9, %v20_v8  ;;  %v26_v22 = vld [vmem:[%s530_s0 + $0x30] sm:$0xff]  ;;  %v37_v28 = vpack.c.bf16 %v23_v21, %v22_v20 }
   0x6   :  { %109 = vmatpush.bf16.msra.mxu0 %v303_v1  ;;  %355 = vmatpush.bf16.msra.mxu1 %v303_v1  ;;  %v28_v12 = vld [vmem:[%s530_s0 + $0x40] sm:$0xff]  ;;  %v29_v13 = vld [vmem:[%s530_s0 + $0x48] sm:$0xff]  ;;  %v38_v17 = vpack.c.bf16 %v25_v11, %v24_v10  ;;  %v27_v23 = vld [vmem:[%s530_s0 + $0x38] sm:$0xff] }
   0x7   :  { %356 = vmatpush.bf16.msra.mxu2 %v303_v1  ;;  %357 = vmatpush.bf16.msra.mxu3 %v303_v1  ;;  %v32_v14 = vld [vmem:[%s530_s0 + $0x60] sm:$0xff]  ;;  %v33_v15 = vld [vmem:[%s530_s0 + $0x68] sm:$0xff]  ;;  %v40_v18 = vpack.c.bf16 %v29_v13, %v28_v12  ;;  %v30_v24 = vld [vmem:[%s530_s0 + $0x50] sm:$0xff]  ;;  %v39_v29 = vpack.c.bf16 %v27_v23, %v26_v22 }
   0x8   :  { %v42_v19 = vpack.c.bf16 %v33_v15, %v32_v14  ;;  %v31_v25 = vld [vmem:[%s530_s0 + $0x58] sm:$0xff]  ;;  %v34_v26 = vld [vmem:[%s530_s0 + $0x70] sm:$0xff] }
   0x9   :  { %v35_v27 = vld [vmem:[%s530_s0 + $0x78] sm:$0xff]  ;;  %v41_v30 = vpack.c.bf16 %v31_v25, %v30_v24 }
   0xa   :  { %110 = vmatpush.bf16.msra.mxu0 %v302_v2  ;;  %358 = vmatpush.bf16.msra.mxu1 %v302_v2  ;;  %v43_v31 = vpack.c.bf16 %v35_v27, %v34_v26 }
   0xb   :  { %359 = vmatpush.bf16.msra.mxu2 %v302_v2  ;;  %360 = vmatpush.bf16.msra.mxu3 %v302_v2 }
   0xe   :  { %111 = vmatpush.bf16.msra.mxu0 %v301_v3  ;;  %361 = vmatpush.bf16.msra.mxu1 %v301_v3 }
   0xf   :  { %362 = vmatpush.bf16.msra.mxu2 %v301_v3  ;;  %363 = vmatpush.bf16.msra.mxu3 %v301_v3 }
  0x12   :  { %112 = vmatpush.bf16.msra.mxu0 %v300_v4  ;;  %364 = vmatpush.bf16.msra.mxu1 %v300_v4 }
  0x13   :  { %365 = vmatpush.bf16.msra.mxu2 %v300_v4  ;;  %366 = vmatpush.bf16.msra.mxu3 %v300_v4 }
  0x16   :  { %113 = vmatpush.bf16.msra.mxu0 %v299_v5  ;;  %367 = vmatpush.bf16.msra.mxu1 %v299_v5 }
  0x17   :  { %368 = vmatpush.bf16.msra.mxu2 %v299_v5  ;;  %369 = vmatpush.bf16.msra.mxu3 %v299_v5 }
  0x1a   :  { %114 = vmatpush.bf16.msra.mxu0 %v298_v6  ;;  %370 = vmatpush.bf16.msra.mxu1 %v298_v6 }
  0x1b   :  { %371 = vmatpush.bf16.msra.mxu2 %v298_v6  ;;  %372 = vmatpush.bf16.msra.mxu3 %v298_v6 }
  0x1e   :  { %115 = vmatpush.bf16.msra.mxu0 %v297_v7  ;;  %373 = vmatpush.bf16.msra.mxu1 %v297_v7 }
  0x1f   :  { %374 = vmatpush.bf16.msra.mxu2 %v297_v7  ;;  %375 = vmatpush.bf16.msra.mxu3 %v297_v7 }
  0x21   :  { %116 = vmatmul.bf16.vlgmr.msra.gmra.mxu0 %v36_v16  ;;  %126 = vmatmul.bf16.vlgmr.msra.gmra.mxu1 %v38_v17 }
  0x22   :  { %136 = vmatmul.bf16.vlgmr.msra.gmra.mxu2 %v40_v18  ;;  %146 = vmatmul.bf16.vlgmr.msra.gmra.mxu3 %v42_v19 }
  0x31   :  { %121 = vmatmul.bf16.gmra.mxu0 %v37_v28  ;;  %131 = vmatmul.bf16.gmra.mxu1 %v39_v29 }
  0x32   :  { %141 = vmatmul.bf16.gmra.mxu2 %v41_v30  ;;  %151 = vmatmul.bf16.gmra.mxu3 %v43_v31 }
  0x9e   :  { %v117_v32 = vpop.f32.mrf.mxu0  ;;  %v127_v33 = vpop.f32.mrf.mxu1 }
  0x9f   :  { %v214_v47 = vmul.f32 %v117_v32, %v117_v32  ;;  %v218_v62 = vmul.f32 %v127_v33, %v127_v33 }
  0xa5   :  { %v137_v34 = vpop.f32.mrf.mxu2  ;;  %v475_v35 = vpop.f32.mrf.mxu3 }
  0xa6   :  { %v119_v36 = vpop.f32.mrf.mxu0  ;;  %v129_v37 = vpop.f32.mrf.mxu1  ;;  %v222_v14 = vmul.f32 %v137_v34, %v137_v34  ;;  %v226_v26 = vmul.f32 %v475_v35, %v475_v35 }
  0xa7   :  { %v308_v38 = vpack.c.bf16 %v119_v36, %v117_v32  ;;  %v318_v39 = vpack.c.bf16 %v129_v37, %v127_v33  ;;  %v215_v46 = vmul.f32 %v119_v36, %v119_v36  ;;  %v190_v50 = vadd.f32 %v119_v36, %v117_v32 }
  0xa8   :  { %v219_v1 = vmul.f32 %v129_v37, %v129_v37 }
  0xa9   :  { %309 = vst [vmem:[%s531_s2] sm:$0xff] %v308_v38   ;;  %v230_v51 = vadd.f32 %v215_v46, %v214_v47 }
  0xaa   :  { %346 = vst [vmem:[%s531_s2 + $0x10] sm:$0xff] %v318_v39  }
  0xad   :  { %v139_v40 = vpop.f32.mrf.mxu2  ;;  %v483_v41 = vpop.f32.mrf.mxu3 }
  0xae   :  { %v122_v42 = vpop.f32.mrf.mxu0  ;;  %v132_v43 = vpop.f32.mrf.mxu1  ;;  %v328_v44 = vpack.c.bf16 %v139_v40, %v137_v34  ;;  %v338_v45 = vpack.c.bf16 %v483_v41, %v475_v35  ;;  %v223_v17 = vmul.f32 %v139_v40, %v139_v40  ;;  %v227_v29 = vmul.f32 %v483_v41, %v483_v41 }
  0xaf   :  { %v216_v48 = vmul.f32 %v122_v42, %v122_v42  ;;  %v191_v52 = vadd.f32 %v190_v50, %v122_v42  ;;  %v220_v4 = vmul.f32 %v132_v43, %v132_v43 }
  0xb0   :  { %348 = vst [vmem:[%s531_s2 + $0x20] sm:$0xff] %v328_v44  }
  0xb1   :  { %350 = vst [vmem:[%s531_s2 + $0x30] sm:$0xff] %v338_v45   ;;  %v231_v55 = vadd.f32 %v230_v51, %v216_v48  ;;  %v213_v51 = vld [vmem:[%s533_s4] sm:$0x1] }
  0xb5   :  { %v142_v53 = vpop.f32.mrf.mxu2  ;;  %v152_v54 = vpop.f32.mrf.mxu3 }
  0xb6   :  { %v124_v56 = vpop.f32.mrf.mxu0  ;;  %v134_v57 = vpop.f32.mrf.mxu1  ;;  %v224_v21 = vmul.f32 %v142_v53, %v142_v53 }
  0xb7   :  { %v313_v58 = vpack.c.bf16 %v124_v56, %v122_v42  ;;  %v192_v59 = vadd.f32 %v191_v52, %v124_v56  ;;  %v217_v60 = vmul.f32 %v124_v56, %v124_v56  ;;  %v323_v61 = vpack.c.bf16 %v134_v57, %v132_v43 }
  0xb8   :  { %v221_v12 = vmul.f32 %v134_v57, %v134_v57 }
  0xb9   :  { %345 = vst [vmem:[%s531_s2 + $0x8] sm:$0xff] %v313_v58   ;;  %v193_v63 = vadd.f32 %v192_v59, %v127_v33  ;;  %v232_v0 = vadd.f32 %v231_v55, %v217_v60  ;;  %v228_v33 = vmul.f32 %v152_v54, %v152_v54 }
  0xba   :  { %347 = vst [vmem:[%s531_s2 + $0x18] sm:$0xff] %v323_v61  }
  0xbb   :  { %v233_v2 = vadd.f32 %v232_v0, %v218_v62  ;;  %v194_v3 = vadd.f32 %v193_v63, %v129_v37 }
  0xbd   :  { %v195_v5 = vadd.f32 %v194_v3, %v132_v43  ;;  %v234_v6 = vadd.f32 %v233_v2, %v219_v1  ;;  %v144_v7 = vpop.f32.mrf.mxu2  ;;  %v154_v8 = vpop.f32.mrf.mxu3 }
  0xbe   :  { %v333_v9 = vpack.c.bf16 %v144_v7, %v142_v53  ;;  %v343_v10 = vpack.c.bf16 %v154_v8, %v152_v54  ;;  %v225_v25 = vmul.f32 %v144_v7, %v144_v7  ;;  %v229_v38 = vmul.f32 %v154_v8, %v154_v8 }
  0xbf   :  { %v196_v11 = vadd.f32 %v195_v5, %v134_v57  ;;  %v235_v13 = vadd.f32 %v234_v6, %v220_v4 }
  0xc0   :  { %349 = vst [vmem:[%s531_s2 + $0x28] sm:$0xff] %v333_v9  }
  0xc1   :  { %v197_v15 = vadd.f32 %v196_v11, %v137_v34  ;;  %v236_v16 = vadd.f32 %v235_v13, %v221_v12  ;;  %351 = vst [vmem:[%s531_s2 + $0x38] sm:$0xff] %v343_v10  }
  0xc3   :  { %v237_v18 = vadd.f32 %v236_v16, %v222_v14  ;;  %v198_v19 = vadd.f32 %v197_v15, %v139_v40 }
  0xc5   :  { %v199_v20 = vadd.f32 %v198_v19, %v142_v53  ;;  %v238_v22 = vadd.f32 %v237_v18, %v223_v17 }
  0xc7   :  { %v239_v23 = vadd.f32 %v238_v22, %v224_v21  ;;  %v200_v24 = vadd.f32 %v199_v20, %v144_v7 }
  0xc9   :  { %v201_v27 = vadd.f32 %v200_v24, %v475_v35  ;;  %v240_v28 = vadd.f32 %v239_v23, %v225_v25 }
  0xcb   :  { %v241_v30 = vadd.f32 %v240_v28, %v226_v26  ;;  %v202_v31 = vadd.f32 %v201_v27, %v483_v41  ;;  %v189_v41 = vld [vmem:[%s532_s3] sm:$0x1] }
  0xcd   :  { %v203_v32 = vadd.f32 %v202_v31, %v152_v54  ;;  %v242_v34 = vadd.f32 %v241_v30, %v227_v29 }
  0xcf   :  { %v243_v36 = vadd.f32 %v242_v34, %v228_v33  ;;  %v204_v37 = vadd.f32 %v203_v32, %v154_v8 }
  0xd1   :  { %v205_v39 = vrot.slane %v204_v37, 4  ;;  %v244_v40 = vadd.f32 %v243_v36, %v229_v38 }
  0xd3   :  { %v206_v42 = vadd.f32 %v205_v39, %v204_v37  ;;  %v245_v43 = vrot.slane %v244_v40, 4 }
  0xd5   :  { %v207_v44 = vrot.slane %v206_v42, 2  ;;  %v246_v45 = vadd.f32 %v245_v43, %v244_v40 }
  0xd7   :  { %v208_v35 = vadd.f32 %v207_v44, %v206_v42  ;;  %v247_v46 = vrot.slane %v246_v45, 2 }
  0xd9   :  { %v209_v47 = vrot.slane %v208_v35, 1  ;;  %v248_v48 = vadd.f32 %v247_v46, %v246_v45 }
  0xdb   :  { %v210_v49 = vadd.f32 %v209_v47, %v208_v35  ;;  %v249_v50 = vrot.slane %v248_v48, 1 }
  0xdd   :  { %v211_v52 = vadd.f32 %v210_v49, %v189_v41  ;;  %v250_v53 = vadd.f32 %v249_v50, %v248_v48 }
  0xdf   :  { %212 = vst [vmem:[%s532_s3] sm:$0x1] %v211_v52  ;;  %v251_v54 = vadd.f32 %v250_v53, %v213_v51 }
  0xe1   :  { %252 = vst [vmem:[%s533_s4] sm:$0x1] %v251_v54 }

// kernel: _bottleneck_impl.6
= control target key start
LH: loop header
LB: loop body
LE: loop exit
PB: predicated region body
PF: predicated region fallthrough
CT: control target
= control target key end

     0   :  { %s676_s3 = inlined_call_operand.vmem [shape: bf16[128,128], index: 3, kind: input, shape index: {}]   ;;  %s677_s1 = inlined_call_operand.vmem [shape: f32[1,128], index: 1, kind: input, shape index: {}]   ;;  %s678_s2 = inlined_call_operand.vmem [shape: f32[1,128], index: 2, kind: input, shape index: {}]   ;;  %s679_s0 = inlined_call_operand.vmem [shape: bf16[128,128], index: 0, kind: input, shape index: {}]   ;;  %s680_s4 = inlined_call_operand.vmem [shape: bf16[128,128], index: 4, kind: output, shape index: {0}]   ;;  %s681_s5 = inlined_call_operand.vmem [shape: f32[1,128], index: 5, kind: output, shape index: {1}]   ;;  %s682_s6 = inlined_call_operand.vmem [shape: f32[1,128], index: 6, kind: output, shape index: {2}]  }
   0x1   :  { %v382_v0 = vld [vmem:[%s676_s3 + $0x38] sm:$0xff]  ;;  %v381_v1 = vld [vmem:[%s676_s3 + $0x30] sm:$0xff]  ;;  %v380_v2 = vld [vmem:[%s676_s3 + $0x28] sm:$0xff] }
   0x2   :  { %186 = vmatpush.bf16.msra.mxu0 %v382_v0  ;;  %469 = vmatpush.bf16.msra.mxu1 %v382_v0  ;;  %v384_v3 = vld [vmem:[%s679_s0] sm:$0xff]   ;;  %v456_v5 = vld [vmem:[%s679_s0 + $0x10] sm:$0xff]   ;;  %v378_v15 = vld [vmem:[%s676_s3 + $0x18] sm:$0xff] }
   0x3   :  { %470 = vmatpush.bf16.msra.mxu2 %v382_v0  ;;  %471 = vmatpush.bf16.msra.mxu3 %v382_v0  ;;  %v379_v4 = vld [vmem:[%s676_s3 + $0x20] sm:$0xff]  ;;  %v460_v7 = vld [vmem:[%s679_s0 + $0x30] sm:$0xff]   ;;  %v385_v8 = vunpack.c.l.bf16 %v384_v3  ;;  %v386_v9 = vunpack.c.h.bf16 %v384_v3  ;;  %v393_v11 = vunpack.c.l.bf16 %v456_v5  ;;  %v394_v12 = vunpack.c.h.bf16 %v456_v5  ;;  %v376_v34 = vld [vmem:[%s676_s3 + $0x8] sm:$0xff] }
   0x4   :  { %v458_v6 = vld [vmem:[%s679_s0 + $0x20] sm:$0xff]   ;;  %v409_v16 = vunpack.c.l.bf16 %v460_v7  ;;  %v410_v17 = vunpack.c.h.bf16 %v460_v7  ;;  %v377_v25 = vld [vmem:[%s676_s3 + $0x10] sm:$0xff]  ;;  %v455_v43 = vld [vmem:[%s679_s0 + $0x8] sm:$0xff]  }
   0x5   :  { %v559_v10 = vld [vmem:[%s677_s1] ss:$0 sm:$0xff]  ;;  %v401_v13 = vunpack.c.l.bf16 %v458_v6  ;;  %v402_v14 = vunpack.c.h.bf16 %v458_v6  ;;  %v457_v44 = vld [vmem:[%s679_s0 + $0x18] sm:$0xff]   ;;  %v459_v48 = vld [vmem:[%s679_s0 + $0x28] sm:$0xff]   ;;  %v389_v51 = vunpack.c.l.bf16 %v455_v43  ;;  %v390_v52 = vunpack.c.h.bf16 %v455_v43 }
   0x6   :  { %187 = vmatpush.bf16.msra.mxu0 %v381_v1  ;;  %472 = vmatpush.bf16.msra.mxu1 %v381_v1  ;;  %v62_v18 = vmul.f32 %v559_v10, %v385_v8  ;;  %v63_v19 = vmul.f32 %v559_v10, %v386_v9  ;;  %v569_v20 = vld [vmem:[%s678_s2] ss:$0 sm:$0xff]  ;;  %v66_v21 = vmul.f32 %v559_v10, %v393_v11  ;;  %v461_v49 = vld [vmem:[%s679_s0 + $0x38] sm:$0xff]   ;;  %v397_v53 = vunpack.c.l.bf16 %v457_v44 }
   0x7   :  { %473 = vmatpush.bf16.msra.mxu2 %v381_v1  ;;  %474 = vmatpush.bf16.msra.mxu3 %v381_v1  ;;  %v67_v22 = vmul.f32 %v559_v10, %v394_v12  ;;  %v70_v23 = vmul.f32 %v559_v10, %v401_v13  ;;  %v71_v24 = vmul.f32 %v559_v10, %v402_v14  ;;  %v375_v45 = vld [vmem:[%s676_s3] sm:$0xff]  ;;  %v398_v56 = vunpack.c.h.bf16 %v457_v44 }
   0x8   :  { %v74_v26 = vmul.f32 %v559_v10, %v409_v16  ;;  %v75_v27 = vmul.f32 %v559_v10, %v410_v17  ;;  %v82_v28 = vadd.f32 %v569_v20, %v62_v18  ;;  %v83_v29 = vadd.f32 %v569_v20, %v63_v19 }
   0x9   :  { %v86_v30 = vadd.f32 %v569_v20, %v66_v21  ;;  %v87_v31 = vadd.f32 %v569_v20, %v67_v22  ;;  %v90_v32 = vadd.f32 %v569_v20, %v70_v23  ;;  %v91_v33 = vadd.f32 %v569_v20, %v71_v24 }
   0xa   :  { %188 = vmatpush.bf16.msra.mxu0 %v380_v2  ;;  %475 = vmatpush.bf16.msra.mxu1 %v380_v2  ;;  %v94_v35 = vadd.f32 %v569_v20, %v74_v26  ;;  %v95_v36 = vadd.f32 %v569_v20, %v75_v27  ;;  %v98_v37 = vmax.f32 %v82_v28, 0.0  ;;  %v99_v38 = vmax.f32 %v83_v29, 0.0 }
   0xb   :  { %476 = vmatpush.bf16.msra.mxu2 %v380_v2  ;;  %477 = vmatpush.bf16.msra.mxu3 %v380_v2  ;;  %v102_v39 = vmax.f32 %v86_v30, 0.0  ;;  %v103_v40 = vmax.f32 %v87_v31, 0.0  ;;  %v106_v41 = vmax.f32 %v90_v32, 0.0  ;;  %v107_v42 = vmax.f32 %v91_v33, 0.0 }
   0xc   :  { %v110_v46 = vmax.f32 %v94_v35, 0.0  ;;  %v111_v47 = vmax.f32 %v95_v36, 0.0  ;;  %v114_v50 = vpack.c.bf16 %v99_v38, %v98_v37  ;;  %v405_v57 = vunpack.c.l.bf16 %v459_v48 }
   0xd   :  { %v116_v54 = vpack.c.bf16 %v103_v40, %v102_v39  ;;  %v118_v55 = vpack.c.bf16 %v107_v42, %v106_v41  ;;  %v406_v59 = vunpack.c.h.bf16 %v459_v48  ;;  %v413_v60 = vunpack.c.l.bf16 %v461_v49 }
   0xe   :  { %189 = vmatpush.bf16.msra.mxu0 %v379_v4  ;;  %478 = vmatpush.bf16.msra.mxu1 %v379_v4  ;;  %v120_v58 = vpack.c.bf16 %v111_v47, %v110_v46  ;;  %v414_v61 = vunpack.c.h.bf16 %v461_v49  ;;  %v64_v62 = vmul.f32 %v559_v10, %v389_v51  ;;  %v65_v63 = vmul.f32 %v559_v10, %v390_v52 }
   0xf   :  { %479 = vmatpush.bf16.msra.mxu2 %v379_v4  ;;  %480 = vmatpush.bf16.msra.mxu3 %v379_v4  ;;  %v68_v0 = vmul.f32 %v559_v10, %v397_v53  ;;  %v69_v1 = vmul.f32 %v559_v10, %v398_v56  ;;  %v72_v2 = vmul.f32 %v559_v10, %v405_v57  ;;  %v496_v43 = vmov 0.0  }
  0x10   :  { %v73_v3 = vmul.f32 %v559_v10, %v406_v59  ;;  %v76_v4 = vmul.f32 %v559_v10, %v413_v60  ;;  %v77_v5 = vmul.f32 %v559_v10, %v414_v61  ;;  %v84_v6 = vadd.f32 %v569_v20, %v64_v62  ;;  %24 = vst [vmem:[%s681_s5] sm:$0x1] %v496_v43 }
  0x11   :  { %v85_v7 = vadd.f32 %v569_v20, %v65_v63  ;;  %v88_v8 = vadd.f32 %v569_v20, %v68_v0  ;;  %v89_v9 = vadd.f32 %v569_v20, %v69_v1  ;;  %v92_v11 = vadd.f32 %v569_v20, %v72_v2  ;;  %25 = vst [vmem:[%s682_s6] sm:$0x1] %v496_v43 }
  0x12   :  { %190 = vmatpush.bf16.msra.mxu0 %v378_v15  ;;  %481 = vmatpush.bf16.msra.mxu1 %v378_v15  ;;  %v93_v12 = vadd.f32 %v569_v20, %v73_v3  ;;  %v96_v13 = vadd.f32 %v569_v20, %v76_v4  ;;  %v97_v14 = vadd.f32 %v569_v20, %v77_v5 }
  0x13   :  { %482 = vmatpush.bf16.msra.mxu2 %v378_v15  ;;  %483 = vmatpush.bf16.msra.mxu3 %v378_v15  ;;  %v100_v15 = vmax.f32 %v84_v6, 0.0  ;;  %v101_v16 = vmax.f32 %v85_v7, 0.0  ;;  %v104_v17 = vmax.f32 %v88_v8, 0.0  ;;  %v105_v10 = vmax.f32 %v89_v9, 0.0 }
  0x14   :  { %v108_v18 = vmax.f32 %v92_v11, 0.0  ;;  %v109_v19 = vmax.f32 %v93_v12, 0.0  ;;  %v112_v21 = vmax.f32 %v96_v13, 0.0  ;;  %v113_v22 = vmax.f32 %v97_v14, 0.0 }
  0x15   :  { %v115_v23 = vpack.c.bf16 %v101_v16, %v100_v15  ;;  %v117_v24 = vpack.c.bf16 %v105_v10, %v104_v17 }
  0x16   :  { %191 = vmatpush.bf16.msra.mxu0 %v377_v25  ;;  %484 = vmatpush.bf16.msra.mxu1 %v377_v25  ;;  %v121_v26 = vpack.c.bf16 %v113_v22, %v112_v21 }
  0x17   :  { %485 = vmatpush.bf16.msra.mxu2 %v377_v25  ;;  %486 = vmatpush.bf16.msra.mxu3 %v377_v25  ;;  %v119_v25 = vpack.c.bf16 %v109_v19, %v108_v18 }
  0x1a   :  { %192 = vmatpush.bf16.msra.mxu0 %v376_v34  ;;  %487 = vmatpush.bf16.msra.mxu1 %v376_v34 }
  0x1b   :  { %488 = vmatpush.bf16.msra.mxu2 %v376_v34  ;;  %489 = vmatpush.bf16.msra.mxu3 %v376_v34 }
  0x1e   :  { %193 = vmatpush.bf16.msra.mxu0 %v375_v45  ;;  %490 = vmatpush.bf16.msra.mxu1 %v375_v45 }
  0x1f   :  { %491 = vmatpush.bf16.msra.mxu2 %v375_v45  ;;  %492 = vmatpush.bf16.msra.mxu3 %v375_v45 }
  0x21   :  { %194 = vmatmul.bf16.vlgmr.msra.gmra.mxu0 %v114_v50  ;;  %204 = vmatmul.bf16.vlgmr.msra.gmra.mxu1 %v116_v54 }
  0x22   :  { %214 = vmatmul.bf16.vlgmr.msra.gmra.mxu2 %v118_v55  ;;  %224 = vmatmul.bf16.vlgmr.msra.gmra.mxu3 %v120_v58 }
  0x31   :  { %199 = vmatmul.bf16.gmra.mxu0 %v115_v23  ;;  %209 = vmatmul.bf16.gmra.mxu1 %v117_v24 }
  0x32   :  { %219 = vmatmul.bf16.gmra.mxu2 %v119_v25  ;;  %229 = vmatmul.bf16.gmra.mxu3 %v121_v26 }
  0x9e   :  { %v195_v27 = vpop.f32.mrf.mxu0  ;;  %v205_v28 = vpop.f32.mrf.mxu1 }
  0x9f   :  { %v292_v41 = vmul.f32 %v195_v27, %v195_v27  ;;  %v296_v56 = vmul.f32 %v205_v28, %v205_v28 }
  0xa5   :  { %v215_v29 = vpop.f32.mrf.mxu2  ;;  %v622_v20 = vpop.f32.mrf.mxu3 }
  0xa6   :  { %v197_v30 = vpop.f32.mrf.mxu0  ;;  %v207_v31 = vpop.f32.mrf.mxu1  ;;  %v300_v8 = vmul.f32 %v215_v29, %v215_v29  ;;  %v304_v21 = vmul.f32 %v622_v20, %v622_v20 }
  0xa7   :  { %v418_v32 = vpack.c.bf16 %v197_v30, %v195_v27  ;;  %v428_v33 = vpack.c.bf16 %v207_v31, %v205_v28  ;;  %v293_v40 = vmul.f32 %v197_v30, %v197_v30  ;;  %v268_v44 = vadd.f32 %v197_v30, %v195_v27 }
  0xa8   :  { %v297_v59 = vmul.f32 %v207_v31, %v207_v31 }
  0xa9   :  { %419 = vst [vmem:[%s680_s4] sm:$0xff] %v418_v32   ;;  %v308_v45 = vadd.f32 %v293_v40, %v292_v41 }
  0xaa   :  { %463 = vst [vmem:[%s680_s4 + $0x10] sm:$0xff] %v428_v33  }
  0xad   :  { %v217_v34 = vpop.f32.mrf.mxu2  ;;  %v630_v35 = vpop.f32.mrf.mxu3 }
  0xae   :  { %v200_v36 = vpop.f32.mrf.mxu0  ;;  %v210_v37 = vpop.f32.mrf.mxu1  ;;  %v438_v38 = vpack.c.bf16 %v217_v34, %v215_v29  ;;  %v448_v39 = vpack.c.bf16 %v630_v35, %v622_v20  ;;  %v301_v12 = vmul.f32 %v217_v34, %v217_v34  ;;  %v305_v24 = vmul.f32 %v630_v35, %v630_v35 }
  0xaf   :  { %v294_v42 = vmul.f32 %v200_v36, %v200_v36  ;;  %v269_v46 = vadd.f32 %v268_v44, %v200_v36  ;;  %v298_v62 = vmul.f32 %v210_v37, %v210_v37 }
  0xb0   :  { %465 = vst [vmem:[%s680_s4 + $0x20] sm:$0xff] %v438_v38  }
  0xb1   :  { %467 = vst [vmem:[%s680_s4 + $0x30] sm:$0xff] %v448_v39   ;;  %v309_v49 = vadd.f32 %v308_v45, %v294_v42  ;;  %v291_v45 = vld [vmem:[%s682_s6] sm:$0x1] }
  0xb5   :  { %v220_v47 = vpop.f32.mrf.mxu2  ;;  %v230_v48 = vpop.f32.mrf.mxu3 }
  0xb6   :  { %v202_v50 = vpop.f32.mrf.mxu0  ;;  %v212_v51 = vpop.f32.mrf.mxu1  ;;  %v302_v16 = vmul.f32 %v220_v47, %v220_v47 }
  0xb7   :  { %v423_v52 = vpack.c.bf16 %v202_v50, %v200_v36  ;;  %v270_v53 = vadd.f32 %v269_v46, %v202_v50  ;;  %v295_v54 = vmul.f32 %v202_v50, %v202_v50  ;;  %v433_v55 = vpack.c.bf16 %v212_v51, %v210_v37 }
  0xb8   :  { %v299_v6 = vmul.f32 %v212_v51, %v212_v51 }
  0xb9   :  { %462 = vst [vmem:[%s680_s4 + $0x8] sm:$0xff] %v423_v52   ;;  %v271_v57 = vadd.f32 %v270_v53, %v205_v28  ;;  %v310_v58 = vadd.f32 %v309_v49, %v295_v54  ;;  %v306_v28 = vmul.f32 %v230_v48, %v230_v48 }
  0xba   :  { %464 = vst [vmem:[%s680_s4 + $0x18] sm:$0xff] %v433_v55  }
  0xbb   :  { %v311_v60 = vadd.f32 %v310_v58, %v296_v56  ;;  %v272_v61 = vadd.f32 %v271_v57, %v207_v31 }
  0xbd   :  { %v273_v63 = vadd.f32 %v272_v61, %v210_v37  ;;  %v312_v0 = vadd.f32 %v311_v60, %v297_v59  ;;  %v222_v1 = vpop.f32.mrf.mxu2  ;;  %v232_v2 = vpop.f32.mrf.mxu3 }
  0xbe   :  { %v443_v3 = vpack.c.bf16 %v222_v1, %v220_v47  ;;  %v453_v4 = vpack.c.bf16 %v232_v2, %v230_v48  ;;  %v303_v19 = vmul.f32 %v222_v1, %v222_v1  ;;  %v307_v32 = vmul.f32 %v232_v2, %v232_v2 }
  0xbf   :  { %v274_v5 = vadd.f32 %v273_v63, %v212_v51  ;;  %v313_v7 = vadd.f32 %v312_v0, %v298_v62 }
  0xc0   :  { %466 = vst [vmem:[%s680_s4 + $0x28] sm:$0xff] %v443_v3  }
  0xc1   :  { %v275_v9 = vadd.f32 %v274_v5, %v215_v29  ;;  %v314_v11 = vadd.f32 %v313_v7, %v299_v6  ;;  %468 = vst [vmem:[%s680_s4 + $0x38] sm:$0xff] %v453_v4  }
  0xc3   :  { %v315_v13 = vadd.f32 %v314_v11, %v300_v8  ;;  %v276_v14 = vadd.f32 %v275_v9, %v217_v34 }
  0xc5   :  { %v277_v15 = vadd.f32 %v276_v14, %v220_v47  ;;  %v316_v17 = vadd.f32 %v315_v13, %v301_v12 }
  0xc7   :  { %v317_v10 = vadd.f32 %v316_v17, %v302_v16  ;;  %v278_v18 = vadd.f32 %v277_v15, %v222_v1 }
  0xc9   :  { %v279_v22 = vadd.f32 %v278_v18, %v622_v20  ;;  %v318_v23 = vadd.f32 %v317_v10, %v303_v19 }
  0xcb   :  { %v319_v25 = vadd.f32 %v318_v23, %v304_v21  ;;  %v280_v26 = vadd.f32 %v279_v22, %v630_v35  ;;  %v267_v35 = vld [vmem:[%s681_s5] sm:$0x1] }
  0xcd   :  { %v281_v27 = vadd.f32 %v280_v26, %v230_v48  ;;  %v320_v29 = vadd.f32 %v319_v25, %v305_v24 }
  0xcf   :  { %v321_v30 = vadd.f32 %v320_v29, %v306_v28  ;;  %v282_v31 = vadd.f32 %v281_v27, %v232_v2 }
  0xd1   :  { %v283_v33 = vrot.slane %v282_v31, 4  ;;  %v322_v34 = vadd.f32 %v321_v30, %v307_v32 }
  0xd3   :  { %v284_v36 = vadd.f32 %v283_v33, %v282_v31  ;;  %v323_v37 = vrot.slane %v322_v34, 4 }
  0xd5   :  { %v285_v38 = vrot.slane %v284_v36, 2  ;;  %v324_v39 = vadd.f32 %v323_v37, %v322_v34 }
  0xd7   :  { %v286_v20 = vadd.f32 %v285_v38, %v284_v36  ;;  %v325_v40 = vrot.slane %v324_v39, 2 }
  0xd9   :  { %v287_v41 = vrot.slane %v286_v20, 1  ;;  %v326_v42 = vadd.f32 %v325_v40, %v324_v39 }
  0xdb   :  { %v288_v43 = vadd.f32 %v287_v41, %v286_v20  ;;  %v327_v44 = vrot.slane %v326_v42, 1 }
  0xdd   :  { %v289_v46 = vadd.f32 %v288_v43, %v267_v35  ;;  %v328_v47 = vadd.f32 %v327_v44, %v326_v42 }
  0xdf   :  { %290 = vst [vmem:[%s681_s5] sm:$0x1] %v289_v46  ;;  %v329_v48 = vadd.f32 %v328_v47, %v291_v45 }
  0xe1   :  { %330 = vst [vmem:[%s682_s6] sm:$0x1] %v329_v48 }

// kernel: _bottleneck_impl.5
= control target key start
LH: loop header
LB: loop body
LE: loop exit
PB: predicated region body
PF: predicated region fallthrough
CT: control target
= control target key end

     0   :  { %s2933_s21 = smov 0   ;;  %s3545_s0 = inlined_call_operand.vmem [shape: bf16[2,8,8,128], index: 0, kind: input, shape index: {}]   ;;  %s3546_s1 = inlined_call_operand.vmem [shape: f32[1,128], index: 1, kind: input, shape index: {}]   ;;  %s3547_s2 = inlined_call_operand.vmem [shape: f32[1,128], index: 2, kind: input, shape index: {}]   ;;  %s3548_s3 = inlined_call_operand.vmem [shape: bf16[3,3,128,128], index: 3, kind: input, shape index: {}]   ;;  %s3549_s4 = inlined_call_operand.vmem [shape: bf16[2,8,8,128], index: 4, kind: output, shape index: {0}]   ;;  %s3550_s5 = inlined_call_operand.vmem [shape: f32[1,128], index: 5, kind: output, shape index: {1}]   ;;  %s3551_s6 = inlined_call_operand.vmem [shape: f32[1,128], index: 6, kind: output, shape index: {2}]  }
   0x1 LB: > { %s2232_s22 = sadd.s32 4294967295, %s2894_s21   ;;  %p2236_p0 = scmp.ge.s32.totalorder %s2894_s21, 1  ;;  %s2894_s21 = sphi %s2933_s21, %s17_s21  }
   0x2   : > { %p207_p1 = scmp.lt.s32.totalorder %s2894_s21, 3 }
   0x4   : > { %p208_p2 = pnand %p2236_p0, %p207_p1 }
   0x5   : > { %p237_p3 = scmp.lt.s32.totalorder (!%p208_p2), %s2232_s22, 1  ;;  %p2241_p4 = scmp.ne.s32.totalorder (!%p208_p2), %s2232_s22, 0 }
   0x6   : > { %211 = sbr.rel (%p208_p2) target bundleno = 387 (0x183), region = 36 }
   0xb   : > { %s238_s23 = scalar_select %p237_p3, %s2232_s22, 1 }
   0xc   : > { %251 = sbr.rel (%p2241_p4) target bundleno = 40 (0x28), region = 40 }
   0xd   : > { %s2732_s24 = sshll.u32 %s238_s23, 5 }
   0xe   : > { %s2944_s27 = scalar_lea.vmem %s3545_s0, %s2732_s24  ;;  %s2949_s30 = scalar_lea.vmem %s3549_s4, %s2732_s24 }
  0x11   : > { %v2896_v0 = vmov 0.0   ;;  %v2897_v1 = vmov 0  }
  0x12   : > { %252 = vst [vmem:[%s3550_s5] sm:$0x1] %v2896_v0 }
  0x13   : > { %253 = vst [vmem:[%s3551_s6] sm:$0x1] %v2896_v0 }
  0x14   : > { %254 = vst [vmem:[#allocation2] sm:$0xf] %v2897_v1 }
  0x15   : > { %255 = vst [vmem:[#allocation2 + $0x4] sm:$0x1] %v2897_v1 }
  0x16   : > { %256 = vst [vmem:[#allocation2 + $0x8] sm:$0xf] %v2897_v1 }
  0x17   : > { %257 = vst [vmem:[#allocation2 + $0xc] sm:$0x1] %v2897_v1 }
  0x18   : > { %258 = vst [vmem:[#allocation2 + $0x10] sm:$0xf] %v2897_v1 }
  0x19   : > { %259 = vst [vmem:[#allocation2 + $0x14] sm:$0x1] %v2897_v1 }
  0x1a   : > { %260 = vst [vmem:[#allocation2 + $0x18] sm:$0xf] %v2897_v1 }
  0x1b   : > { %261 = vst [vmem:[#allocation2 + $0x1c] sm:$0x1] %v2897_v1 }
  0x1c   : > { %262 = vst [vmem:[#allocation2 + $0x20] sm:$0xf] %v2897_v1 }
  0x1d   : > { %263 = vst [vmem:[#allocation2 + $0x24] sm:$0x1] %v2897_v1 }
  0x1e   : > { %264 = vst [vmem:[#allocation2 + $0x28] sm:$0xf] %v2897_v1 }
  0x1f   : > { %265 = vst [vmem:[#allocation2 + $0x2c] sm:$0x1] %v2897_v1 }
  0x20   : > { %266 = vst [vmem:[#allocation2 + $0x30] sm:$0xf] %v2897_v1 }
  0x21   : > { %267 = vst [vmem:[#allocation2 + $0x34] sm:$0x1] %v2897_v1 }
  0x22   : > { %268 = vst [vmem:[#allocation2 + $0x38] sm:$0xf] %v2897_v1 }
  0x23   : > { %269 = vst [vmem:[#allocation2 + $0x3c] sm:$0x1] %v2897_v1 }
  0x24   : > { %270 = vst [vmem:[#allocation2 + $0x40] sm:$0xf] %v2897_v1 }
  0x25   : > { %271 = vst [vmem:[#allocation2 + $0x44] sm:$0x1] %v2897_v1 }
  0x26   : > { %272 = vst [vmem:[#allocation2 + $0x48] sm:$0xf] %v2897_v1 }
  0x27   : > { %273 = vst [vmem:[#allocation2 + $0x4c] sm:$0x1] %v2897_v1 }
  0x28 PF: > { %v2753_v2 = vld [vmem:[%s3548_s3 + $0x78] sm:$0xff]  ;;  %v2752_v4 = vld [vmem:[%s3548_s3 + $0x70] sm:$0xff]  ;;  %v2751_v7 = vld [vmem:[%s3548_s3 + $0x68] sm:$0xff]  ;;  %vm412_vm0 = vsmask.f32 7938  ;;  %vm411_vm1 = vcmask 1043456  }
  0x29   : > { %v2761_v3 = vld [vmem:[%s3548_s3 + $0xb8] sm:$0xff]  ;;  %2860 = vmatpush.bf16.msra.mxu1 %v2753_v2  ;;  %693 = vmatpush.bf16.msra.mxu0 %v2753_v2  ;;  %v2760_v5 = vld [vmem:[%s3548_s3 + $0xb0] sm:$0xff]  ;;  %v2854_v9 = vld [vmem:[%s2944_s27 + $0x8] sm:$0xff]   ;;  %vm417_vm2 = vcmask 1040384   ;;  %vm418_vm3 = vsmask.f32 256 }
  0x2a   : > { %963 = vmatpush.bf16.msra.mxu2 %v2761_v3  ;;  %v2773_v6 = vld [vmem:[%s3548_s3 + $0xf8] sm:$0xff]  ;;  %v2772_v8 = vld [vmem:[%s3548_s3 + $0xf0] sm:$0xff]  ;;  %v2825_v10 = vunpack.c.h.bf16 %v2854_v9  ;;  %v2983_v12 = vld [vmem:[%s3546_s1] ss:$0 sm:$0xff]  ;;  %v2824_v17 = vunpack.c.l.bf16 %v2854_v9  ;;  %vm497_vm4 = vsmask.f32 3328 }
  0x2b   : > { %1097 = vmatpush.bf16.msra.mxu3 %v2773_v6  ;;  %v2855_v11 = vld [vmem:[%s2944_s27 + $0x10] sm:$0xff]   ;;  %v2759_v13 = vld [vmem:[%s3548_s3 + $0xa8] sm:$0xff]  ;;  %v2991_v15 = vld [vmem:[%s3547_s2] ss:$0 sm:$0xff]  ;;  %vm498_vm5 = vsmask.f32 7440 }
  0x2c   : > { %v2828_v14 = vunpack.c.l.bf16 %v2855_v11  ;;  %v2829_v16 = vunpack.c.h.bf16 %v2855_v11  ;;  %v297_v18 = vmul.f32 %v2983_v12, %v2825_v10  ;;  %v2771_v19 = vld [vmem:[%s3548_s3 + $0xe8] sm:$0xff]  ;;  %v2750_v22 = vld [vmem:[%s3548_s3 + $0x60] sm:$0xff]  ;;  %v3014_v30 = vld [vmem:[%s2944_s27 + $0x18] sm:$0xff]   ;;  %v296_v31 = vmul.f32 %v2983_v12, %v2824_v17 }
  0x2d   : > { %2861 = vmatpush.bf16.msra.mxu1 %v2752_v4  ;;  %694 = vmatpush.bf16.msra.mxu0 %v2752_v4  ;;  %v2758_v23 = vld [vmem:[%s3548_s3 + $0xa0] sm:$0xff]  ;;  %v2832_v38 = vunpack.c.l.bf16 %v3014_v30  ;;  %v2749_v39 = vld [vmem:[%s3548_s3 + $0x58] sm:$0xff]  ;;  %v2748_v53 = vld [vmem:[%s3548_s3 + $0x50] sm:$0xff]  ;;  %vm847_vm7 = vcmask 1042432   ;;  %vm848_vm9 = vcmask 1046532  }
  0x2e   : > { %964 = vmatpush.bf16.msra.mxu2 %v2760_v5  ;;  %v298_v20 = vmul.f32 %v2983_v12, %v2828_v14  ;;  %v299_v21 = vmul.f32 %v2983_v12, %v2829_v16  ;;  %v309_v24 = vadd.f32 %v2991_v15, %v297_v18  ;;  %v3007_v25 = vld [vmem:[%s2944_s27] sm:$0xff]   ;;  %v2757_v45 = vld [vmem:[%s3548_s3 + $0x98] sm:$0xff]  ;;  %v3032_v48 = vadd.f32 %v2991_v15, %v296_v31  ;;  %v2756_v59 = vld [vmem:[%s3548_s3 + $0x90] sm:$0xff] }
  0x2f   : > { %1098 = vmatpush.bf16.msra.mxu3 %v2772_v8  ;;  %v2820_v27 = vunpack.c.l.bf16 %v3007_v25  ;;  %v465_v28 = vld [vmem:[#allocation2] sm:$0xf]  ;;  %v3011_v29 = vld [vmem:[#allocation2 + $0x4] sm:$0x1]  ;;  %v2821_v52 = vunpack.c.h.bf16 %v3007_v25  ;;  %v2769_v57 = vld [vmem:[%s3548_s3 + $0xd8] sm:$0xff]  ;;  %v300_v58 = vmul.f32 %v2983_v12, %v2832_v38 }
  0x30   : > { %v310_v26 = vadd.f32 %v2991_v15, %v298_v20  ;;  %v317_v32 = vmax.f32 %v309_v24, 0.0  ;;  %v501_v33 = vshrl.u32 %v465_v28, 16  ;;  %v504_v34 = vshll.u32 %v465_v28, 16  ;;  %v2770_v41 = vld [vmem:[%s3548_s3 + $0xe0] sm:$0xff]  ;;  %vm3047_vm6 = vmand %vm411_vm1, %vm412_vm0  ;;  %v441_v9 = vld [vmem:[#allocation2 + $0x28] sm:$0xf] }
  0x31   : > { %2862 = vmatpush.bf16.msra.mxu1 %v2751_v7  ;;  %695 = vmatpush.bf16.msra.mxu0 %v2751_v7  ;;  %v311_v35 = vadd.f32 %v2991_v15, %v299_v21  ;;  %v294_v37 = vmul.f32 %v2983_v12, %v2820_v27  ;;  %v510_v44 = vshll.u32 %v3011_v29, 16  ;;  %v435_v62 = vld [vmem:[#allocation2 + $0x20] sm:$0xf]  ;;  %vm3055_vm8 = vmand %vm417_vm2, %vm418_vm3  ;;  %v438_v3 = vld [vmem:[#allocation2 + $0x24] sm:$0x1]  ;;  %v312_v6 = vadd.f32 %v2991_v15, %v300_v58 }
  0x32   : > { %965 = vmatpush.bf16.msra.mxu2 %v2759_v13  ;;  %v318_v36 = vmax.f32 %v310_v26, 0.0  ;;  %v325_v40 = vpack.c.bf16 %v317_v32, %v317_v32  ;;  %v503_v42 = vrot.slane %v501_v33, 4  ;;  %v506_v43 = vrot.slane %v504_v34, 5  ;;  %v3059_v5 = vld [vmem:[#allocation2] sm:$0xe]  ;;  %v2747_v14 = vld [vmem:[%s3548_s3 + $0x48] sm:$0xff]  ;;  %vm3094_vm10 = vmor %vm847_vm7, %vm848_vm9 }
  0x33   : > { %1099 = vmatpush.bf16.msra.mxu3 %v2771_v19  ;;  %v306_v47 = vadd.f32 %v2991_v15, %v294_v37  ;;  %v319_v51 = vmax.f32 %v311_v35, 0.0  ;;  %v3051_v0 = vrot.slane %v510_v44, 5  ;;  %v444_v10 = vld [vmem:[#allocation2 + $0x2c] sm:$0x1]  ;;  %v295_v13 = vmul.f32 %v2983_v12, %v2821_v52  ;;  %v2768_v20 = vld [vmem:[%s3548_s3 + $0xd0] sm:$0xff]  ;;  %v2746_v38 = vld [vmem:[%s3548_s3 + $0x40] sm:$0xff] }
  0x34   : > { %v326_v46 = vpack.c.bf16 %v318_v36, %v318_v36  ;;  %v355_v49 = vshrl.u32 %v325_v40, 16  ;;  %v358_v50 = vshll.u32 %v325_v40, 16  ;;  %v507_v63 = vor.u32 %v506_v43, %v503_v42  ;;  %v420_v24 = vld [vmem:[#allocation2 + $0xc] sm:$0x1]  ;;  %vm3112_vm11 = vmor %vm497_vm4, %vm498_vm5 }
  0x35   : > { %2863 = vmatpush.bf16.msra.mxu1 %v2750_v22  ;;  %696 = vmatpush.bf16.msra.mxu0 %v2750_v22  ;;  %v314_v56 = vmax.f32 %v306_v47, 0.0  ;;  %v327_v11 = vpack.c.bf16 %v319_v51, %v319_v51  ;;  %v2338_v26 = vrot.slane %v3059_v5, 9  ;;  %v2755_v31 = vld [vmem:[%s3548_s3 + $0x88] sm:$0xff]  ;;  %v320_v33 = vmax.f32 %v312_v6, 0.0 }
  0x36   : > { %966 = vmatpush.bf16.msra.mxu2 %v2758_v23  ;;  %v363_v54 = vshrl.u32 %v326_v46, 16  ;;  %v366_v55 = vshll.u32 %v326_v46, 16  ;;  %v357_v60 = vrot.slane %v355_v49, 7  ;;  %v414_v23 = vld [vmem:[#allocation2 + $0x8] sm:$0xf]  ;;  %v3073_v25 = vrot.slane %v507_v63, 4 }
  0x37   : > { %1100 = vmatpush.bf16.msra.mxu3 %v2770_v41  ;;  %v322_v4 = vpack.c.bf16 %v314_v56, %v314_v56  ;;  %v371_v34 = vshrl.u32 %v327_v11, 16  ;;  %v374_v35 = vshll.u32 %v327_v11, 16  ;;  %v307_v36 = vadd.f32 %v2991_v15, %v295_v13  ;;  %v2767_v42 = vld [vmem:[%s3548_s3 + $0xc8] sm:$0xff]  ;;  %v447_v46 = vld [vmem:[#allocation2 + $0x30] sm:$0xf]  ;;  %v2754_v49 = vld [vmem:[%s3548_s3 + $0x80] sm:$0xff] }
  0x38   : > { %v365_v1 = vrot.slane %v363_v54, 7  ;;  %v360_v7 = vor.u32 %v358_v50, %v357_v60  ;;  %v361_v8 = vrot.slane %v357_v60, 4  ;;  %v316_v37 = vmax.f32 %v3032_v48, 0.0  ;;  %v450_v54 = vld [vmem:[#allocation2 + $0x34] sm:$0x1]  ;;  %v2781_v56 = vld [vmem:[%s3548_s3 + $0x138] sm:$0xff] }
  0x39   : > { %2864 = vmatpush.bf16.msra.mxu1 %v2749_v39  ;;  %697 = vmatpush.bf16.msra.mxu0 %v2749_v39  ;;  %v331_v18 = vshrl.u32 %v322_v4, 16  ;;  %v334_v19 = vshll.u32 %v322_v4, 16  ;;  %v852_v41 = vrot.slane %v3011_v29, 5  ;;  %v328_v43 = vpack.c.bf16 %v320_v33, %v320_v33  ;;  %v2745_v29 = vld [vmem:[%s3548_s3 + $0x38] sm:$0xff]  ;;  %v2744_v60 = vld [vmem:[%s3548_s3 + $0x30] sm:$0xff] }
  0x3a   : > { %967 = vmatpush.bf16.msra.mxu2 %v2757_v45  ;;  %v368_v16 = vor.u32 %v366_v55, %v365_v1  ;;  %v369_v17 = vrot.slane %v365_v1, 4  ;;  %v436_v21 = vsel %vm3047_vm6, %v360_v7, %v435_v62  ;;  %v439_v22 = vsel %vm3055_vm8, %v361_v8, %v438_v3  ;;  %v453_v3 = vld [vmem:[#allocation2 + $0x38] sm:$0xf]  ;;  %v456_v7 = vld [vmem:[#allocation2 + $0x3c] sm:$0x1]  ;;  %v2766_v8 = vld [vmem:[%s3548_s3 + $0xc0] sm:$0xff] }
  0x3b   : > { %1101 = vmatpush.bf16.msra.mxu3 %v2769_v57  ;;  %437 = vst [vmem:[#allocation2 + $0x20] sm:$0xf] %v436_v21  ;;  %v333_v32 = vrot.slane %v331_v18, 7  ;;  %v373_v45 = vrot.slane %v371_v34, 7  ;;  %v315_v47 = vmax.f32 %v307_v36, 0.0  ;;  %v3098_v48 = vpack.c.bf16 %v316_v37, %v316_v37  ;;  %v2779_v34 = vld [vmem:[%s3548_s3 + $0x128] sm:$0xff] }
  0x3c   : > { %v442_v27 = vsel %vm3047_vm6, %v368_v16, %v441_v9  ;;  %v445_v28 = vsel %vm3055_vm8, %v369_v17, %v444_v10  ;;  %440 = vst [vmem:[#allocation2 + $0x24] sm:$0x1] %v439_v22  ;;  %v379_v52 = vshrl.u32 %v328_v43, 16  ;;  %v513_v62 = vsel %vm3112_vm11, %v3073_v25, %v3051_v0  ;;  %v2801_v0 = vld [vmem:[%s3548_s3 + $0x1b8] sm:$0xff]  ;;  %v2780_v16 = vld [vmem:[%s3548_s3 + $0x130] sm:$0xff] }
  0x3d   : > { %2865 = vmatpush.bf16.msra.mxu1 %v2748_v53  ;;  %698 = vmatpush.bf16.msra.mxu0 %v2748_v53  ;;  %443 = vst [vmem:[#allocation2 + $0x28] sm:$0xf] %v442_v27  ;;  %v336_v39 = vor.u32 %v334_v19, %v333_v32  ;;  %v337_v40 = vrot.slane %v333_v32, 4  ;;  %v382_v53 = vshll.u32 %v328_v43, 16  ;;  %v376_v57 = vor.u32 %v374_v35, %v373_v45 }
  0x3e   : > { %968 = vmatpush.bf16.msra.mxu2 %v2756_v59  ;;  %446 = vst [vmem:[#allocation2 + $0x2c] sm:$0x1] %v445_v28  ;;  %v377_v58 = vrot.slane %v373_v45, 4  ;;  %v3119_v59 = vpack.c.bf16 %v315_v47, %v315_v47  ;;  %v3130_v63 = vsel %vm3094_vm10, %v2338_v26, %v852_v41  ;;  %v381_v1 = vrot.slane %v379_v52, 7 }
  0x3f   : > { %1102 = vmatpush.bf16.msra.mxu3 %v2768_v20  ;;  %v415_v50 = vsel %vm3047_vm6, %v336_v39, %v414_v23  ;;  %v421_v51 = vsel %vm3055_vm8, %v337_v40, %v420_v24  ;;  %v448_v5 = vsel %vm3047_vm6, %v376_v57, %v447_v46  ;;  %v347_v9 = vshrl.u32 %v3098_v48, 16 }
  0x40   : > { %416 = vst [vmem:[#allocation2 + $0x8] sm:$0xf] %v415_v50  ;;  %v451_v6 = vsel %vm3055_vm8, %v377_v58, %v450_v54  ;;  %v350_v10 = vshll.u32 %v3098_v48, 16  ;;  %v384_v17 = vor.u32 %v382_v53, %v381_v1  ;;  %v385_v18 = vrot.slane %v381_v1, 4  ;;  %v2742_v1 = vld [vmem:[%s3548_s3 + $0x20] sm:$0xff]  ;;  %v2777_v48 = vld [vmem:[%s3548_s3 + $0x118] sm:$0xff] }
  0x41   : > { %2866 = vmatpush.bf16.msra.mxu1 %v2747_v14  ;;  %699 = vmatpush.bf16.msra.mxu0 %v2747_v14  ;;  %422 = vst [vmem:[#allocation2 + $0xc] sm:$0x1] %v421_v51  ;;  %v3150_v21 = vunpack.c.l.b16 %v513_v62  ;;  %v899_v22 = vunpack.c.l.b16 %v3130_v63  ;;  %v339_v23 = vshrl.u32 %v3119_v59, 16  ;;  %v342_v36 = vshll.u32 %v3119_v59, 16 }
  0x42   : > { %969 = vmatpush.bf16.msra.mxu2 %v2755_v31  ;;  %v469_v4 = vld [vmem:[#allocation2 + $0x20] sm:$0xf]  ;;  %449 = vst [vmem:[#allocation2 + $0x30] sm:$0xf] %v448_v5  ;;  %v2743_v31 = vld [vmem:[%s3548_s3 + $0x28] sm:$0xff]  ;;  %v454_v35 = vsel %vm3047_vm6, %v384_v17, %v453_v3  ;;  %v3168_v57 = vrot.slane %v347_v9, 7 }
  0x43   : > { %1103 = vmatpush.bf16.msra.mxu3 %v2767_v42  ;;  %v3144_v11 = vld [vmem:[#allocation2 + $0x24] sm:$0x1]  ;;  %v557_v13 = vshrl.u32 %v469_v4, 16  ;;  %v560_v14 = vshll.u32 %v469_v4, 16  ;;  %452 = vst [vmem:[#allocation2 + $0x34] sm:$0x1] %v451_v6  ;;  %v457_v42 = vsel %vm3055_vm8, %v385_v18, %v456_v7 }
  0x44   : > { %v470_v19 = vld [vmem:[#allocation2 + $0x28] sm:$0xf]  ;;  %v566_v20 = vshll.u32 %v3144_v11, 16  ;;  %455 = vst [vmem:[#allocation2 + $0x38] sm:$0xf] %v454_v35  ;;  %v2800_v9 = vld [vmem:[%s3548_s3 + $0x1b0] sm:$0xff] }
  0x45   : > { %2867 = vmatpush.bf16.msra.mxu1 %v2746_v38  ;;  %700 = vmatpush.bf16.msra.mxu0 %v2746_v38  ;;  %v3154_v24 = vld [vmem:[#allocation2 + $0x2c] sm:$0x1]  ;;  %v559_v25 = vrot.slane %v557_v13, 4  ;;  %v562_v26 = vrot.slane %v560_v14, 5  ;;  %v571_v27 = vshrl.u32 %v470_v19, 16  ;;  %v574_v28 = vshll.u32 %v470_v19, 16 }
  0x46   : > { %970 = vmatpush.bf16.msra.mxu2 %v2754_v49  ;;  %v568_v32 = vrot.slane %v566_v20, 5  ;;  %v580_v33 = vshll.u32 %v3154_v24, 16  ;;  %458 = vst [vmem:[#allocation2 + $0x3c] sm:$0x1] %v457_v42  ;;  %v2809_v19 = vld [vmem:[%s3548_s3 + $0x1f8] sm:$0xff] }
  0x47   : > { %1104 = vmatpush.bf16.msra.mxu3 %v2766_v8  ;;  %v563_v37 = vor.u32 %v562_v26, %v559_v25  ;;  %v573_v38 = vrot.slane %v571_v27, 4  ;;  %v576_v39 = vrot.slane %v574_v28, 5  ;;  %v466_v40 = vld [vmem:[#allocation2 + $0x8] sm:$0xf]  ;;  %v423_v8 = vld [vmem:[#allocation2 + $0x10] sm:$0xf] }
  0x48   : > { %v824_v41 = vld [vmem:[#allocation2 + $0x8] sm:$0xe]  ;;  %v582_v43 = vrot.slane %v580_v33, 5  ;;  %v490_v45 = vld [vmem:[#allocation2 + $0xc] sm:$0x1]  ;;  %v515_v46 = vshrl.u32 %v466_v40, 16  ;;  %v352_v33 = vor.u32 %v350_v10, %v3168_v57 }
  0x49   : > { %794 = vmatpush.bf16.msrb.mxu1 %v2745_v29  ;;  %1343 = vmatpush.bf16.msrb.mxu0 %v2781_v56  ;;  %v518_v47 = vshll.u32 %v466_v40, 16  ;;  %v2339_v29 = vrot.slane %v824_v41, 9  ;;  %v564_v49 = vrot.slane %v563_v37, 4  ;;  %v577_v50 = vor.u32 %v576_v39, %v573_v38  ;;  %v471_v3 = vld [vmem:[#allocation2 + $0x30] sm:$0xf] }
  0x4a   : > { %1652 = vmatpush.bf16.msrb.mxu2 %v2801_v0  ;;  %v524_v51 = vshll.u32 %v490_v45, 16  ;;  %v856_v52 = vrot.slane %v490_v45, 5  ;;  %v517_v53 = vrot.slane %v515_v46, 4  ;;  %v341_v56 = vrot.slane %v339_v23, 7  ;;  %v2778_v0 = vld [vmem:[%s3548_s3 + $0x120] sm:$0xff] }
  0x4b   : > { %v520_v54 = vrot.slane %v518_v47, 5  ;;  %v569_v58 = vsel %vm3112_vm11, %v564_v49, %v568_v32  ;;  %v578_v59 = vrot.slane %v577_v50, 4  ;;  %v585_v7 = vshrl.u32 %v471_v3, 16  ;;  %v3185_v14 = vld [vmem:[#allocation2 + $0x34] sm:$0x1]  ;;  %v2741_v32 = vld [vmem:[%s3548_s3 + $0x18] sm:$0xff]  ;;  %1898 = vmatpush.bf16.msrb.mxu3 %v2809_v19 }
  0x4c   : > { %v857_v62 = vsel %vm3094_vm10, %v2339_v29, %v856_v52  ;;  %v633_v4 = vunpack.c.l.b16 %v569_v58  ;;  %v344_v17 = vor.u32 %v342_v36, %v341_v56  ;;  %v345_v18 = vrot.slane %v341_v56, 4  ;;  %v426_v27 = vld [vmem:[#allocation2 + $0x14] sm:$0x1]  ;;  %v429_v35 = vld [vmem:[#allocation2 + $0x18] sm:$0xf]  ;;  %v2799_v29 = vld [vmem:[%s3548_s3 + $0x1a8] sm:$0xff] }
  0x4d   : > { %795 = vmatpush.bf16.msrb.mxu1 %v2744_v60  ;;  %1344 = vmatpush.bf16.msrb.mxu0 %v2780_v16  ;;  %v526_v60 = vrot.slane %v524_v51, 5  ;;  %v521_v5 = vor.u32 %v520_v54, %v517_v53  ;;  %v900_v6 = vunpack.c.l.b16 %v857_v62  ;;  %v583_v13 = vsel %vm3112_vm11, %v578_v59, %v582_v43  ;;  %v472_v36 = vld [vmem:[#allocation2 + $0x38] sm:$0xf]  ;;  %v432_v38 = vld [vmem:[#allocation2 + $0x1c] sm:$0x1]  ;;  %v2740_v52 = vld [vmem:[%s3548_s3 + $0x10] sm:$0xff] }
  0x4e   : > { %v588_v16 = vshll.u32 %v471_v3, 16  ;;  %v634_v20 = vunpack.c.l.b16 %v583_v13  ;;  %v587_v26 = vrot.slane %v585_v7, 4  ;;  %1653 = vmatpush.bf16.msrb.mxu2 %v2800_v9  ;;  %v424_v37 = vsel %vm3047_vm6, %v344_v17, %v423_v8  ;;  %v3207_v39 = vld [vmem:[#allocation2 + $0x3c] sm:$0x1]  ;;  %v2776_v56 = vld [vmem:[%s3548_s3 + $0x110] sm:$0xff]  ;;  %v2739_v62 = vld [vmem:[%s3548_s3 + $0x8] sm:$0xff] }
  0x4f   : > { %v522_v23 = vrot.slane %v521_v5, 4  ;;  %v907_v25 = vpack.c.b16 %v900_v6, %v899_v22  ;;  %v599_v42 = vshrl.u32 %v472_v36, 16  ;;  %425 = vst [vmem:[#allocation2 + $0x10] sm:$0xf] %v424_v37  ;;  %v602_v43 = vshll.u32 %v472_v36, 16 }
  0x50   : > { %v590_v28 = vrot.slane %v588_v16, 5  ;;  %v639_v63 = vpack.c.b16 %v634_v20, %v633_v4  ;;  %v608_v45 = vshll.u32 %v3207_v39, 16  ;;  %v427_v46 = vsel %vm3055_vm8, %v345_v18, %v426_v27  ;;  %v2738_v16 = vld [vmem:[%s3548_s3] sm:$0xff] }
  0x51   : > { %796 = vmatpush.bf16.msrb.mxu1 %v2743_v31  ;;  %1345 = vmatpush.bf16.msrb.mxu0 %v2779_v34  ;;  %v594_v31 = vshll.u32 %v3185_v14, 16  ;;  %v353_v34 = vrot.slane %v3168_v57, 4  ;;  %v527_v22 = vsel %vm3112_vm11, %v522_v23, %v526_v60  ;;  %v430_v47 = vsel %vm3047_vm6, %v352_v33, %v429_v35  ;;  %428 = vst [vmem:[#allocation2 + $0x14] sm:$0x1] %v427_v46  ;;  %v2412_v60 = vld [vmem:[#allocation2 + $0x8] sm:$0xf] }
  0x52   : > { %971 = vmatmul.bf16.vlgmr.msra.gmra.mxu2 %v907_v25  ;;  %v630_v10 = vunpack.c.l.b16 %v527_v22  ;;  %v591_v40 = vor.u32 %v590_v28, %v587_v26  ;;  %711 = vmatmul.bf16.vlgmr.msra.gmra.mxu1 %v639_v63  ;;  %v601_v51 = vrot.slane %v599_v42, 4  ;;  %v604_v54 = vrot.slane %v602_v43, 5  ;;  %431 = vst [vmem:[#allocation2 + $0x18] sm:$0xf] %v430_v47  ;;  %v2789_v23 = vld [vmem:[%s3548_s3 + $0x178] sm:$0xff]  ;;  %v2774_v25 = vld [vmem:[%s3548_s3 + $0x100] sm:$0xff] }
  0x53   : > { %v596_v41 = vrot.slane %v594_v31, 5  ;;  %v433_v53 = vsel %vm3055_vm8, %v353_v34, %v432_v38  ;;  %1654 = vmatpush.bf16.msrb.mxu2 %v2799_v29  ;;  %v610_v59 = vrot.slane %v608_v45, 5  ;;  %v2808_v35 = vld [vmem:[%s3548_s3 + $0x1f0] sm:$0xff]  ;;  %v2807_v47 = vld [vmem:[%s3548_s3 + $0x1e8] sm:$0xff] }
  0x54   : > { %v637_v49 = vpack.c.b16 %v630_v10, %v3150_v21  ;;  %v592_v50 = vrot.slane %v591_v40, 4  ;;  %434 = vst [vmem:[#allocation2 + $0x1c] sm:$0x1] %v433_v53  ;;  %v1134_v21 = vld [vmem:[#allocation2 + $0x8] sm:$0xf]  ;;  %v605_v58 = vor.u32 %v604_v54, %v601_v51  ;;  %1899 = vmatpush.bf16.msrb.mxu3 %v2808_v35  ;;  %v872_v35 = vrot.slane %v3154_v24, 5 }
  0x55   : > { %797 = vmatpush.bf16.msrb.mxu1 %v2742_v1  ;;  %1346 = vmatpush.bf16.msrb.mxu0 %v2778_v0  ;;  %v2775_v1 = vld [vmem:[%s3548_s3 + $0x108] sm:$0xff]  ;;  %v1151_v6 = vshrl.u32 %v1134_v21, 16  ;;  %v1154_v26 = vshll.u32 %v1134_v21, 16 }
  0x56   : > { %701 = vmatmul.bf16.vlgmr.msra.gmra.mxu0 %v637_v49  ;;  %v597_v57 = vsel %vm3112_vm11, %v592_v50, %v596_v41  ;;  %v606_v3 = vrot.slane %v605_v58, 4  ;;  %v467_v4 = vld [vmem:[#allocation2 + $0x10] sm:$0xf]  ;;  %v2798_v41 = vld [vmem:[%s3548_s3 + $0x1a0] sm:$0xff] }
  0x57   : > { %v2762_v5 = vld [vmem:[#allocation2 + $0xc] sm:$0xf0]  ;;  %v635_v7 = vunpack.c.l.b16 %v597_v57  ;;  %v529_v0 = vshrl.u32 %v467_v4, 16  ;;  %v532_v8 = vshll.u32 %v467_v4, 16  ;;  %v1153_v50 = vrot.slane %v1151_v6, 4  ;;  %1655 = vmatpush.bf16.msrb.mxu2 %v2798_v41  ;;  %v3271_v6 = vld [vmem:[%s3548_s3 + $0x238] sm:$0xff] }
  0x58   : > { %v2413_v9 = vor.u32 %v2762_v5, %v2412_v60  ;;  %v825_v13 = vld [vmem:[#allocation2 + $0x10] sm:$0xe]  ;;  %v611_v18 = vsel %vm3112_vm11, %v606_v3, %v610_v59  ;;  %v491_v19 = vld [vmem:[#allocation2 + $0x14] sm:$0x1]  ;;  %v1156_v54 = vrot.slane %v1154_v26, 5  ;;  %1900 = vmatpush.bf16.msrb.mxu3 %v2807_v47  ;;  %v2797_v5 = vld [vmem:[%s3548_s3 + $0x198] sm:$0xff] }
  0x59   : > { %798 = vmatpush.bf16.msrb.mxu1 %v2741_v32  ;;  %1347 = vmatpush.bf16.msrb.mxu0 %v2777_v48  ;;  %v1136_v17 = vld [vmem:[#allocation2 + $0x10] sm:$0xf]  ;;  %v2340_v20 = vrot.slane %v825_v13, 9  ;;  %v636_v28 = vunpack.c.l.b16 %v611_v18  ;;  %v468_v31 = vld [vmem:[#allocation2 + $0x18] sm:$0xf]  ;;  %v531_v32 = vrot.slane %v529_v0, 4 }
  0x5a   : > { %v1165_v27 = vshrl.u32 %v1136_v17, 16  ;;  %v534_v33 = vrot.slane %v532_v8, 5  ;;  %v538_v34 = vshll.u32 %v491_v19, 16  ;;  %1105 = vmatmul.bf16.vlgmr.msra.gmra.mxu3 %v2413_v9  ;;  %v543_v22 = vshrl.u32 %v468_v31, 16  ;;  %v826_v37 = vld [vmem:[#allocation2 + $0x18] sm:$0xe] }
  0x5b   : > { %v492_v63 = vld [vmem:[#allocation2 + $0x1c] sm:$0x1]  ;;  %v546_v36 = vshll.u32 %v468_v31, 16  ;;  %v640_v38 = vpack.c.b16 %v636_v28, %v635_v7  ;;  %v860_v45 = vrot.slane %v491_v19, 5  ;;  %v2341_v46 = vrot.slane %v826_v37, 9  ;;  %v2787_v19 = vld [vmem:[%s3548_s3 + $0x168] sm:$0xff]  ;;  %1656 = vmatpush.bf16.msrb.mxu2 %v2797_v5 }
  0x5c   : > { %v535_v48 = vor.u32 %v534_v33, %v531_v32  ;;  %v540_v10 = vrot.slane %v538_v34, 5  ;;  %v552_v40 = vshll.u32 %v492_v63, 16  ;;  %v545_v42 = vrot.slane %v543_v22, 4  ;;  %v3263_v59 = vld [vmem:[#allocation2 + $0xc] sm:$0x1] }
  0x5d   : > { %799 = vmatpush.bf16.msrb.mxu1 %v2740_v52  ;;  %1348 = vmatpush.bf16.msrb.mxu0 %v2776_v56  ;;  %v548_v43 = vrot.slane %v546_v36, 5  ;;  %v864_v49 = vrot.slane %v492_v63, 5  ;;  %v861_v53 = vsel %vm3094_vm10, %v2340_v20, %v860_v45  ;;  %v2788_v56 = vld [vmem:[%s3548_s3 + $0x170] sm:$0xff]  ;;  %v1168_v60 = vshll.u32 %v1136_v17, 16  ;;  %v2763_v3 = vld [vmem:[#allocation2 + $0x1c] sm:$0xf0] }
  0x5e   : > { %v536_v29 = vrot.slane %v535_v48, 4  ;;  %v554_v52 = vrot.slane %v552_v40, 5  ;;  %v901_v58 = vunpack.c.l.b16 %v861_v53  ;;  %v1167_v4 = vrot.slane %v1165_v27, 4  ;;  %v3273_v0 = vld [vmem:[#allocation2 + $0x14] sm:$0x1]  ;;  %v2786_v48 = vld [vmem:[%s3548_s3 + $0x160] sm:$0xff] }
  0x5f   : > { %v549_v51 = vor.u32 %v548_v43, %v545_v42  ;;  %v865_v57 = vsel %vm3094_vm10, %v2341_v46, %v864_v49  ;;  %v1170_v8 = vrot.slane %v1168_v60, 5  ;;  %v827_v9 = vld [vmem:[#allocation2 + $0x20] sm:$0xe]  ;;  %v2416_v17 = vld [vmem:[#allocation2 + $0x18] sm:$0xf]  ;;  %v1174_v27 = vshll.u32 %v3273_v0, 16 }
  0x60   : > { %v541_v21 = vsel %vm3112_vm11, %v536_v29, %v540_v10  ;;  %v828_v18 = vld [vmem:[#allocation2 + $0x28] sm:$0xe]  ;;  %v2342_v28 = vrot.slane %v827_v9, 9  ;;  %v868_v31 = vrot.slane %v3144_v11, 5  ;;  %v2417_v33 = vor.u32 %v2763_v3, %v2416_v17  ;;  %v2292_v63 = vld [vmem:[#allocation2] sm:$0xf] }
  0x61   : > { %800 = vmatpush.bf16.msrb.mxu1 %v2739_v62  ;;  %1349 = vmatpush.bf16.msrb.mxu0 %v2775_v1  ;;  %v550_v62 = vrot.slane %v549_v51, 4  ;;  %v902_v1 = vunpack.c.l.b16 %v865_v57  ;;  %v631_v7 = vunpack.c.l.b16 %v541_v21  ;;  %v1171_v26 = vor.u32 %v1170_v8, %v1167_v4  ;;  %v1138_v22 = vld [vmem:[#allocation2 + $0x18] sm:$0xf]  ;;  %v2796_v11 = vld [vmem:[%s3548_s3 + $0x190] sm:$0xff]  ;;  %v2734_v10 = vld [vmem:[#allocation2 + $0x4] sm:$0xf0] }
  0x62   : > { %716 = vmatmul.bf16.gmra.mxu1 %v640_v38  ;;  %v2343_v34 = vrot.slane %v828_v18, 9  ;;  %v2806_v38 = vld [vmem:[%s3548_s3 + $0x1e0] sm:$0xff]  ;;  %v1176_v40 = vrot.slane %v1174_v27, 5  ;;  %v869_v41 = vsel %vm3094_vm10, %v2342_v28, %v868_v31  ;;  %v3299_v42 = vld [vmem:[%s3548_s3 + $0x230] sm:$0xff]  ;;  %1657 = vmatpush.bf16.msrb.mxu2 %v2796_v11  ;;  %v2833_v46 = vunpack.c.h.bf16 %v3014_v30  ;;  %v2805_v49 = vld [vmem:[%s3548_s3 + $0x1d8] sm:$0xff] }
  0x63   : > { %v555_v13 = vsel %vm3112_vm11, %v550_v62, %v554_v52  ;;  %v1172_v24 = vrot.slane %v1171_v26, 4  ;;  %v1140_v45 = vld [vmem:[#allocation2 + $0x20] sm:$0xf]  ;;  %v1179_v47 = vshrl.u32 %v1138_v22, 16  ;;  %v1182_v29 = vshll.u32 %v1138_v22, 16  ;;  %1901 = vmatpush.bf16.msrb.mxu3 %v2806_v38 }
  0x64   : > { %v632_v20 = vunpack.c.l.b16 %v555_v13  ;;  %v873_v43 = vsel %vm3094_vm10, %v2343_v34, %v872_v35  ;;  %v903_v52 = vunpack.c.l.b16 %v869_v41  ;;  %v301_v53 = vmul.f32 %v2983_v12, %v2833_v46  ;;  %v3316_v60 = vld [vmem:[#allocation2 + $0x24] sm:$0x1]  ;;  %v829_v5 = vld [vmem:[#allocation2 + $0x30] sm:$0xe]  ;;  %v2785_v13 = vld [vmem:[%s3548_s3 + $0x158] sm:$0xff] }
  0x65   : > { %801 = vmatpush.bf16.msrb.mxu1 %v2738_v16  ;;  %1350 = vmatpush.bf16.msrb.mxu0 %v2774_v25  ;;  %v908_v16 = vpack.c.b16 %v902_v1, %v901_v58  ;;  %v1160_v25 = vshll.u32 %v3263_v59, 16  ;;  %v1177_v30 = vsel %vm3112_vm11, %v1172_v24, %v1176_v40  ;;  %v1196_v21 = vshll.u32 %v1140_v45, 16  ;;  %v3314_v58 = vld [vmem:[#allocation2 + $0x1c] sm:$0x1]  ;;  %v2794_v28 = vld [vmem:[%s3548_s3 + $0x180] sm:$0xff] }
  0x66   : > { %v638_v32 = vpack.c.b16 %v632_v20, %v631_v7  ;;  %v313_v57 = vadd.f32 %v2991_v15, %v301_v53  ;;  %v1181_v62 = vrot.slane %v1179_v47, 4  ;;  %v1184_v1 = vrot.slane %v1182_v29, 5  ;;  %v2795_v15 = vld [vmem:[%s3548_s3 + $0x188] sm:$0xff]  ;;  %v459_v24 = vld [vmem:[#allocation2 + $0x40] sm:$0xf]  ;;  %v2784_v47 = vld [vmem:[%s3548_s3 + $0x150] sm:$0xff] }
  0x67   : > { %976 = vmatmul.bf16.gmra.mxu2 %v908_v16  ;;  %v1162_v37 = vrot.slane %v1160_v25, 5  ;;  %1902 = vmatpush.bf16.msrb.mxu3 %v2805_v49  ;;  %v1280_v4 = vunpack.c.l.b16 %v1177_v30  ;;  %v1198_v9 = vrot.slane %v1196_v21, 5  ;;  %v3327_v16 = vld [vmem:[%s3548_s3 + $0x228] sm:$0xff]  ;;  %v1188_v17 = vshll.u32 %v3314_v58, 16  ;;  %v2764_v25 = vld [vmem:[#allocation2 + $0x2c] sm:$0xf0] }
  0x68   : > { %706 = vmatmul.bf16.gmra.mxu0 %v638_v32  ;;  %v321_v7 = vmax.f32 %v313_v57, 0.0  ;;  %v1202_v18 = vshll.u32 %v3316_v60, 16  ;;  %v1185_v26 = vor.u32 %v1184_v1, %v1181_v62  ;;  %v2344_v27 = vrot.slane %v829_v5, 9  ;;  %1658 = vmatpush.bf16.msrb.mxu2 %v2795_v15  ;;  %v1142_v11 = vld [vmem:[#allocation2 + $0x28] sm:$0xf]  ;;  %v2814_v29 = vld [vmem:[%s3548_s3 + $0x220] sm:$0xff] }
  0x69   : > { %1517 = vmatpush.bf16.msra.mxu1 %v2789_v23  ;;  %v1157_v23 = vor.u32 %v1156_v54, %v1153_v50  ;;  %2072 = vmatpush.bf16.msra.mxu0 %v3271_v6  ;;  %v2293_v50 = vor.u32 %v2734_v10, %v2292_v63  ;;  %v904_v54 = vunpack.c.l.b16 %v873_v43  ;;  %v876_v32 = vrot.slane %v3185_v14, 5  ;;  %v2296_v10 = vld [vmem:[#allocation2 + $0x10] sm:$0xf]  ;;  %v462_v41 = vld [vmem:[#allocation2 + $0x44] sm:$0x1] }
  0x6a   : > { %1110 = vmatmul.bf16.gmra.mxu3 %v2417_v33  ;;  %v329_v20 = vpack.c.bf16 %v321_v7, %v321_v7  ;;  %v880_v22 = vrot.slane %v3207_v39, 5  ;;  %v1204_v38 = vrot.slane %v1202_v18, 5  ;;  %v1144_v40 = vld [vmem:[#allocation2 + $0x30] sm:$0xf]  ;;  %v1186_v14 = vrot.slane %v1185_v26, 4  ;;  %v2783_v26 = vld [vmem:[%s3548_s3 + $0x148] sm:$0xff] }
  0x6b   : > { %v1158_v36 = vrot.slane %v1157_v23, 4  ;;  %v909_v12 = vpack.c.b16 %v904_v54, %v903_v52  ;;  %v2420_v23 = vld [vmem:[#allocation2 + $0x28] sm:$0xf]  ;;  %v877_v43 = vsel %vm3094_vm10, %v2344_v27, %v876_v32  ;;  %v2804_v39 = vld [vmem:[%s3548_s3 + $0x1d0] sm:$0xff]  ;;  %v2735_v49 = vld [vmem:[#allocation2 + $0x14] sm:$0xf0] }
  0x6c   : > { %v387_v33 = vshrl.u32 %v329_v20, 16  ;;  %v390_v34 = vshll.u32 %v329_v20, 16  ;;  %1659 = vmatpush.bf16.msrb.mxu2 %v2794_v28  ;;  %v1207_v52 = vshrl.u32 %v1142_v11, 16  ;;  %v1210_v53 = vshll.u32 %v1142_v11, 16  ;;  %1903 = vmatpush.bf16.msrb.mxu3 %v2804_v39  ;;  %v1689_v62 = vld [vmem:[#allocation2 + $0x10] sm:$0xf] }
  0x6d   : > { %1518 = vmatpush.bf16.msra.mxu1 %v2788_v56  ;;  %v1163_v51 = vsel %vm3112_vm11, %v1158_v36, %v1162_v37  ;;  %2073 = vmatpush.bf16.msra.mxu0 %v3299_v42  ;;  %v1193_v56 = vshrl.u32 %v1140_v45, 16  ;;  %v2421_v36 = vor.u32 %v2764_v25, %v2420_v23  ;;  %v1190_v37 = vrot.slane %v1188_v17, 5  ;;  %v1691_v1 = vld [vmem:[#allocation2 + $0x18] sm:$0xf]  ;;  %v3363_v5 = vld [vmem:[#allocation2 + $0x2c] sm:$0x1] }
  0x6e   : > { %v1279_v3 = vunpack.c.l.b16 %v1163_v51  ;;  %v1221_v54 = vshrl.u32 %v1144_v40, 16  ;;  %v2297_v57 = vor.u32 %v2735_v49, %v2296_v10  ;;  %v1209_v7 = vrot.slane %v1207_v52, 4  ;;  %v2813_v27 = vld [vmem:[%s3548_s3 + $0x218] sm:$0xff]  ;;  %v2802_v28 = vld [vmem:[%s3548_s3 + $0x1c0] sm:$0xff] }
  0x6f   : > { %v1195_v8 = vrot.slane %v1193_v56, 4  ;;  %v1224_v56 = vshll.u32 %v1144_v40, 16  ;;  %v1191_v61 = vsel %vm3112_vm11, %v1186_v14, %v1190_v37  ;;  %v1706_v15 = vshrl.u32 %v1689_v62, 16  ;;  %v1146_v14 = vld [vmem:[#allocation2 + $0x38] sm:$0xf] }
  0x70   : > { %v1287_v31 = vpack.c.b16 %v1280_v4, %v1279_v3  ;;  %2868 = vmatpush.bf16.msra.mxu2 %v3271_v6  ;;  %v2803_v6 = vld [vmem:[%s3548_s3 + $0x1c8] sm:$0xff]  ;;  %v905_v3 = vunpack.c.l.b16 %v877_v43  ;;  %v1709_v17 = vshll.u32 %v1689_v62, 16  ;;  %v1723_v18 = vshll.u32 %v1691_v1, 16  ;;  %v2300_v49 = vld [vmem:[#allocation2 + $0x20] sm:$0xf] }
  0x71   : > { %1519 = vmatpush.bf16.msra.mxu1 %v2787_v19  ;;  %v830_v19 = vld [vmem:[#allocation2 + $0x38] sm:$0xe]  ;;  %2074 = vmatpush.bf16.msra.mxu0 %v3327_v16  ;;  %v1199_v35 = vor.u32 %v1198_v9, %v1195_v8  ;;  %v1223_v8 = vrot.slane %v1221_v54, 4  ;;  %v1226_v9 = vrot.slane %v1224_v56, 5  ;;  %v1216_v25 = vshll.u32 %v3363_v5, 16 }
  0x72   : > { %802 = vmatmul.bf16.vlgmr.msrb.gmra.mxu1 %v2293_v50  ;;  %v2345_v63 = vrot.slane %v830_v19, 9  ;;  %1904 = vmatpush.bf16.msrb.mxu3 %v2803_v6  ;;  %v1281_v19 = vunpack.c.l.b16 %v1191_v61  ;;  %v1238_v54 = vshll.u32 %v1146_v14, 16  ;;  %v1693_v56 = vld [vmem:[#allocation2 + $0x20] sm:$0xf]  ;;  %v2811_v61 = vld [vmem:[%s3548_s3 + $0x208] sm:$0xff] }
  0x73   : > { %v1200_v50 = vrot.slane %v1199_v35, 4  ;;  %v1708_v35 = vrot.slane %v1706_v15, 4  ;;  %v1218_v11 = vrot.slane %v1216_v25, 5 }
  0x74   : > { %v881_v51 = vsel %vm3094_vm10, %v2345_v63, %v880_v22  ;;  %2869 = vmatpush.bf16.msra.mxu2 %v3299_v42  ;;  %v1720_v42 = vshrl.u32 %v1691_v1, 16  ;;  %v1711_v63 = vrot.slane %v1709_v17, 5 }
  0x75   : > { %1520 = vmatpush.bf16.msra.mxu1 %v2786_v48  ;;  %v389_v48 = vrot.slane %v387_v33, 7  ;;  %2075 = vmatpush.bf16.msra.mxu0 %v2814_v29  ;;  %v1205_v2 = vsel %vm3112_vm11, %v1200_v50, %v1204_v38  ;;  %v906_v4 = vunpack.c.l.b16 %v881_v51  ;;  %v1227_v33 = vor.u32 %v1226_v9, %v1223_v8  ;;  %v3379_v38 = vld [vmem:[#allocation2 + $0x14] sm:$0x1]  ;;  %v2736_v50 = vld [vmem:[#allocation2 + $0x24] sm:$0xf0] }
  0x76   : > { %v1282_v20 = vunpack.c.l.b16 %v1205_v2  ;;  %v1722_v22 = vrot.slane %v1720_v42, 4  ;;  %1905 = vmatpush.bf16.msrb.mxu3 %v2802_v28  ;;  %v1712_v43 = vor.u32 %v1711_v63, %v1708_v35  ;;  %v2301_v2 = vor.u32 %v2736_v50, %v2300_v49 }
  0x77   : > { %981 = vmatmul.bf16.gmra.mxu2 %v909_v12  ;;  %v392_v45 = vor.u32 %v390_v34, %v389_v48  ;;  %v393_v46 = vrot.slane %v389_v48, 4  ;;  %v1212_v12 = vrot.slane %v1210_v53, 5  ;;  %v910_v23 = vpack.c.b16 %v906_v4, %v905_v3  ;;  %v3381_v48 = vld [vmem:[#allocation2 + $0x1c] sm:$0x1]  ;;  %v2580_v3 = vld [vmem:[#allocation2 + $0x10] sm:$0xf] }
  0x78   : > { %1351 = vmatmul.bf16.vlgmr.msrb.gmra.mxu0 %v1287_v31  ;;  %2870 = vmatpush.bf16.msra.mxu2 %v3327_v16  ;;  %v2424_v31 = vld [vmem:[#allocation2 + $0x38] sm:$0xf]  ;;  %v1288_v37 = vpack.c.b16 %v1282_v20, %v1281_v19  ;;  %v1228_v40 = vrot.slane %v1227_v33, 4  ;;  %v1729_v39 = vshll.u32 %v3381_v48, 16  ;;  %v1713_v6 = vrot.slane %v1712_v43, 4  ;;  %v2810_v33 = vld [vmem:[%s3548_s3 + $0x200] sm:$0xff] }
  0x79   : > { %1521 = vmatpush.bf16.msra.mxu1 %v2785_v13  ;;  %v460_v30 = vsel %vm3047_vm6, %v392_v45, %v459_v24  ;;  %v463_v21 = vsel %vm3055_vm8, %v393_v46, %v462_v41  ;;  %v3365_v13 = vld [vmem:[#allocation2 + $0x34] sm:$0x1]  ;;  %v1213_v32 = vor.u32 %v1212_v12, %v1209_v7  ;;  %2076 = vmatpush.bf16.msra.mxu0 %v2813_v27  ;;  %v1715_v45 = vshll.u32 %v3379_v38, 16  ;;  %v2790_v12 = vld [vmem:[#allocation2 + $0x14] sm:$0xf0] }
  0x7a   : > { %1115 = vmatmul.bf16.gmra.mxu3 %v2421_v36  ;;  %461 = vst [vmem:[#allocation2 + $0x40] sm:$0xf] %v460_v30  ;;  %v1230_v16 = vshll.u32 %v3365_v13, 16  ;;  %v1725_v36 = vrot.slane %v1723_v18, 5  ;;  %v1235_v30 = vshrl.u32 %v1146_v14, 16  ;;  %v1731_v1 = vrot.slane %v1729_v39, 5 }
  0x7b   : > { %464 = vst [vmem:[#allocation2 + $0x44] sm:$0x1] %v463_v21  ;;  %v1214_v24 = vrot.slane %v1213_v32, 4  ;;  %v1695_v21 = vld [vmem:[#allocation2 + $0x28] sm:$0xf]  ;;  %v1734_v8 = vshrl.u32 %v1693_v56, 16 }
  0x7c   : > { %2871 = vmatpush.bf16.msra.mxu2 %v2814_v29  ;;  %v1232_v41 = vrot.slane %v1230_v16, 5  ;;  %v1726_v46 = vor.u32 %v1725_v36, %v1722_v22  ;;  %v2812_v29 = vld [vmem:[%s3548_s3 + $0x210] sm:$0xff]  ;;  %v1737_v9 = vshll.u32 %v1693_v56, 16  ;;  %v1748_v15 = vshrl.u32 %v1695_v21, 16 }
  0x7d   : > { %1522 = vmatpush.bf16.msra.mxu1 %v2784_v47  ;;  %v2782_v47 = vld [vmem:[%s3548_s3 + $0x140] sm:$0xff]  ;;  %v1219_v52 = vsel %vm3112_vm11, %v1214_v24, %v1218_v11  ;;  %2077 = vmatpush.bf16.msra.mxu0 %v2812_v29  ;;  %v1751_v17 = vshll.u32 %v1695_v21, 16  ;;  %v1237_v19 = vrot.slane %v1235_v30, 4  ;;  %v1240_v20 = vrot.slane %v1238_v54, 5  ;;  %v3411_v11 = vld [vmem:[#allocation2 + $0x2c] sm:$0x1] }
  0x7e   : > { %v1233_v53 = vsel %vm3112_vm11, %v1228_v40, %v1232_v41  ;;  %v1727_v62 = vrot.slane %v1726_v46, 4  ;;  %v1283_v42 = vunpack.c.l.b16 %v1219_v52  ;;  %v1736_v16 = vrot.slane %v1734_v8, 4  ;;  %v1381_v8 = vld [vmem:[#allocation2 + $0x10] sm:$0xe] }
  0x7f   : > { %v1284_v18 = vunpack.c.l.b16 %v1233_v53  ;;  %v1750_v35 = vrot.slane %v1748_v15, 4  ;;  %v1753_v63 = vrot.slane %v1751_v17, 5  ;;  %v1241_v24 = vor.u32 %v1240_v20, %v1237_v19  ;;  %v2737_v53 = vld [vmem:[#allocation2 + $0x34] sm:$0xf0] }
  0x80   : > { %2872 = vmatpush.bf16.msra.mxu2 %v2813_v27  ;;  %v1732_v25 = vsel %vm3112_vm11, %v1727_v62, %v1731_v1  ;;  %v3402_v27 = vld [vmem:[#allocation2 + $0x3c] sm:$0x1]  ;;  %v1757_v39 = vshll.u32 %v3411_v11, 16  ;;  %v1410_v19 = vrot.slane %v3273_v0, 5 }
  0x81   : > { %v2765_v34 = vld [vmem:[#allocation2 + $0x3c] sm:$0xf0]  ;;  %1523 = vmatpush.bf16.msra.mxu1 %v2783_v26  ;;  %2078 = vmatpush.bf16.msra.mxu0 %v2811_v61  ;;  %v2581_v26 = vor.u32 %v2790_v12, %v2580_v3  ;;  %v1835_v36 = vunpack.c.l.b16 %v1732_v25  ;;  %v1244_v40 = vshll.u32 %v3402_v27, 16  ;;  %v1754_v46 = vor.u32 %v1753_v63, %v1750_v35  ;;  %v2791_v3 = vld [vmem:[#allocation2 + $0x24] sm:$0xf0] }
  0x82   : > { %807 = vmatmul.bf16.gmra.mxu1 %v2297_v57  ;;  %v2425_v10 = vor.u32 %v2765_v34, %v2424_v31  ;;  %v1148_v51 = vld [vmem:[#allocation2 + $0x40] sm:$0xf]  ;;  %v1717_v57 = vrot.slane %v1715_v45, 5  ;;  %v3404_v28 = vld [vmem:[#allocation2 + $0x44] sm:$0x1]  ;;  %v1739_v34 = vrot.slane %v1737_v9, 5 }
  0x83   : > { %v1249_v4 = vshrl.u32 %v1148_v51, 16  ;;  %v1252_v7 = vshll.u32 %v1148_v51, 16  ;;  %v1258_v14 = vshll.u32 %v3404_v28, 16  ;;  %v1242_v49 = vrot.slane %v1241_v24, 4 }
  0x84   : > { %2873 = vmatpush.bf16.msra.mxu2 %v2812_v29  ;;  %v1740_v43 = vor.u32 %v1739_v34, %v1736_v16  ;;  %v2304_v29 = vld [vmem:[#allocation2 + $0x30] sm:$0xf]  ;;  %v1246_v50 = vrot.slane %v1244_v40, 5  ;;  %v1755_v56 = vrot.slane %v1754_v46, 4  ;;  %v1759_v21 = vrot.slane %v1757_v39, 5 }
  0x85   : > { %1524 = vmatpush.bf16.msra.mxu1 %v2782_v47  ;;  %v1251_v31 = vrot.slane %v1249_v4, 4  ;;  %v1254_v32 = vrot.slane %v1252_v7, 5  ;;  %2079 = vmatpush.bf16.msra.mxu0 %v2810_v33  ;;  %v1260_v52 = vrot.slane %v1258_v14, 5  ;;  %v2305_v62 = vor.u32 %v2737_v53, %v2304_v29  ;;  %v1380_v4 = vld [vmem:[#allocation2 + $0x8] sm:$0xe] }
  0x86   : > { %v1741_v30 = vrot.slane %v1740_v43, 4  ;;  %v1247_v1 = vsel %vm3112_vm11, %v1242_v49, %v1246_v50  ;;  %v1760_v12 = vsel %vm3112_vm11, %v1755_v56, %v1759_v21  ;;  %v1935_v40 = vld [vmem:[#allocation2 + $0x10] sm:$0xe]  ;;  %v1961_v39 = vrot.slane %v3379_v38, 5  ;;  %v1701_v56 = vld [vmem:[#allocation2 + $0x40] sm:$0xf] }
  0x87   : > { %986 = vmatmul.bf16.gmra.mxu2 %v910_v23  ;;  %v1718_v23 = vsel %vm3112_vm11, %v1713_v6, %v1717_v57  ;;  %v1255_v41 = vor.u32 %v1254_v32, %v1251_v31  ;;  %v1697_v6 = vld [vmem:[#allocation2 + $0x30] sm:$0xf]  ;;  %v1699_v57 = vld [vmem:[#allocation2 + $0x38] sm:$0xf]  ;;  %v1285_v20 = vunpack.c.l.b16 %v1247_v1  ;;  %v2507_v31 = vrot.slane %v1381_v8, 9 }
  0x88   : > { %1356 = vmatmul.bf16.gmra.mxu0 %v1288_v37  ;;  %2874 = vmatpush.bf16.msra.mxu2 %v2811_v61  ;;  %v1834_v22 = vunpack.c.l.b16 %v1718_v23  ;;  %v3409_v37 = vld [vmem:[#allocation2 + $0x24] sm:$0x1]  ;;  %v1762_v9 = vshrl.u32 %v1697_v6, 16  ;;  %v1765_v15 = vshll.u32 %v1697_v6, 16  ;;  %v1776_v17 = vshrl.u32 %v1699_v57, 16 }
  0x89   : > { %v1743_v45 = vshll.u32 %v3409_v37, 16  ;;  %v1256_v51 = vrot.slane %v1255_v41, 4  ;;  %v1411_v0 = vsel %vm3094_vm10, %v2507_v31, %v1410_v19  ;;  %v1936_v41 = vld [vmem:[#allocation2 + $0x18] sm:$0xe]  ;;  %v2674_v50 = vrot.slane %v1935_v40, 9 }
  0x8a   : > { %1120 = vmatmul.bf16.gmra.mxu3 %v2425_v10  ;;  %v1289_v10 = vpack.c.b16 %v1284_v18, %v1283_v42  ;;  %v1842_v47 = vpack.c.b16 %v1835_v36, %v1834_v22  ;;  %v1779_v42 = vshll.u32 %v1699_v57, 16  ;;  %v1406_v18 = vrot.slane %v3263_v59, 5  ;;  %v3427_v22 = vld [vmem:[#allocation2 + $0x34] sm:$0x1]  ;;  %v3429_v36 = vld [vmem:[#allocation2 + $0x3c] sm:$0x1] }
  0x8b   : > { %v1745_v54 = vrot.slane %v1743_v45, 5  ;;  %v1261_v61 = vsel %vm3112_vm11, %v1256_v51, %v1260_v52  ;;  %v1764_v16 = vrot.slane %v1762_v9, 4  ;;  %v1767_v34 = vrot.slane %v1765_v15, 5  ;;  %v1703_v21 = vld [vmem:[#allocation2 + $0x48] sm:$0xf] }
  0x8c   : > { %2875 = vmatpush.bf16.msra.mxu2 %v2810_v33  ;;  %v1286_v23 = vunpack.c.l.b16 %v1261_v61  ;;  %v1837_v33 = vunpack.c.l.b16 %v1760_v12  ;;  %v1778_v35 = vrot.slane %v1776_v17, 4  ;;  %v1781_v63 = vrot.slane %v1779_v42, 5  ;;  %v1382_v1 = vld [vmem:[#allocation2 + $0x18] sm:$0xe]  ;;  %v1383_v61 = vld [vmem:[#allocation2 + $0x20] sm:$0xe] }
  0x8d   : > { %v1746_v7 = vsel %vm3112_vm11, %v1741_v30, %v1745_v54  ;;  %v1768_v14 = vor.u32 %v1767_v34, %v1764_v16  ;;  %v1771_v43 = vshll.u32 %v3427_v22, 16  ;;  %v1785_v46 = vshll.u32 %v3429_v36, 16  ;;  %v3449_v34 = vld [vmem:[#allocation2 + $0x44] sm:$0x1] }
  0x8e   : > { %v1836_v32 = vunpack.c.l.b16 %v1746_v7  ;;  %v1782_v45 = vor.u32 %v1781_v63, %v1778_v35  ;;  %v1454_v49 = vunpack.c.l.b16 %v1411_v0  ;;  %v2675_v51 = vrot.slane %v1936_v41, 9  ;;  %v3451_v35 = vld [vmem:[#allocation2 + $0x4c] sm:$0x1] }
  0x8f   : > { %v1769_v52 = vrot.slane %v1768_v14, 4  ;;  %v1773_v53 = vrot.slane %v1771_v43, 5  ;;  %v1787_v54 = vrot.slane %v1785_v46, 5  ;;  %v1962_v57 = vsel %vm3094_vm10, %v2674_v50, %v1961_v39 }
  0x90   : > { %v1843_v24 = vpack.c.b16 %v1837_v33, %v1836_v32  ;;  %v1783_v30 = vrot.slane %v1782_v45, 4  ;;  %v1793_v7 = vshll.u32 %v1701_v56, 16  ;;  %v1804_v12 = vshrl.u32 %v1703_v21, 16 }
  0x91   : > { %v1807_v8 = vshll.u32 %v1703_v21, 16  ;;  %v2008_v9 = vunpack.c.l.b16 %v1962_v57  ;;  %v2508_v42 = vrot.slane %v1382_v1, 9  ;;  %v2509_v19 = vrot.slane %v1383_v61, 9  ;;  %v1384_v21 = vld [vmem:[#allocation2 + $0x28] sm:$0xe] }
  0x92   : > { %812 = vmatmul.bf16.gmra.mxu1 %v2301_v2  ;;  %v2584_v2 = vld [vmem:[#allocation2 + $0x20] sm:$0xf]  ;;  %v1795_v31 = vrot.slane %v1793_v7, 5  ;;  %v1806_v32 = vrot.slane %v1804_v12, 4  ;;  %v1813_v41 = vshll.u32 %v3451_v35, 16  ;;  %v1969_v46 = vrot.slane %v3409_v37, 5 }
  0x93   : > { %v2585_v25 = vor.u32 %v2791_v3, %v2584_v2  ;;  %v1774_v2 = vsel %vm3112_vm11, %v1769_v52, %v1773_v53  ;;  %v1788_v3 = vsel %vm3112_vm11, %v1783_v30, %v1787_v54  ;;  %v1809_v33 = vrot.slane %v1807_v8, 5  ;;  %v2592_v54 = vld [vmem:[#allocation2 + $0x40] sm:$0xf]  ;;  %v1942_v12 = vld [vmem:[#allocation2 + $0x48] sm:$0xe] }
  0x94   : > { %v1422_v1 = vrot.slane %v3363_v5, 5  ;;  %v1941_v7 = vld [vmem:[#allocation2 + $0x40] sm:$0xe]  ;;  %v1989_v5 = vrot.slane %v3451_v35, 5 }
  0x95   : > { %v1810_v40 = vor.u32 %v1809_v33, %v1806_v32  ;;  %v1981_v32 = vrot.slane %v3429_v36, 5 }
  0x97   : > { %1660 = vmatmul.bf16.vlgmr.msrb.gmra.mxu2 %v2581_v26  ;;  %v2506_v26 = vrot.slane %v1380_v4, 9  ;;  %v1790_v4 = vshrl.u32 %v1701_v56, 16  ;;  %v1811_v50 = vrot.slane %v1810_v40, 4  ;;  %v2793_v56 = vld [vmem:[#allocation2 + $0x44] sm:$0xf0] }
  0x98   : > { %1361 = vmatmul.bf16.gmra.mxu0 %v1289_v10  ;;  %v1290_v10 = vpack.c.b16 %v1286_v23, %v1285_v20  ;;  %v1418_v20 = vrot.slane %v3316_v60, 5  ;;  %v1838_v23 = vunpack.c.l.b16 %v1774_v2  ;;  %v1937_v60 = vld [vmem:[#allocation2 + $0x20] sm:$0xe]  ;;  %v1426_v2 = vrot.slane %v3365_v13, 5 }
  0x99   : > { %v1407_v59 = vsel %vm3094_vm10, %v2506_v26, %v1406_v18  ;;  %v1414_v18 = vrot.slane %v3314_v58, 5  ;;  %v1792_v26 = vrot.slane %v1790_v4, 4  ;;  %v2676_v45 = vrot.slane %v1937_v60, 9  ;;  %v1386_v60 = vld [vmem:[#allocation2 + $0x38] sm:$0xe] }
  0x9a   : > { %1906 = vmatmul.bf16.vlgmr.msrb.gmra.mxu3 %v1842_v47  ;;  %v1965_v47 = vrot.slane %v3381_v48, 5  ;;  %v1453_v29 = vunpack.c.l.b16 %v1407_v59  ;;  %v2792_v48 = vld [vmem:[#allocation2 + $0x34] sm:$0xf0]  ;;  %v1419_v58 = vsel %vm3094_vm10, %v2509_v19, %v1418_v20  ;;  %v1938_v59 = vld [vmem:[#allocation2 + $0x28] sm:$0xe]  ;;  %v2680_v13 = vrot.slane %v1941_v7, 9 }
  0x9b   : > { %v1415_v63 = vsel %vm3094_vm10, %v2508_v42, %v1414_v18  ;;  %v1796_v0 = vor.u32 %v1795_v31, %v1792_v26  ;;  %v1456_v43 = vunpack.c.l.b16 %v1419_v58  ;;  %v2677_v39 = vrot.slane %v1938_v59, 9  ;;  %v1940_v18 = vld [vmem:[#allocation2 + $0x38] sm:$0xe]  ;;  %v1387_v59 = vld [vmem:[#allocation2 + $0x40] sm:$0xe] }
  0x9c   : > { %v1461_v6 = vpack.c.b16 %v1454_v49, %v1453_v29  ;;  %v1966_v38 = vsel %vm3094_vm10, %v2675_v51, %v1965_v47  ;;  %v1455_v14 = vunpack.c.l.b16 %v1415_v63  ;;  %v1973_v47 = vrot.slane %v3411_v11, 5 }
  0x9d   : > { %v2009_v15 = vunpack.c.l.b16 %v1966_v38  ;;  %v1797_v29 = vrot.slane %v1796_v0, 4  ;;  %v1815_v51 = vrot.slane %v1813_v41, 5  ;;  %v1970_v53 = vsel %vm3094_vm10, %v2676_v45, %v1969_v46 }
  0x9e   : > { %v1462_v52 = vpack.c.b16 %v1456_v43, %v1455_v14  ;;  %v1974_v30 = vsel %vm3094_vm10, %v2677_v39, %v1973_v47  ;;  %v2010_v57 = vunpack.c.l.b16 %v1970_v53  ;;  %v2681_v19 = vrot.slane %v1942_v12, 9 }
  0x9f   : > { %v2016_v16 = vpack.c.b16 %v2009_v15, %v2008_v9  ;;  %v1816_v11 = vsel %vm3112_vm11, %v1811_v50, %v1815_v51  ;;  %v2011_v38 = vunpack.c.l.b16 %v1974_v30  ;;  %v1985_v15 = vrot.slane %v3449_v34, 5 }
  0xa0   : > { %v1841_v4 = vunpack.c.l.b16 %v1816_v11  ;;  %v1977_v26 = vrot.slane %v3427_v22, 5  ;;  %v2679_v31 = vrot.slane %v1940_v18, 9  ;;  %v2512_v41 = vrot.slane %v1386_v60, 9 }
  0xa1   : > { %v2017_v8 = vpack.c.b16 %v2011_v38, %v2010_v57  ;;  %v1986_v33 = vsel %vm3094_vm10, %v2680_v13, %v1985_v15  ;;  %v1430_v14 = vrot.slane %v3402_v27, 5  ;;  %v2513_v43 = vrot.slane %v1387_v59, 9 }
  0xa2   : > { %817 = vmatmul.bf16.gmra.mxu1 %v2305_v62  ;;  %v2588_v62 = vld [vmem:[#allocation2 + $0x30] sm:$0xf]  ;;  %v1982_v63 = vsel %vm3094_vm10, %v2679_v31, %v1981_v32  ;;  %v2014_v58 = vunpack.c.l.b16 %v1986_v33  ;;  %v1434_v45 = vrot.slane %v3404_v28, 5 }
  0xa3   : > { %v2589_v17 = vor.u32 %v2792_v48, %v2588_v62  ;;  %v2593_v62 = vor.u32 %v2793_v56, %v2592_v54  ;;  %v2510_v48 = vrot.slane %v1384_v21, 9  ;;  %v2013_v0 = vunpack.c.l.b16 %v1982_v63 }
  0xa5   : > { %v1423_v55 = vsel %vm3094_vm10, %v2510_v48, %v1422_v1 }
  0xa6   : > { %v1457_v20 = vunpack.c.l.b16 %v1423_v55 }
  0xa7   : > { %1665 = vmatmul.bf16.gmra.mxu2 %v2585_v25  ;;  %v1839_v25 = vunpack.c.l.b16 %v1788_v3 }
  0xa8   : > { %1366 = vmatmul.bf16.gmra.mxu0 %v1290_v10 }
  0xa9   : > { %v1844_v10 = vpack.c.b16 %v1839_v25, %v1838_v23 }
  0xaa   : > { %1911 = vmatmul.bf16.gmra.mxu3 %v1843_v24  ;;  %v1799_v24 = vshll.u32 %v3449_v34, 16 }
  0xac   : > { %v1801_v49 = vrot.slane %v1799_v24, 5 }
  0xae   : > { %v1802_v37 = vsel %vm3112_vm11, %v1797_v29, %v1801_v49  ;;  %v1431_v29 = vsel %vm3094_vm10, %v2512_v41, %v1430_v14  ;;  %v1435_v49 = vsel %vm3094_vm10, %v2513_v43, %v1434_v45 }
  0xaf   : > { %v1840_v3 = vunpack.c.l.b16 %v1802_v37  ;;  %v1459_v50 = vunpack.c.l.b16 %v1431_v29  ;;  %v1460_v51 = vunpack.c.l.b16 %v1435_v49 }
  0xb1   : > { %v1845_v42 = vpack.c.b16 %v1841_v4, %v1840_v3  ;;  %v1464_v53 = vpack.c.b16 %v1460_v51, %v1459_v50 }
  0xb2   : > { %1525 = vmatmul.bf16.vlgmr.msra.gmra.mxu1 %v1461_v6  ;;  %v1385_v6 = vld [vmem:[#allocation2 + $0x30] sm:$0xe] }
  0xb3   : > { %v2511_v61 = vrot.slane %v1385_v6, 9 }
  0xb5   : > { %v1427_v9 = vsel %vm3094_vm10, %v2511_v61, %v1426_v2 }
  0xb6   : > { %v1458_v23 = vunpack.c.l.b16 %v1427_v9 }
  0xb7   : > { %1670 = vmatmul.bf16.gmra.mxu2 %v2589_v17  ;;  %v1939_v17 = vld [vmem:[#allocation2 + $0x30] sm:$0xe] }
  0xb8   : > { %2080 = vmatmul.bf16.vlgmr.msra.gmra.mxu0 %v2016_v16  ;;  %v2678_v25 = vrot.slane %v1939_v17, 9  ;;  %v1990_v16 = vsel %vm3094_vm10, %v2681_v19, %v1989_v5  ;;  %v1463_v34 = vpack.c.b16 %v1458_v23, %v1457_v20 }
  0xba   : > { %1916 = vmatmul.bf16.gmra.mxu3 %v1844_v10  ;;  %v1978_v35 = vsel %vm3094_vm10, %v2678_v25, %v1977_v26  ;;  %v2015_v10 = vunpack.c.l.b16 %v1990_v16 }
  0xbb   : > { %v2012_v36 = vunpack.c.l.b16 %v1978_v35 }
  0xbc   : > { %v2019_v40 = vpack.c.b16 %v2015_v10, %v2014_v58 }
  0xbd   : > { %v2018_v46 = vpack.c.b16 %v2013_v0, %v2012_v36 }
  0xc2   : > { %1530 = vmatmul.bf16.gmra.mxu1 %v1462_v52 }
  0xc7   : > { %1675 = vmatmul.bf16.gmra.mxu2 %v2593_v62 }
  0xc8   : > { %2085 = vmatmul.bf16.gmra.mxu0 %v2017_v8 }
  0xca   : > { %1921 = vmatmul.bf16.gmra.mxu3 %v1845_v42 }
  0xcf   : > { %v712_v22 = vpop.f32.mrf.mxu1 }
  0xd2   : > { %1535 = vmatmul.bf16.gmra.mxu1 %v1463_v34 }
  0xd3   : > { %v702_v24 = vpop.f32.mrf.mxu0 }
  0xd5   : > { %v972_v39 = vpop.f32.mrf.mxu2 }
  0xd7   : > { %2095 = vmatmul.bf16.vlgmr.msra.gmra.mxu2 %v2019_v40  ;;  %v714_v47 = vpop.f32.mrf.mxu1 }
  0xd8   : > { %2090 = vmatmul.bf16.gmra.mxu0 %v2018_v46 }
  0xdb   : > { %v704_v52 = vpop.f32.mrf.mxu0 }
  0xdd   : > { %v1106_v30 = vpop.f32.mrf.mxu3  ;;  %v974_v54 = vpop.f32.mrf.mxu2 }
  0xdf   : > { %v717_v27 = vpop.f32.mrf.mxu1 }
  0xe2   : > { %1540 = vmatmul.bf16.gmra.mxu1 %v1464_v53 }
  0xe5   : > { %v707_v28 = vpop.f32.mrf.mxu0  ;;  %v1108_v56 = vpop.f32.mrf.mxu3 }
  0xe7   : > { %v719_v21 = vpop.f32.mrf.mxu1 }
  0xea   : > { %v977_v6 = vpop.f32.mrf.mxu2 }
  0xed   : > { %v709_v37 = vpop.f32.mrf.mxu0  ;;  %v1111_v11 = vpop.f32.mrf.mxu3 }
  0xef   : > { %v803_v57 = vpop.f32.mrf.mxu1 }
  0xf0   : > { %v804_v38 = vadd.f32 %v803_v57, %v702_v24 }
  0xf2   : > { %v979_v62 = vpop.f32.mrf.mxu2  ;;  %v992_v44 = vadd.f32 %v972_v39, %v804_v38 }
  0xf4   : > { %v1126_v48 = vadd.f32 %v1106_v30, %v992_v44 }
  0xf5   : > { %v1352_v1 = vpop.f32.mrf.mxu0  ;;  %v3493_v61 = vpop.f32.mrf.mxu3 }
  0xf6   : > { %v1372_v2 = vadd.f32 %v1352_v1, %v1126_v48 }
  0xf7   : > { %v805_v3 = vpop.f32.mrf.mxu1 }
  0xf8   : > { %v806_v4 = vadd.f32 %v805_v3, %v704_v52 }
  0xfa   : > { %v982_v7 = vpop.f32.mrf.mxu2  ;;  %v993_v12 = vadd.f32 %v974_v54, %v806_v4 }
  0xfc   : > { %v1127_v54 = vadd.f32 %v1108_v56, %v993_v12 }
  0xfd   : > { %v1354_v8 = vpop.f32.mrf.mxu0  ;;  %v1116_v55 = vpop.f32.mrf.mxu3 }
  0xff   : > { %v808_v9 = vpop.f32.mrf.mxu1 }
 0x100   : > { %v809_v15 = vadd.f32 %v808_v9, %v707_v28 }
 0x102   : > { %v984_v17 = vpop.f32.mrf.mxu2  ;;  %v994_v42 = vadd.f32 %v977_v6, %v809_v15 }
 0x104   : > { %v1128_v5 = vadd.f32 %v1111_v11, %v994_v42 }
 0x105   : > { %v1357_v18 = vpop.f32.mrf.mxu0  ;;  %v3495_v20 = vpop.f32.mrf.mxu3 }
 0x106   : > { %v1374_v13 = vadd.f32 %v1357_v18, %v1128_v5 }
 0x107   : > { %v810_v19 = vpop.f32.mrf.mxu1 }
 0x108   : > { %v811_v23 = vadd.f32 %v810_v19, %v709_v37 }
 0x10a   : > { %v987_v25 = vpop.f32.mrf.mxu2  ;;  %v995_v26 = vadd.f32 %v979_v62, %v811_v23 }
 0x10c   : > { %v1129_v12 = vadd.f32 %v3493_v61, %v995_v26 }
 0x10d   : > { %v1359_v31 = vpop.f32.mrf.mxu0  ;;  %v3497_v34 = vpop.f32.mrf.mxu3 }
 0x10e   : > { %v1375_v18 = vadd.f32 %v1359_v31, %v1129_v12 }
 0x10f   : > { %v813_v32 = vpop.f32.mrf.mxu1 }
 0x110   : > { %v814_v33 = vadd.f32 %v813_v32, %v712_v22 }
 0x112   : > { %v989_v16 = vpop.f32.mrf.mxu2  ;;  %v996_v35 = vadd.f32 %v982_v7, %v814_v33 }
 0x114   : > { %v1130_v63 = vadd.f32 %v1116_v55, %v996_v35 }
 0x115   : > { %v1362_v58 = vpop.f32.mrf.mxu0  ;;  %v3503_v24 = vpop.f32.mrf.mxu3 }
 0x116   : > { %v3499_v10 = vadd.f32 %v1362_v58, %v1130_v63 }
 0x117   : > { %v815_v60 = vpop.f32.mrf.mxu1 }
 0x118   : > { %v816_v59 = vadd.f32 %v815_v60, %v714_v47 }
 0x11a   : > { %v1661_v36 = vpop.f32.mrf.mxu2  ;;  %v3501_v0 = vadd.f32 %v984_v17, %v816_v59 }
 0x11d   : > { %v3505_v40 = vpop.f32.mrf.mxu0  ;;  %v1907_v45 = vpop.f32.mrf.mxu3 }
 0x11f   : > { %v818_v41 = vpop.f32.mrf.mxu1 }
 0x120   : > { %v819_v14 = vadd.f32 %v818_v41, %v717_v27  ;;  %v1373_v27 = vadd.f32 %v1354_v8, %v1127_v54 }
 0x122   : > { %v1663_v22 = vpop.f32.mrf.mxu2  ;;  %v3507_v43 = vadd.f32 %v987_v25, %v819_v14 }
 0x125   : > { %v3509_v46 = vpop.f32.mrf.mxu0  ;;  %v1909_v52 = vpop.f32.mrf.mxu3 }
 0x127   : > { %v820_v39 = vpop.f32.mrf.mxu1 }
 0x128   : > { %v821_v29 = vadd.f32 %v820_v39, %v719_v21 }
 0x12a   : > { %v1666_v49 = vpop.f32.mrf.mxu2  ;;  %v3511_v50 = vadd.f32 %v989_v16, %v821_v29 }
 0x12d   : > { %v3513_v47 = vpop.f32.mrf.mxu0  ;;  %v1912_v38 = vpop.f32.mrf.mxu3 }
 0x12f   : > { %v1526_v51 = vpop.f32.mrf.mxu1 }
 0x130   : > { %v1546_v53 = vadd.f32 %v1526_v51, %v1372_v2 }
 0x132   : > { %v1668_v30 = vpop.f32.mrf.mxu2  ;;  %v1681_v28 = vadd.f32 %v1661_v36, %v1546_v53 }
 0x134   : > { %v1927_v57 = vadd.f32 %v1907_v45, %v1681_v28 }
 0x135   : > { %v2081_v6 = vpop.f32.mrf.mxu0  ;;  %v1914_v17 = vpop.f32.mrf.mxu3 }
 0x136   : > { %v2101_v48 = vadd.f32 %v2081_v6, %v1927_v57  ;;  %v1132_v6 = vadd.f32 %v3497_v34, %v3507_v43 }
 0x137   : > { %v1528_v37 = vpop.f32.mrf.mxu1 }
 0x138   : > { %v1547_v11 = vadd.f32 %v1528_v37, %v1373_v27  ;;  %v2142_v55 = vmul.f32 %v2101_v48, %v2101_v48 }
 0x13a   : > { %v1682_v62 = vadd.f32 %v1663_v22, %v1547_v11  ;;  %v1671_v21 = vpop.f32.mrf.mxu2  ;;  %v1131_v22 = vadd.f32 %v3495_v20, %v3501_v0  ;;  %v1378_v11 = vadd.f32 %v3509_v46, %v1132_v6 }
 0x13c   : > { %v1928_v44 = vadd.f32 %v1909_v52, %v1682_v62 }
 0x13d   : > { %v2083_v1 = vpop.f32.mrf.mxu0  ;;  %v1917_v58 = vpop.f32.mrf.mxu3 }
 0x13e   : > { %v2102_v3 = vadd.f32 %v2083_v1, %v1928_v44 }
 0x13f   : > { %v1531_v4 = vpop.f32.mrf.mxu1 }
 0x140   : > { %v1548_v7 = vadd.f32 %v1531_v4, %v1374_v13  ;;  %v2837_v2 = vpack.c.bf16 %v2102_v3, %v2101_v48  ;;  %v2126_v9 = vadd.f32 %v2102_v3, %v2101_v48  ;;  %v2143_v56 = vmul.f32 %v2102_v3, %v2102_v3 }
 0x141   : > { %v1133_v3 = vadd.f32 %v3503_v24, %v3511_v50 }
 0x142   : > { %v1683_v8 = vadd.f32 %v1666_v49, %v1548_v7  ;;  %2838 = vst [vmem:[%s2949_s30] sm:$0xff] %v2837_v2   ;;  %v2150_v15 = vadd.f32 %v2143_v56, %v2142_v55  ;;  %v1673_v5 = vpop.f32.mrf.mxu2  ;;  %v1377_v49 = vadd.f32 %v3505_v40, %v1131_v22 }
 0x143   : > { %v1379_v55 = vadd.f32 %v3513_v47, %v1133_v3 }
 0x144   : > { %v1929_v42 = vadd.f32 %v1912_v38, %v1683_v8 }
 0x145   : > { %v2086_v19 = vpop.f32.mrf.mxu0  ;;  %v1919_v52 = vpop.f32.mrf.mxu3 }
 0x146   : > { %v2103_v23 = vadd.f32 %v2086_v19, %v1929_v42 }
 0x147   : > { %v1533_v25 = vpop.f32.mrf.mxu1 }
 0x148   : > { %v1549_v32 = vadd.f32 %v1533_v25, %v1375_v18  ;;  %v2127_v33 = vadd.f32 %v2126_v9, %v2103_v23  ;;  %v2144_v13 = vmul.f32 %v2103_v23, %v2103_v23 }
 0x14a   : > { %v1684_v16 = vadd.f32 %v1668_v30, %v1549_v32  ;;  %v2151_v35 = vadd.f32 %v2150_v15, %v2144_v13  ;;  %v1676_v61 = vpop.f32.mrf.mxu2 }
 0x14c   : > { %v1930_v63 = vadd.f32 %v1914_v17, %v1684_v16 }
 0x14d   : > { %v2088_v60 = vpop.f32.mrf.mxu0 }
 0x14e   : > { %v2104_v26 = vadd.f32 %v2088_v60, %v1930_v63  ;;  %v2125_v60 = vld [vmem:[%s3550_s5] sm:$0x1] }
 0x14f   : > { %v1536_v59 = vpop.f32.mrf.mxu1 }
 0x150   : > { %v1550_v36 = vadd.f32 %v1536_v59, %v3499_v10  ;;  %v2842_v41 = vpack.c.bf16 %v2104_v26, %v2103_v23  ;;  %v2128_v14 = vadd.f32 %v2127_v33, %v2104_v26  ;;  %v2145_v31 = vmul.f32 %v2104_v26, %v2104_v26  ;;  %v2141_v59 = vld [vmem:[%s3551_s6] sm:$0x1] }
 0x152   : > { %v1685_v45 = vadd.f32 %v1671_v21, %v1550_v36  ;;  %2857 = vst [vmem:[%s2949_s30 + $0x8] sm:$0xff] %v2842_v41   ;;  %v2152_v39 = vadd.f32 %v2151_v35, %v2145_v31  ;;  %v1678_v28 = vpop.f32.mrf.mxu2  ;;  %v1922_v21 = vpop.f32.mrf.mxu3 }
 0x154   : > { %v1931_v29 = vadd.f32 %v1917_v58, %v1685_v45 }
 0x155   : > { %v2091_v51 = vpop.f32.mrf.mxu0 }
 0x156   : > { %v2105_v53 = vadd.f32 %v2091_v51, %v1931_v29 }
 0x157   : > { %v1538_v30 = vpop.f32.mrf.mxu1 }
 0x158   : > { %v1551_v54 = vadd.f32 %v1538_v30, %v1377_v49  ;;  %v2129_v27 = vadd.f32 %v2128_v14, %v2105_v53  ;;  %v2146_v10 = vmul.f32 %v2105_v53, %v2105_v53 }
 0x15a   : > { %v1686_v37 = vadd.f32 %v1673_v5, %v1551_v54  ;;  %v2153_v20 = vadd.f32 %v2152_v39, %v2146_v10  ;;  %v2096_v34 = vpop.f32.mrf.mxu2  ;;  %v1924_v17 = vpop.f32.mrf.mxu3 }
 0x15c   : > { %v1932_v0 = vadd.f32 %v1919_v52, %v1686_v37 }
 0x15d   : > { %v2093_v57 = vpop.f32.mrf.mxu0 }
 0x15e   : > { %v2106_v38 = vadd.f32 %v2093_v57, %v1932_v0 }
 0x15f   : > { %v1541_v40 = vpop.f32.mrf.mxu1 }
 0x160   : > { %v1552_v62 = vadd.f32 %v1541_v40, %v1378_v11  ;;  %v2847_v44 = vpack.c.bf16 %v2106_v38, %v2105_v53  ;;  %v2130_v48 = vadd.f32 %v2129_v27, %v2106_v38  ;;  %v2147_v1 = vmul.f32 %v2106_v38, %v2106_v38 }
 0x162   : > { %v1687_v4 = vadd.f32 %v1676_v61, %v1552_v62  ;;  %2858 = vst [vmem:[%s2949_s30 + $0x10] sm:$0xff] %v2847_v44   ;;  %v2154_v7 = vadd.f32 %v2153_v20, %v2147_v1  ;;  %v2098_v5 = vpop.f32.mrf.mxu2 }
 0x164   : > { %v1933_v43 = vadd.f32 %v1922_v21, %v1687_v4 }
 0x166   : > { %v2107_v46 = vadd.f32 %v2096_v34, %v1933_v43 }
 0x167   : > { %v1543_v2 = vpop.f32.mrf.mxu1 }
 0x168   : > { %v2131_v9 = vadd.f32 %v2130_v48, %v2107_v46  ;;  %v2148_v56 = vmul.f32 %v2107_v46, %v2107_v46  ;;  %v1553_v12 = vadd.f32 %v1543_v2, %v1379_v55 }
 0x16a   : > { %v2155_v8 = vadd.f32 %v2154_v7, %v2148_v56  ;;  %v1688_v15 = vadd.f32 %v1678_v28, %v1553_v12 }
 0x16c   : > { %v1934_v42 = vadd.f32 %v1924_v17, %v1688_v15 }
 0x16e   : > { %v2108_v18 = vadd.f32 %v2098_v5, %v1934_v42 }
 0x170   : > { %v2852_v24 = vpack.c.bf16 %v2108_v18, %v2107_v46  ;;  %v2132_v50 = vadd.f32 %v2131_v9, %v2108_v18  ;;  %v2149_v19 = vmul.f32 %v2108_v18, %v2108_v18 }
 0x172   : > { %2859 = vst [vmem:[%s2949_s30 + $0x18] sm:$0xff] %v2852_v24   ;;  %v2133_v23 = vrot.slane %v2132_v50, 4  ;;  %v2156_v25 = vadd.f32 %v2155_v8, %v2149_v19 }
 0x174   : > { %v2134_v32 = vadd.f32 %v2133_v23, %v2132_v50  ;;  %v2157_v33 = vrot.slane %v2156_v25, 4 }
 0x176   : > { %v2135_v47 = vrot.slane %v2134_v32, 2  ;;  %v2158_v13 = vadd.f32 %v2157_v33, %v2156_v25 }
 0x178   : > { %v2136_v16 = vadd.f32 %v2135_v47, %v2134_v32  ;;  %v2159_v35 = vrot.slane %v2158_v13, 2 }
 0x17a   : > { %v2137_v63 = vrot.slane %v2136_v16, 1  ;;  %v2160_v58 = vadd.f32 %v2159_v35, %v2158_v13 }
 0x17c   : > { %v2138_v61 = vadd.f32 %v2137_v63, %v2136_v16  ;;  %v2161_v26 = vrot.slane %v2160_v58, 1 }
 0x17e   : > { %v2139_v36 = vadd.f32 %v2138_v61, %v2125_v60  ;;  %v2162_v41 = vadd.f32 %v2161_v26, %v2160_v58 }
 0x180   : > { %2140 = vst [vmem:[%s3550_s5] sm:$0x1] %v2139_v36  ;;  %v2163_v14 = vadd.f32 %v2162_v41, %v2141_v59 }
 0x182   : > { %2164 = vst [vmem:[%s3551_s6] sm:$0x1] %v2163_v14 }
 0x183 PF: > { %s17_s21 = sadd.s32 1, %s2894_s21  }
 0x184   : > { %p14_p5 = scmp.ge.s32.totalorder %s17_s21, 4  }
 0x186   :  { %16 = sbr.rel (!%p14_p5) target bundleno = 1 (0x1), region = 96 }

</bundles_post_ra>
